<compile_context>
chip_gen: v7x
topology: tpu7x:2x2x1
jax: 0.10.0
libtpu: 0.0.40
codegen_flags: <defaults>
</compile_context>

<pallas_src>
import functools
import math

import jax
import jax.numpy as jnp
from jax import lax
from jax.experimental import pallas as pl
from jax.experimental.pallas import tpu as pltpu

EPS = 1e-07        # module-level eps in the PyTorch code
TEMP = 0.07        # contrastive temperature
N_SWEEPS = 5       # cyclic Jacobi sweeps (4x4 symmetric reaches fp32 in ~4-6)

_JACOBI_PAIRS = ((0, 1), (0, 2), (0, 3), (1, 2), (1, 3), (2, 3))


def _tri(i, j):
    # canonical storage row of lower-triangle entry (i, j)
    a, b = (i, j) if i >= j else (j, i)
    return a * (a + 1) // 2 + b


def _acos_poly(x):
    # arccos(x) for x in [0, 1]: Abramowitz & Stegun 4.4.46, |err| <= 2e-8.
    # TODO(synk): jnp.arccos lowering (via atan2) is not guaranteed in Mosaic,
    # so a sqrt/mul/add polynomial is used; inputs are clamped to [0, 1-eps].
    a = (1.5707963050, -0.2145988016, 0.0889789874, -0.0501743046,
         0.0308918810, -0.0170881256, 0.0066700901, -0.0012624911)
    p = jnp.full_like(x, a[7])
    for coef in (a[6], a[5], a[4], a[3], a[2], a[1], a[0]):
        p = p * x + coef
    return jnp.sqrt(jnp.maximum(1.0 - x, 0.0)) * p


def _router_kernel(a_ref, q_ref, v_ref, nz_ref,
                   acts_ref, outq_ref, outf_ref, bce_ref,
                   mat_scr, v3_scr,
                   *, batch, n_out, inv_count, inv_n_in):
    act = a_ref[...]                       # (N_in, L)
    nz = nz_ref[...]                       # (16, L) symmetrized noise planes
    n_in, L = act.shape

    qc = [q_ref[m] for m in range(4)]      # original Q components, (N_in, L)
    qe = [c + EPS for c in qc]             # Q + eps (quaternion_average)

    # ---- weights = F.normalize(A, p=1, dim=1) --------------------------------
    l1 = jnp.sum(jnp.abs(act), axis=0, keepdims=True)      # (1, L)
    w = act / jnp.maximum(l1, 1e-12)                       # (N_in, L)

    # ---- M (lower triangle) = sum_in w*qe_i*qe_j + eigh noise ---------------
    wq = [w * qe[i] for i in range(4)]
    for i in range(4):
        for j in range(i + 1):
            mij = jnp.sum(wq[i] * qe[j], axis=0, keepdims=True)    # (1, L)
            mij = mij + nz[4 * i + j:4 * i + j + 1, :]
            mat_scr[_tri(i, j):_tri(i, j) + 1, :] = mij

    # Only row 3 of the eigenvector matrix is needed (torch takes
    # eigvect[:, -1, :]), so only that row is propagated.
    v3_scr[0:3, :] = jnp.zeros((3, L), jnp.float32)
    v3_scr[3:4, :] = jnp.ones((1, L), jnp.float32)

    def mget(i, j):
        k = _tri(i, j)
        return mat_scr[k:k + 1, :]

    def mput(i, j, val):
        k = _tri(i, j)
        mat_scr[k:k + 1, :] = val

    zero = jnp.zeros((1, L), jnp.float32)

    # ---- cyclic Jacobi sweeps (vectorized over all L 4x4 matrices) ----------
    @pl.loop(0, N_SWEEPS)
    def _sweep(_):
        for (p, q) in _JACOBI_PAIRS:
            app = mget(p, p)
            aqq = mget(q, q)
            apq = mget(p, q)
            d = aqq - app
            sgn_d = jnp.where(d >= 0.0, 1.0, -1.0)
            rad = jnp.sqrt(d * d + 4.0 * (apq * apq))
            # branch-free rescaling of t = sign(tau)/(|tau| + sqrt(1+tau^2))
            t = (2.0 * apq * sgn_d) / (jnp.abs(d) + rad + 1e-30)
            c = lax.rsqrt(1.0 + t * t)
            s = t * c
            tapq = t * apq
            mput(p, p, app - tapq)
            mput(q, q, aqq + tapq)
            mput(p, q, zero)
            for r in range(4):
                if r == p or r == q:
                    continue
                arp = mget(r, p)
                arq = mget(r, q)
                mput(r, p, c * arp - s * arq)
                mput(r, q, s * arp + c * arq)
            vp = v3_scr[p:p + 1, :]
            vq = v3_scr[q:q + 1, :]
            v3_scr[p:p + 1, :] = c * vp - s * vq
            v3_scr[q:q + 1, :] = s * vp + c * vq

    # ---- sort eigenvalues ascending (eigh convention) with row-3 payload ----
    e = [mget(i, i) for i in range(4)]
    pay = [v3_scr[m:m + 1, :] for m in range(4)]
    for (i, j) in ((0, 1), (2, 3), (0, 2), (1, 3), (1, 2)):
        swap = e[i] > e[j]
        ei = jnp.where(swap, e[j], e[i])
        ej = jnp.where(swap, e[i], e[j])
        pi = jnp.where(swap, pay[j], pay[i])
        pj = jnp.where(swap, pay[i], pay[j])
        e[i], e[j] = ei, ej
        pay[i], pay[j] = pi, pj

    trace = e[0] + e[1] + e[2] + e[3]
    acts_ref[...] = e[3] / trace                           # (1, L)

    # K = eigvect[:, -1, :] : 4th component of each eigenvector, ascending order
    for m in range(4):
        outq_ref[m:m + 1, :] = pay[m]

    # ---- geodesic distance + softmax over N_in -------------------------------
    dots = (qc[0] * pay[0] + qc[1] * pay[1] +
            qc[2] * pay[2] + qc[3] * pay[3])               # (N_in, L)
    x = jnp.clip(jnp.abs(dots), -1.0 + EPS, 1.0 - EPS)
    dist = (2.0 / math.pi) * _acos_poly(x)
    logits = -dist
    logits = logits - jnp.max(logits, axis=0, keepdims=True)
    ex = jnp.exp(logits)
    att = ex / jnp.sum(ex, axis=0, keepdims=True)          # (N_in, L)

    # ---- out_f = mean over N_in of att * V (lane layouts already match) -----
    votes = v_ref[...]                                     # (N_in, D, L)
    outf_ref[...] = jnp.sum(att[:, None, :] * votes, axis=0) * inv_n_in

    # ---- contrastive BCE loss -------------------------------------------------
    # TODO(synk): torch nn.BCELoss rejects inputs > 1; att/0.07 > 1 almost
    # always, so the probabilities are clamped to [0, 1] here (the -100 log
    # clamp below then matches BCELoss behaviour at the boundary).
    p = jnp.clip(att * (1.0 / TEMP), 0.0, 1.0)
    log_1mp = jnp.maximum(jnp.log(1.0 - p), -100.0)
    total = jnp.sum(jnp.sum(-log_1mp, axis=1, keepdims=True),
                    axis=0, keepdims=True)                 # (1, 1)
    # Per-(b, i) correction at the argmax column, expressed through the max
    # value only (identical for any argmax tie-breaking choice).
    for bb in range(batch):
        seg = att[:, bb * n_out:(bb + 1) * n_out]          # (N_in, n_out)
        amax = jnp.max(seg, axis=1, keepdims=True)         # (N_in, 1)
        pmax = jnp.clip(amax * (1.0 / TEMP), 0.0, 1.0)
        lp = jnp.maximum(jnp.log(pmax), -100.0)
        l1m = jnp.maximum(jnp.log(1.0 - pmax), -100.0)
        total = total + jnp.sum(l1m - lp, axis=0, keepdims=True)
    bce_ref[...] = total * inv_count


def contrastive_pose_attentive_router(A, Q, V, noise):
    """A:(B,N_in,N_out)  Q:(B,N_in,N_out,4)  V:(B,N_in,N_out,D)
       noise:(B,N_out,4,4) ~ 1e-6*randn (replaces torch.randn_like on M)."""
    B, N_in, N_out = A.shape
    D = V.shape[-1]
    L = B * N_out

    # Lane-pack (b, o) into the lane axis:  l = b*N_out + o.
    a_p = jnp.transpose(A, (1, 0, 2)).reshape(N_in, L)              # (N_in, L)
    q_p = jnp.transpose(Q, (3, 1, 0, 2)).reshape(4, N_in, L)        # (4, N_in, L)
    v_p = jnp.transpose(V, (1, 3, 0, 2)).reshape(N_in, D, L)        # (N_in, D, L)

    # torch.linalg.eigh reads the lower triangle (UPLO='L'); symmetrize the
    # additive noise from its lower triangle so the kernel sees the same matrix.
    noise_l = jnp.tril(noise)
    noise_sym = noise_l + jnp.transpose(jnp.tril(noise, -1), (0, 1, 3, 2))
    nz_p = jnp.transpose(noise_sym, (2, 3, 0, 1)).reshape(16, L)    # (16, L)

    kernel = functools.partial(
        _router_kernel, batch=B, n_out=N_out,
        inv_count=1.0 / float(B * N_in * N_out),
        inv_n_in=1.0 / float(N_in))

    # TODO(synk): for very large B*N_out, tile the lane axis over a "parallel"
    # grid axis (128-lane blocks) instead of the single-step grid used here.
    acts_k, outq_k, outf_k, bce = pl.pallas_call(
        kernel,
        grid=(1,),
        in_specs=[
            pl.BlockSpec((N_in, L), lambda i: (0, 0)),
            pl.BlockSpec((4, N_in, L), lambda i: (0, 0, 0)),
            pl.BlockSpec((N_in, D, L), lambda i: (0, 0, 0)),
            pl.BlockSpec((16, L), lambda i: (0, 0)),
        ],
        out_specs=[
            pl.BlockSpec((1, L), lambda i: (0, 0)),
            pl.BlockSpec((4, L), lambda i: (0, 0)),
            pl.BlockSpec((D, L), lambda i: (0, 0)),
            pl.BlockSpec((1, 1), lambda i: (0, 0)),
        ],
        out_shape=[
            jax.ShapeDtypeStruct((1, L), jnp.float32),
            jax.ShapeDtypeStruct((4, L), jnp.float32),
            jax.ShapeDtypeStruct((D, L), jnp.float32),
            jax.ShapeDtypeStruct((1, 1), jnp.float32),
        ],
        scratch_shapes=[
            pltpu.VMEM((10, L), jnp.float32),   # lower triangle of the 4x4 M's
            pltpu.VMEM((4, L), jnp.float32),    # row 3 of the eigenvector matrix
        ],
        compiler_params=pltpu.CompilerParams(
            dimension_semantics=("arbitrary",)),
    )(a_p, q_p, v_p, nz_p)

    acts = acts_k.reshape(B, N_out)[..., None]                      # (B, N_out, 1)
    out_q = jnp.transpose(outq_k.reshape(4, B, N_out), (1, 2, 0))   # (B, N_out, 4)
    out_f = jnp.transpose(outf_k.reshape(D, B, N_out), (1, 2, 0))   # (B, N_out, D)
    nce_loss = bce[0, 0]
    return acts, out_q, out_f, nce_loss


if __name__ == "__main__":
    key = jax.random.PRNGKey(0)
    kA, kQ, kV, kN = jax.random.split(key, 4)

    B, N_in, N_out, D = 2, 32, 8, 16
    A = jax.random.uniform(kA, (B, N_in, N_out), jnp.float32)
    Q = jax.random.normal(kQ, (B, N_in, N_out, 4), jnp.float32)
    Q = Q / jnp.linalg.norm(Q, axis=-1, keepdims=True)
    V = jax.random.normal(kV, (B, N_in, N_out, D), jnp.float32)
    # deterministic replacement for torch.randn_like(M) * 1e-6
    noise = 1e-6 * jax.random.normal(kN, (B, N_out, 4, 4), jnp.float32)

    fn = jax.jit(contrastive_pose_attentive_router)
    acts, out_q, out_f, nce_loss = fn(A, Q, V, noise)
    jax.block_until_ready((acts, out_q, out_f, nce_loss))

    assert acts.shape == (B, N_out, 1)
    assert out_q.shape == (B, N_out, 4)
    assert out_f.shape == (B, N_out, D)
    assert nce_loss.shape == ()
    assert bool(jnp.all(jnp.isfinite(acts)))
    assert bool(jnp.all(jnp.isfinite(out_q)))
    assert bool(jnp.all(jnp.isfinite(out_f)))
    assert bool(jnp.isfinite(nce_loss))
    # rows of an orthogonal eigenvector matrix are unit norm; Jacobi rotations
    # preserve this exactly, so it is a cheap sanity check of the eigensolver.
    row_norm_err = jnp.abs(jnp.sum(out_q * out_q, axis=-1) - 1.0)
    assert bool(jnp.all(row_norm_err < 1e-3))
    print("KERNEL_OK")
</pallas_src>

<mosaic_0001>
module attributes {stable_mosaic.version = 11 : i64} {
  func.func @_router_kernel(%arg0: i32, %arg1: memref<32x16xf32, #tpu.memory_space<vmem>>, %arg2: memref<4x32x16xf32, #tpu.memory_space<vmem>>, %arg3: memref<32x16x16xf32, #tpu.memory_space<vmem>>, %arg4: memref<16x16xf32, #tpu.memory_space<vmem>>, %arg5: memref<1x16xf32, #tpu.memory_space<vmem>>, %arg6: memref<4x16xf32, #tpu.memory_space<vmem>>, %arg7: memref<16x16xf32, #tpu.memory_space<vmem>>, %arg8: memref<1x1xf32, #tpu.memory_space<vmem>>, %arg9: memref<10x16xf32, #tpu.memory_space<vmem>>, %arg10: memref<4x16xf32, #tpu.memory_space<vmem>>) attributes {dimension_semantics = [#tpu.dimension_semantics<arbitrary>], iteration_bounds = array<i64: 1>, scalar_prefetch = 0 : i64, scratch_operands = 2 : i64, tpu.core_type = #tpu.core_type<tc>, window_params = [{pipeline_mode = #tpu.pipeline_mode<synchronous>, transform_indices = @transform_0, window_bounds = array<i64: 32, 16>}, {pipeline_mode = #tpu.pipeline_mode<synchronous>, transform_indices = @transform_1, window_bounds = array<i64: 4, 32, 16>}, {pipeline_mode = #tpu.pipeline_mode<synchronous>, transform_indices = @transform_2, window_bounds = array<i64: 32, 16, 16>}, {pipeline_mode = #tpu.pipeline_mode<synchronous>, transform_indices = @transform_3, window_bounds = array<i64: 16, 16>}, {pipeline_mode = #tpu.pipeline_mode<synchronous>, transform_indices = @transform_4, window_bounds = array<i64: 1, 16>}, {pipeline_mode = #tpu.pipeline_mode<synchronous>, transform_indices = @transform_5, window_bounds = array<i64: 4, 16>}, {pipeline_mode = #tpu.pipeline_mode<synchronous>, transform_indices = @transform_6, window_bounds = array<i64: 16, 16>}, {pipeline_mode = #tpu.pipeline_mode<synchronous>, transform_indices = @transform_7, window_bounds = array<i64: 1, 1>}]} {
    %c0 = arith.constant 0 : index
    %c0_0 = arith.constant 0 : index
    %0 = vector.load %arg1[%c0, %c0_0] : memref<32x16xf32, #tpu.memory_space<vmem>>, vector<32x16xf32>
    %c0_1 = arith.constant 0 : index
    %c0_2 = arith.constant 0 : index
    %1 = vector.load %arg4[%c0_1, %c0_2] : memref<16x16xf32, #tpu.memory_space<vmem>>, vector<16x16xf32>
    %c0_3 = arith.constant 0 : index
    %c0_4 = arith.constant 0 : index
    %c0_5 = arith.constant 0 : index
    %2 = vector.load %arg2[%c0_3, %c0_4, %c0_5] : memref<4x32x16xf32, #tpu.memory_space<vmem>>, vector<1x32x16xf32>
    %3 = vector.shape_cast %2 : vector<1x32x16xf32> to vector<32x16xf32>
    %c1 = arith.constant 1 : index
    %c0_6 = arith.constant 0 : index
    %c0_7 = arith.constant 0 : index
    %4 = vector.load %arg2[%c1, %c0_6, %c0_7] : memref<4x32x16xf32, #tpu.memory_space<vmem>>, vector<1x32x16xf32>
    %5 = vector.shape_cast %4 : vector<1x32x16xf32> to vector<32x16xf32>
    %c2 = arith.constant 2 : index
    %c0_8 = arith.constant 0 : index
    %c0_9 = arith.constant 0 : index
    %6 = vector.load %arg2[%c2, %c0_8, %c0_9] : memref<4x32x16xf32, #tpu.memory_space<vmem>>, vector<1x32x16xf32>
    %7 = vector.shape_cast %6 : vector<1x32x16xf32> to vector<32x16xf32>
    %c3 = arith.constant 3 : index
    %c0_10 = arith.constant 0 : index
    %c0_11 = arith.constant 0 : index
    %8 = vector.load %arg2[%c3, %c0_10, %c0_11] : memref<4x32x16xf32, #tpu.memory_space<vmem>>, vector<1x32x16xf32>
    %9 = vector.shape_cast %8 : vector<1x32x16xf32> to vector<32x16xf32>
    %cst = arith.constant 1.000000e-07 : f32
    %10 = vector.broadcast %cst : f32 to vector<32x16xf32>
    %11 = arith.addf %3, %10 : vector<32x16xf32>
    %cst_12 = arith.constant 1.000000e-07 : f32
    %12 = vector.broadcast %cst_12 : f32 to vector<32x16xf32>
    %13 = arith.addf %5, %12 : vector<32x16xf32>
    %cst_13 = arith.constant 1.000000e-07 : f32
    %14 = vector.broadcast %cst_13 : f32 to vector<32x16xf32>
    %15 = arith.addf %7, %14 : vector<32x16xf32>
    %cst_14 = arith.constant 1.000000e-07 : f32
    %16 = vector.broadcast %cst_14 : f32 to vector<32x16xf32>
    %17 = arith.addf %9, %16 : vector<32x16xf32>
    %18 = math.absf %0 : vector<32x16xf32>
    %cst_15 = arith.constant dense<0.000000e+00> : vector<16xf32>
    %19 = vector.multi_reduction <add>, %18, %cst_15 [0] : vector<32x16xf32> to vector<16xf32>
    %20 = vector.shape_cast %19 : vector<16xf32> to vector<1x16xf32>
    %cst_16 = arith.constant 9.99999996E-13 : f32
    %21 = vector.broadcast %cst_16 : f32 to vector<1x16xf32>
    %22 = arith.maximumf %20, %21 : vector<1x16xf32>
    %23 = vector.broadcast %22 : vector<1x16xf32> to vector<32x16xf32>
    %24 = arith.divf %0, %23 : vector<32x16xf32>
    %25 = arith.mulf %24, %11 : vector<32x16xf32>
    %26 = arith.mulf %24, %13 : vector<32x16xf32>
    %27 = arith.mulf %24, %15 : vector<32x16xf32>
    %28 = arith.mulf %24, %17 : vector<32x16xf32>
    %29 = arith.mulf %25, %11 : vector<32x16xf32>
    %cst_17 = arith.constant dense<0.000000e+00> : vector<16xf32>
    %30 = vector.multi_reduction <add>, %29, %cst_17 [0] : vector<32x16xf32> to vector<16xf32>
    %31 = vector.shape_cast %30 : vector<16xf32> to vector<1x16xf32>
    %32 = vector.extract_strided_slice %1 {offsets = [0, 0], sizes = [1, 16], strides = [1, 1]} : vector<16x16xf32> to vector<1x16xf32>
    %33 = arith.addf %31, %32 : vector<1x16xf32>
    %c0_18 = arith.constant 0 : index
    %c0_19 = arith.constant 0 : index
    %34 = vector.load %arg9[%c0_18, %c0_19] : memref<10x16xf32, #tpu.memory_space<vmem>>, vector<1x16xf32>
    tpu.vector_store %arg9[%c0_18, %c0_19], %33 {strides = array<i32>} : memref<10x16xf32, #tpu.memory_space<vmem>>, vector<1x16xf32>,
    %35 = arith.mulf %26, %11 : vector<32x16xf32>
    %cst_20 = arith.constant dense<0.000000e+00> : vector<16xf32>
    %36 = vector.multi_reduction <add>, %35, %cst_20 [0] : vector<32x16xf32> to vector<16xf32>
    %37 = vector.shape_cast %36 : vector<16xf32> to vector<1x16xf32>
    %38 = vector.extract_strided_slice %1 {offsets = [4, 0], sizes = [1, 16], strides = [1, 1]} : vector<16x16xf32> to vector<1x16xf32>
    %39 = arith.addf %37, %38 : vector<1x16xf32>
    %c1_21 = arith.constant 1 : index
    %c0_22 = arith.constant 0 : index
    %40 = vector.load %arg9[%c1_21, %c0_22] : memref<10x16xf32, #tpu.memory_space<vmem>>, vector<1x16xf32>
    tpu.vector_store %arg9[%c1_21, %c0_22], %39 {strides = array<i32>} : memref<10x16xf32, #tpu.memory_space<vmem>>, vector<1x16xf32>,
    %41 = arith.mulf %26, %13 : vector<32x16xf32>
    %cst_23 = arith.constant dense<0.000000e+00> : vector<16xf32>
    %42 = vector.multi_reduction <add>, %41, %cst_23 [0] : vector<32x16xf32> to vector<16xf32>
    %43 = vector.shape_cast %42 : vector<16xf32> to vector<1x16xf32>
    %44 = vector.extract_strided_slice %1 {offsets = [5, 0], sizes = [1, 16], strides = [1, 1]} : vector<16x16xf32> to vector<1x16xf32>
    %45 = arith.addf %43, %44 : vector<1x16xf32>
    %c2_24 = arith.constant 2 : index
    %c0_25 = arith.constant 0 : index
    %46 = vector.load %arg9[%c2_24, %c0_25] : memref<10x16xf32, #tpu.memory_space<vmem>>, vector<1x16xf32>
    tpu.vector_store %arg9[%c2_24, %c0_25], %45 {strides = array<i32>} : memref<10x16xf32, #tpu.memory_space<vmem>>, vector<1x16xf32>,
    %47 = arith.mulf %27, %11 : vector<32x16xf32>
    %cst_26 = arith.constant dense<0.000000e+00> : vector<16xf32>
    %48 = vector.multi_reduction <add>, %47, %cst_26 [0] : vector<32x16xf32> to vector<16xf32>
    %49 = vector.shape_cast %48 : vector<16xf32> to vector<1x16xf32>
    %50 = vector.extract_strided_slice %1 {offsets = [8, 0], sizes = [1, 16], strides = [1, 1]} : vector<16x16xf32> to vector<1x16xf32>
    %51 = arith.addf %49, %50 : vector<1x16xf32>
    %c3_27 = arith.constant 3 : index
    %c0_28 = arith.constant 0 : index
    %52 = vector.load %arg9[%c3_27, %c0_28] : memref<10x16xf32, #tpu.memory_space<vmem>>, vector<1x16xf32>
    tpu.vector_store %arg9[%c3_27, %c0_28], %51 {strides = array<i32>} : memref<10x16xf32, #tpu.memory_space<vmem>>, vector<1x16xf32>,
    %53 = arith.mulf %27, %13 : vector<32x16xf32>
    %cst_29 = arith.constant dense<0.000000e+00> : vector<16xf32>
    %54 = vector.multi_reduction <add>, %53, %cst_29 [0] : vector<32x16xf32> to vector<16xf32>
    %55 = vector.shape_cast %54 : vector<16xf32> to vector<1x16xf32>
    %56 = vector.extract_strided_slice %1 {offsets = [9, 0], sizes = [1, 16], strides = [1, 1]} : vector<16x16xf32> to vector<1x16xf32>
    %57 = arith.addf %55, %56 : vector<1x16xf32>
    %c4 = arith.constant 4 : index
    %c0_30 = arith.constant 0 : index
    %58 = vector.load %arg9[%c4, %c0_30] : memref<10x16xf32, #tpu.memory_space<vmem>>, vector<1x16xf32>
    tpu.vector_store %arg9[%c4, %c0_30], %57 {strides = array<i32>} : memref<10x16xf32, #tpu.memory_space<vmem>>, vector<1x16xf32>,
    %59 = arith.mulf %27, %15 : vector<32x16xf32>
    %cst_31 = arith.constant dense<0.000000e+00> : vector<16xf32>
    %60 = vector.multi_reduction <add>, %59, %cst_31 [0] : vector<32x16xf32> to vector<16xf32>
    %61 = vector.shape_cast %60 : vector<16xf32> to vector<1x16xf32>
    %62 = vector.extract_strided_slice %1 {offsets = [10, 0], sizes = [1, 16], strides = [1, 1]} : vector<16x16xf32> to vector<1x16xf32>
    %63 = arith.addf %61, %62 : vector<1x16xf32>
    %c5 = arith.constant 5 : index
    %c0_32 = arith.constant 0 : index
    %64 = vector.load %arg9[%c5, %c0_32] : memref<10x16xf32, #tpu.memory_space<vmem>>, vector<1x16xf32>
    tpu.vector_store %arg9[%c5, %c0_32], %63 {strides = array<i32>} : memref<10x16xf32, #tpu.memory_space<vmem>>, vector<1x16xf32>,
    %65 = arith.mulf %28, %11 : vector<32x16xf32>
    %cst_33 = arith.constant dense<0.000000e+00> : vector<16xf32>
    %66 = vector.multi_reduction <add>, %65, %cst_33 [0] : vector<32x16xf32> to vector<16xf32>
    %67 = vector.shape_cast %66 : vector<16xf32> to vector<1x16xf32>
    %68 = vector.extract_strided_slice %1 {offsets = [12, 0], sizes = [1, 16], strides = [1, 1]} : vector<16x16xf32> to vector<1x16xf32>
    %69 = arith.addf %67, %68 : vector<1x16xf32>
    %c6 = arith.constant 6 : index
    %c0_34 = arith.constant 0 : index
    %70 = vector.load %arg9[%c6, %c0_34] : memref<10x16xf32, #tpu.memory_space<vmem>>, vector<1x16xf32>
    tpu.vector_store %arg9[%c6, %c0_34], %69 {strides = array<i32>} : memref<10x16xf32, #tpu.memory_space<vmem>>, vector<1x16xf32>,
    %71 = arith.mulf %28, %13 : vector<32x16xf32>
    %cst_35 = arith.constant dense<0.000000e+00> : vector<16xf32>
    %72 = vector.multi_reduction <add>, %71, %cst_35 [0] : vector<32x16xf32> to vector<16xf32>
    %73 = vector.shape_cast %72 : vector<16xf32> to vector<1x16xf32>
    %74 = vector.extract_strided_slice %1 {offsets = [13, 0], sizes = [1, 16], strides = [1, 1]} : vector<16x16xf32> to vector<1x16xf32>
    %75 = arith.addf %73, %74 : vector<1x16xf32>
    %c7 = arith.constant 7 : index
    %c0_36 = arith.constant 0 : index
    %76 = vector.load %arg9[%c7, %c0_36] : memref<10x16xf32, #tpu.memory_space<vmem>>, vector<1x16xf32>
    tpu.vector_store %arg9[%c7, %c0_36], %75 {strides = array<i32>} : memref<10x16xf32, #tpu.memory_space<vmem>>, vector<1x16xf32>,
    %77 = arith.mulf %28, %15 : vector<32x16xf32>
    %cst_37 = arith.constant dense<0.000000e+00> : vector<16xf32>
    %78 = vector.multi_reduction <add>, %77, %cst_37 [0] : vector<32x16xf32> to vector<16xf32>
    %79 = vector.shape_cast %78 : vector<16xf32> to vector<1x16xf32>
    %80 = vector.extract_strided_slice %1 {offsets = [14, 0], sizes = [1, 16], strides = [1, 1]} : vector<16x16xf32> to vector<1x16xf32>
    %81 = arith.addf %79, %80 : vector<1x16xf32>
    %c8 = arith.constant 8 : index
    %c0_38 = arith.constant 0 : index
    %82 = vector.load %arg9[%c8, %c0_38] : memref<10x16xf32, #tpu.memory_space<vmem>>, vector<1x16xf32>
    tpu.vector_store %arg9[%c8, %c0_38], %81 {strides = array<i32>} : memref<10x16xf32, #tpu.memory_space<vmem>>, vector<1x16xf32>,
    %83 = arith.mulf %28, %17 : vector<32x16xf32>
    %cst_39 = arith.constant dense<0.000000e+00> : vector<16xf32>
    %84 = vector.multi_reduction <add>, %83, %cst_39 [0] : vector<32x16xf32> to vector<16xf32>
    %85 = vector.shape_cast %84 : vector<16xf32> to vector<1x16xf32>
    %86 = vector.extract_strided_slice %1 {offsets = [15, 0], sizes = [1, 16], strides = [1, 1]} : vector<16x16xf32> to vector<1x16xf32>
    %87 = arith.addf %85, %86 : vector<1x16xf32>
    %c9 = arith.constant 9 : index
    %c0_40 = arith.constant 0 : index
    %88 = vector.load %arg9[%c9, %c0_40] : memref<10x16xf32, #tpu.memory_space<vmem>>, vector<1x16xf32>
    tpu.vector_store %arg9[%c9, %c0_40], %87 {strides = array<i32>} : memref<10x16xf32, #tpu.memory_space<vmem>>, vector<1x16xf32>,
    %cst_41 = arith.constant 0.000000e+00 : f32
    %89 = vector.broadcast %cst_41 : f32 to vector<3x16xf32>
    %c0_42 = arith.constant 0 : index
    %c0_43 = arith.constant 0 : index
    %90 = vector.load %arg10[%c0_42, %c0_43] : memref<4x16xf32, #tpu.memory_space<vmem>>, vector<3x16xf32>
    tpu.vector_store %arg10[%c0_42, %c0_43], %89 {strides = array<i32>} : memref<4x16xf32, #tpu.memory_space<vmem>>, vector<3x16xf32>,
    %cst_44 = arith.constant 1.000000e+00 : f32
    %91 = vector.broadcast %cst_44 : f32 to vector<1x16xf32>
    %c3_45 = arith.constant 3 : index
    %c0_46 = arith.constant 0 : index
    %92 = vector.load %arg10[%c3_45, %c0_46] : memref<4x16xf32, #tpu.memory_space<vmem>>, vector<1x16xf32>
    tpu.vector_store %arg10[%c3_45, %c0_46], %91 {strides = array<i32>} : memref<4x16xf32, #tpu.memory_space<vmem>>, vector<1x16xf32>,
    %cst_47 = arith.constant 0.000000e+00 : f32
    %93 = vector.broadcast %cst_47 : f32 to vector<1x16xf32>
    %c0_i32 = arith.constant 0 : i32
    %c5_i32 = arith.constant 5 : i32
    %94 = arith.addi %c0_i32, %c5_i32 : i32
    %c1_i32 = arith.constant 1 : i32
    scf.for %arg11 = %c0_i32 to %94 step %c1_i32  : i32 {
      %c0_124 = arith.constant 0 : index
      %c0_125 = arith.constant 0 : index
      %264 = vector.load %arg9[%c0_124, %c0_125] : memref<10x16xf32, #tpu.memory_space<vmem>>, vector<1x16xf32>
      %c2_126 = arith.constant 2 : index
      %c0_127 = arith.constant 0 : index
      %265 = vector.load %arg9[%c2_126, %c0_127] : memref<10x16xf32, #tpu.memory_space<vmem>>, vector<1x16xf32>
      %c1_128 = arith.constant 1 : index
      %c0_129 = arith.constant 0 : index
      %266 = vector.load %arg9[%c1_128, %c0_129] : memref<10x16xf32, #tpu.memory_space<vmem>>, vector<1x16xf32>
      %267 = arith.subf %265, %264 : vector<1x16xf32>
      %cst_130 = arith.constant 0.000000e+00 : f32
      %268 = vector.broadcast %cst_130 : f32 to vector<1x16xf32>
      %269 = arith.cmpf oge, %267, %268 : vector<1x16xf32>
      %cst_131 = arith.constant 1.000000e+00 : f32
      %cst_132 = arith.constant -1.000000e+00 : f32
      %270 = vector.broadcast %cst_131 : f32 to vector<1x16xf32>
      %271 = vector.broadcast %cst_132 : f32 to vector<1x16xf32>
      %272 = arith.select %269, %270, %271 : vector<1x16xi1>, vector<1x16xf32>
      %273 = arith.mulf %267, %267 : vector<1x16xf32>
      %274 = arith.mulf %266, %266 : vector<1x16xf32>
      %cst_133 = arith.constant 4.000000e+00 : f32
      %275 = vector.broadcast %cst_133 : f32 to vector<1x16xf32>
      %276 = arith.mulf %275, %274 : vector<1x16xf32>
      %277 = arith.addf %273, %276 : vector<1x16xf32>
      %278 = math.sqrt %277 : vector<1x16xf32>
      %cst_134 = arith.constant 2.000000e+00 : f32
      %279 = vector.broadcast %cst_134 : f32 to vector<1x16xf32>
      %280 = arith.mulf %279, %266 : vector<1x16xf32>
      %281 = arith.mulf %280, %272 : vector<1x16xf32>
      %282 = math.absf %267 : vector<1x16xf32>
      %283 = arith.addf %282, %278 : vector<1x16xf32>
      %cst_135 = arith.constant 1.000000e-30 : f32
      %284 = vector.broadcast %cst_135 : f32 to vector<1x16xf32>
      %285 = arith.addf %283, %284 : vector<1x16xf32>
      %286 = arith.divf %281, %285 : vector<1x16xf32>
      %287 = arith.mulf %286, %286 : vector<1x16xf32>
      %cst_136 = arith.constant 1.000000e+00 : f32
      %288 = vector.broadcast %cst_136 : f32 to vector<1x16xf32>
      %289 = arith.addf %288, %287 : vector<1x16xf32>
      %290 = math.rsqrt %289 : vector<1x16xf32>
      %291 = arith.mulf %286, %290 : vector<1x16xf32>
      %292 = arith.mulf %286, %266 : vector<1x16xf32>
      %293 = arith.subf %264, %292 : vector<1x16xf32>
      %c0_137 = arith.constant 0 : index
      %c0_138 = arith.constant 0 : index
      %294 = vector.load %arg9[%c0_137, %c0_138] : memref<10x16xf32, #tpu.memory_space<vmem>>, vector<1x16xf32>
      tpu.vector_store %arg9[%c0_137, %c0_138], %293 {strides = array<i32>} : memref<10x16xf32, #tpu.memory_space<vmem>>, vector<1x16xf32>,
      %295 = arith.addf %265, %292 : vector<1x16xf32>
      %c2_139 = arith.constant 2 : index
      %c0_140 = arith.constant 0 : index
      %296 = vector.load %arg9[%c2_139, %c0_140] : memref<10x16xf32, #tpu.memory_space<vmem>>, vector<1x16xf32>
      tpu.vector_store %arg9[%c2_139, %c0_140], %295 {strides = array<i32>} : memref<10x16xf32, #tpu.memory_space<vmem>>, vector<1x16xf32>,
      %c1_141 = arith.constant 1 : index
      %c0_142 = arith.constant 0 : index
      %297 = vector.load %arg9[%c1_141, %c0_142] : memref<10x16xf32, #tpu.memory_space<vmem>>, vector<1x16xf32>
      tpu.vector_store %arg9[%c1_141, %c0_142], %93 {strides = array<i32>} : memref<10x16xf32, #tpu.memory_space<vmem>>, vector<1x16xf32>,
      %c3_143 = arith.constant 3 : index
      %c0_144 = arith.constant 0 : index
      %298 = vector.load %arg9[%c3_143, %c0_144] : memref<10x16xf32, #tpu.memory_space<vmem>>, vector<1x16xf32>
      %c4_145 = arith.constant 4 : index
      %c0_146 = arith.constant 0 : index
      %299 = vector.load %arg9[%c4_145, %c0_146] : memref<10x16xf32, #tpu.memory_space<vmem>>, vector<1x16xf32>
      %300 = arith.mulf %290, %298 : vector<1x16xf32>
      %301 = arith.mulf %291, %299 : vector<1x16xf32>
      %302 = arith.subf %300, %301 : vector<1x16xf32>
      %c3_147 = arith.constant 3 : index
      %c0_148 = arith.constant 0 : index
      %303 = vector.load %arg9[%c3_147, %c0_148] : memref<10x16xf32, #tpu.memory_space<vmem>>, vector<1x16xf32>
      tpu.vector_store %arg9[%c3_147, %c0_148], %302 {strides = array<i32>} : memref<10x16xf32, #tpu.memory_space<vmem>>, vector<1x16xf32>,
      %304 = arith.mulf %291, %298 : vector<1x16xf32>
      %305 = arith.mulf %290, %299 : vector<1x16xf32>
      %306 = arith.addf %304, %305 : vector<1x16xf32>
      %c4_149 = arith.constant 4 : index
      %c0_150 = arith.constant 0 : index
      %307 = vector.load %arg9[%c4_149, %c0_150] : memref<10x16xf32, #tpu.memory_space<vmem>>, vector<1x16xf32>
      tpu.vector_store %arg9[%c4_149, %c0_150], %306 {strides = array<i32>} : memref<10x16xf32, #tpu.memory_space<vmem>>, vector<1x16xf32>,
      %c6_151 = arith.constant 6 : index
      %c0_152 = arith.constant 0 : index
      %308 = vector.load %arg9[%c6_151, %c0_152] : memref<10x16xf32, #tpu.memory_space<vmem>>, vector<1x16xf32>
      %c7_153 = arith.constant 7 : index
      %c0_154 = arith.constant 0 : index
      %309 = vector.load %arg9[%c7_153, %c0_154] : memref<10x16xf32, #tpu.memory_space<vmem>>, vector<1x16xf32>
      %310 = arith.mulf %290, %308 : vector<1x16xf32>
      %311 = arith.mulf %291, %309 : vector<1x16xf32>
      %312 = arith.subf %310, %311 : vector<1x16xf32>
      %c6_155 = arith.constant 6 : index
      %c0_156 = arith.constant 0 : index
      %313 = vector.load %arg9[%c6_155, %c0_156] : memref<10x16xf32, #tpu.memory_space<vmem>>, vector<1x16xf32>
      tpu.vector_store %arg9[%c6_155, %c0_156], %312 {strides = array<i32>} : memref<10x16xf32, #tpu.memory_space<vmem>>, vector<1x16xf32>,
      %314 = arith.mulf %291, %308 : vector<1x16xf32>
      %315 = arith.mulf %290, %309 : vector<1x16xf32>
      %316 = arith.addf %314, %315 : vector<1x16xf32>
      %c7_157 = arith.constant 7 : index
      %c0_158 = arith.constant 0 : index
      %317 = vector.load %arg9[%c7_157, %c0_158] : memref<10x16xf32, #tpu.memory_space<vmem>>, vector<1x16xf32>
      tpu.vector_store %arg9[%c7_157, %c0_158], %316 {strides = array<i32>} : memref<10x16xf32, #tpu.memory_space<vmem>>, vector<1x16xf32>,
      %c0_159 = arith.constant 0 : index
      %c0_160 = arith.constant 0 : index
      %318 = vector.load %arg10[%c0_159, %c0_160] : memref<4x16xf32, #tpu.memory_space<vmem>>, vector<1x16xf32>
      %c1_161 = arith.constant 1 : index
      %c0_162 = arith.constant 0 : index
      %319 = vector.load %arg10[%c1_161, %c0_162] : memref<4x16xf32, #tpu.memory_space<vmem>>, vector<1x16xf32>
      %320 = arith.mulf %290, %318 : vector<1x16xf32>
      %321 = arith.mulf %291, %319 : vector<1x16xf32>
      %322 = arith.subf %320, %321 : vector<1x16xf32>
      %c0_163 = arith.constant 0 : index
      %c0_164 = arith.constant 0 : index
      %323 = vector.load %arg10[%c0_163, %c0_164] : memref<4x16xf32, #tpu.memory_space<vmem>>, vector<1x16xf32>
      tpu.vector_store %arg10[%c0_163, %c0_164], %322 {strides = array<i32>} : memref<4x16xf32, #tpu.memory_space<vmem>>, vector<1x16xf32>,
      %324 = arith.mulf %291, %318 : vector<1x16xf32>
      %325 = arith.mulf %290, %319 : vector<1x16xf32>
      %326 = arith.addf %324, %325 : vector<1x16xf32>
      %c1_165 = arith.constant 1 : index
      %c0_166 = arith.constant 0 : index
      %327 = vector.load %arg10[%c1_165, %c0_166] : memref<4x16xf32, #tpu.memory_space<vmem>>, vector<1x16xf32>
      tpu.vector_store %arg10[%c1_165, %c0_166], %326 {strides = array<i32>} : memref<4x16xf32, #tpu.memory_space<vmem>>, vector<1x16xf32>,
      %c0_167 = arith.constant 0 : index
      %c0_168 = arith.constant 0 : index
      %328 = vector.load %arg9[%c0_167, %c0_168] : memref<10x16xf32, #tpu.memory_space<vmem>>, vector<1x16xf32>
      %c5_169 = arith.constant 5 : index
      %c0_170 = arith.constant 0 : index
      %329 = vector.load %arg9[%c5_169, %c0_170] : memref<10x16xf32, #tpu.memory_space<vmem>>, vector<1x16xf32>
      %c3_171 = arith.constant 3 : index
      %c0_172 = arith.constant 0 : index
      %330 = vector.load %arg9[%c3_171, %c0_172] : memref<10x16xf32, #tpu.memory_space<vmem>>, vector<1x16xf32>
      %331 = arith.subf %329, %328 : vector<1x16xf32>
      %cst_173 = arith.constant 0.000000e+00 : f32
      %332 = vector.broadcast %cst_173 : f32 to vector<1x16xf32>
      %333 = arith.cmpf oge, %331, %332 : vector<1x16xf32>
      %cst_174 = arith.constant 1.000000e+00 : f32
      %cst_175 = arith.constant -1.000000e+00 : f32
      %334 = vector.broadcast %cst_174 : f32 to vector<1x16xf32>
      %335 = vector.broadcast %cst_175 : f32 to vector<1x16xf32>
      %336 = arith.select %333, %334, %335 : vector<1x16xi1>, vector<1x16xf32>
      %337 = arith.mulf %331, %331 : vector<1x16xf32>
      %338 = arith.mulf %330, %330 : vector<1x16xf32>
      %cst_176 = arith.constant 4.000000e+00 : f32
      %339 = vector.broadcast %cst_176 : f32 to vector<1x16xf32>
      %340 = arith.mulf %339, %338 : vector<1x16xf32>
      %341 = arith.addf %337, %340 : vector<1x16xf32>
      %342 = math.sqrt %341 : vector<1x16xf32>
      %cst_177 = arith.constant 2.000000e+00 : f32
      %343 = vector.broadcast %cst_177 : f32 to vector<1x16xf32>
      %344 = arith.mulf %343, %330 : vector<1x16xf32>
      %345 = arith.mulf %344, %336 : vector<1x16xf32>
      %346 = math.absf %331 : vector<1x16xf32>
      %347 = arith.addf %346, %342 : vector<1x16xf32>
      %cst_178 = arith.constant 1.000000e-30 : f32
      %348 = vector.broadcast %cst_178 : f32 to vector<1x16xf32>
      %349 = arith.addf %347, %348 : vector<1x16xf32>
      %350 = arith.divf %345, %349 : vector<1x16xf32>
      %351 = arith.mulf %350, %350 : vector<1x16xf32>
      %cst_179 = arith.constant 1.000000e+00 : f32
      %352 = vector.broadcast %cst_179 : f32 to vector<1x16xf32>
      %353 = arith.addf %352, %351 : vector<1x16xf32>
      %354 = math.rsqrt %353 : vector<1x16xf32>
      %355 = arith.mulf %350, %354 : vector<1x16xf32>
      %356 = arith.mulf %350, %330 : vector<1x16xf32>
      %357 = arith.subf %328, %356 : vector<1x16xf32>
      %c0_180 = arith.constant 0 : index
      %c0_181 = arith.constant 0 : index
      %358 = vector.load %arg9[%c0_180, %c0_181] : memref<10x16xf32, #tpu.memory_space<vmem>>, vector<1x16xf32>
      tpu.vector_store %arg9[%c0_180, %c0_181], %357 {strides = array<i32>} : memref<10x16xf32, #tpu.memory_space<vmem>>, vector<1x16xf32>,
      %359 = arith.addf %329, %356 : vector<1x16xf32>
      %c5_182 = arith.constant 5 : index
      %c0_183 = arith.constant 0 : index
      %360 = vector.load %arg9[%c5_182, %c0_183] : memref<10x16xf32, #tpu.memory_space<vmem>>, vector<1x16xf32>
      tpu.vector_store %arg9[%c5_182, %c0_183], %359 {strides = array<i32>} : memref<10x16xf32, #tpu.memory_space<vmem>>, vector<1x16xf32>,
      %c3_184 = arith.constant 3 : index
      %c0_185 = arith.constant 0 : index
      %361 = vector.load %arg9[%c3_184, %c0_185] : memref<10x16xf32, #tpu.memory_space<vmem>>, vector<1x16xf32>
      tpu.vector_store %arg9[%c3_184, %c0_185], %93 {strides = array<i32>} : memref<10x16xf32, #tpu.memory_space<vmem>>, vector<1x16xf32>,
      %c1_186 = arith.constant 1 : index
      %c0_187 = arith.constant 0 : index
      %362 = vector.load %arg9[%c1_186, %c0_187] : memref<10x16xf32, #tpu.memory_space<vmem>>, vector<1x16xf32>
      %c4_188 = arith.constant 4 : index
      %c0_189 = arith.constant 0 : index
      %363 = vector.load %arg9[%c4_188, %c0_189] : memref<10x16xf32, #tpu.memory_space<vmem>>, vector<1x16xf32>
      %364 = arith.mulf %354, %362 : vector<1x16xf32>
      %365 = arith.mulf %355, %363 : vector<1x16xf32>
      %366 = arith.subf %364, %365 : vector<1x16xf32>
      %c1_190 = arith.constant 1 : index
      %c0_191 = arith.constant 0 : index
      %367 = vector.load %arg9[%c1_190, %c0_191] : memref<10x16xf32, #tpu.memory_space<vmem>>, vector<1x16xf32>
      tpu.vector_store %arg9[%c1_190, %c0_191], %366 {strides = array<i32>} : memref<10x16xf32, #tpu.memory_space<vmem>>, vector<1x16xf32>,
      %368 = arith.mulf %355, %362 : vector<1x16xf32>
      %369 = arith.mulf %354, %363 : vector<1x16xf32>
      %370 = arith.addf %368, %369 : vector<1x16xf32>
      %c4_192 = arith.constant 4 : index
      %c0_193 = arith.constant 0 : index
      %371 = vector.load %arg9[%c4_192, %c0_193] : memref<10x16xf32, #tpu.memory_space<vmem>>, vector<1x16xf32>
      tpu.vector_store %arg9[%c4_192, %c0_193], %370 {strides = array<i32>} : memref<10x16xf32, #tpu.memory_space<vmem>>, vector<1x16xf32>,
      %c6_194 = arith.constant 6 : index
      %c0_195 = arith.constant 0 : index
      %372 = vector.load %arg9[%c6_194, %c0_195] : memref<10x16xf32, #tpu.memory_space<vmem>>, vector<1x16xf32>
      %c8_196 = arith.constant 8 : index
      %c0_197 = arith.constant 0 : index
      %373 = vector.load %arg9[%c8_196, %c0_197] : memref<10x16xf32, #tpu.memory_space<vmem>>, vector<1x16xf32>
      %374 = arith.mulf %354, %372 : vector<1x16xf32>
      %375 = arith.mulf %355, %373 : vector<1x16xf32>
      %376 = arith.subf %374, %375 : vector<1x16xf32>
      %c6_198 = arith.constant 6 : index
      %c0_199 = arith.constant 0 : index
      %377 = vector.load %arg9[%c6_198, %c0_199] : memref<10x16xf32, #tpu.memory_space<vmem>>, vector<1x16xf32>
      tpu.vector_store %arg9[%c6_198, %c0_199], %376 {strides = array<i32>} : memref<10x16xf32, #tpu.memory_space<vmem>>, vector<1x16xf32>,
      %378 = arith.mulf %355, %372 : vector<1x16xf32>
      %379 = arith.mulf %354, %373 : vector<1x16xf32>
      %380 = arith.addf %378, %379 : vector<1x16xf32>
      %c8_200 = arith.constant 8 : index
      %c0_201 = arith.constant 0 : index
      %381 = vector.load %arg9[%c8_200, %c0_201] : memref<10x16xf32, #tpu.memory_space<vmem>>, vector<1x16xf32>
      tpu.vector_store %arg9[%c8_200, %c0_201], %380 {strides = array<i32>} : memref<10x16xf32, #tpu.memory_space<vmem>>, vector<1x16xf32>,
      %c0_202 = arith.constant 0 : index
      %c0_203 = arith.constant 0 : index
      %382 = vector.load %arg10[%c0_202, %c0_203] : memref<4x16xf32, #tpu.memory_space<vmem>>, vector<1x16xf32>
      %c2_204 = arith.constant 2 : index
      %c0_205 = arith.constant 0 : index
      %383 = vector.load %arg10[%c2_204, %c0_205] : memref<4x16xf32, #tpu.memory_space<vmem>>, vector<1x16xf32>
      %384 = arith.mulf %354, %382 : vector<1x16xf32>
      %385 = arith.mulf %355, %383 : vector<1x16xf32>
      %386 = arith.subf %384, %385 : vector<1x16xf32>
      %c0_206 = arith.constant 0 : index
      %c0_207 = arith.constant 0 : index
      %387 = vector.load %arg10[%c0_206, %c0_207] : memref<4x16xf32, #tpu.memory_space<vmem>>, vector<1x16xf32>
      tpu.vector_store %arg10[%c0_206, %c0_207], %386 {strides = array<i32>} : memref<4x16xf32, #tpu.memory_space<vmem>>, vector<1x16xf32>,
      %388 = arith.mulf %355, %382 : vector<1x16xf32>
      %389 = arith.mulf %354, %383 : vector<1x16xf32>
      %390 = arith.addf %388, %389 : vector<1x16xf32>
      %c2_208 = arith.constant 2 : index
      %c0_209 = arith.constant 0 : index
      %391 = vector.load %arg10[%c2_208, %c0_209] : memref<4x16xf32, #tpu.memory_space<vmem>>, vector<1x16xf32>
      tpu.vector_store %arg10[%c2_208, %c0_209], %390 {strides = array<i32>} : memref<4x16xf32, #tpu.memory_space<vmem>>, vector<1x16xf32>,
      %c0_210 = arith.constant 0 : index
      %c0_211 = arith.constant 0 : index
      %392 = vector.load %arg9[%c0_210, %c0_211] : memref<10x16xf32, #tpu.memory_space<vmem>>, vector<1x16xf32>
      %c9_212 = arith.constant 9 : index
      %c0_213 = arith.constant 0 : index
      %393 = vector.load %arg9[%c9_212, %c0_213] : memref<10x16xf32, #tpu.memory_space<vmem>>, vector<1x16xf32>
      %c6_214 = arith.constant 6 : index
      %c0_215 = arith.constant 0 : index
      %394 = vector.load %arg9[%c6_214, %c0_215] : memref<10x16xf32, #tpu.memory_space<vmem>>, vector<1x16xf32>
      %395 = arith.subf %393, %392 : vector<1x16xf32>
      %cst_216 = arith.constant 0.000000e+00 : f32
      %396 = vector.broadcast %cst_216 : f32 to vector<1x16xf32>
      %397 = arith.cmpf oge, %395, %396 : vector<1x16xf32>
      %cst_217 = arith.constant 1.000000e+00 : f32
      %cst_218 = arith.constant -1.000000e+00 : f32
      %398 = vector.broadcast %cst_217 : f32 to vector<1x16xf32>
      %399 = vector.broadcast %cst_218 : f32 to vector<1x16xf32>
      %400 = arith.select %397, %398, %399 : vector<1x16xi1>, vector<1x16xf32>
      %401 = arith.mulf %395, %395 : vector<1x16xf32>
      %402 = arith.mulf %394, %394 : vector<1x16xf32>
      %cst_219 = arith.constant 4.000000e+00 : f32
      %403 = vector.broadcast %cst_219 : f32 to vector<1x16xf32>
      %404 = arith.mulf %403, %402 : vector<1x16xf32>
      %405 = arith.addf %401, %404 : vector<1x16xf32>
      %406 = math.sqrt %405 : vector<1x16xf32>
      %cst_220 = arith.constant 2.000000e+00 : f32
      %407 = vector.broadcast %cst_220 : f32 to vector<1x16xf32>
      %408 = arith.mulf %407, %394 : vector<1x16xf32>
      %409 = arith.mulf %408, %400 : vector<1x16xf32>
      %410 = math.absf %395 : vector<1x16xf32>
      %411 = arith.addf %410, %406 : vector<1x16xf32>
      %cst_221 = arith.constant 1.000000e-30 : f32
      %412 = vector.broadcast %cst_221 : f32 to vector<1x16xf32>
      %413 = arith.addf %411, %412 : vector<1x16xf32>
      %414 = arith.divf %409, %413 : vector<1x16xf32>
      %415 = arith.mulf %414, %414 : vector<1x16xf32>
      %cst_222 = arith.constant 1.000000e+00 : f32
      %416 = vector.broadcast %cst_222 : f32 to vector<1x16xf32>
      %417 = arith.addf %416, %415 : vector<1x16xf32>
      %418 = math.rsqrt %417 : vector<1x16xf32>
      %419 = arith.mulf %414, %418 : vector<1x16xf32>
      %420 = arith.mulf %414, %394 : vector<1x16xf32>
      %421 = arith.subf %392, %420 : vector<1x16xf32>
      %c0_223 = arith.constant 0 : index
      %c0_224 = arith.constant 0 : index
      %422 = vector.load %arg9[%c0_223, %c0_224] : memref<10x16xf32, #tpu.memory_space<vmem>>, vector<1x16xf32>
      tpu.vector_store %arg9[%c0_223, %c0_224], %421 {strides = array<i32>} : memref<10x16xf32, #tpu.memory_space<vmem>>, vector<1x16xf32>,
      %423 = arith.addf %393, %420 : vector<1x16xf32>
      %c9_225 = arith.constant 9 : index
      %c0_226 = arith.constant 0 : index
      %424 = vector.load %arg9[%c9_225, %c0_226] : memref<10x16xf32, #tpu.memory_space<vmem>>, vector<1x16xf32>
      tpu.vector_store %arg9[%c9_225, %c0_226], %423 {strides = array<i32>} : memref<10x16xf32, #tpu.memory_space<vmem>>, vector<1x16xf32>,
      %c6_227 = arith.constant 6 : index
      %c0_228 = arith.constant 0 : index
      %425 = vector.load %arg9[%c6_227, %c0_228] : memref<10x16xf32, #tpu.memory_space<vmem>>, vector<1x16xf32>
      tpu.vector_store %arg9[%c6_227, %c0_228], %93 {strides = array<i32>} : memref<10x16xf32, #tpu.memory_space<vmem>>, vector<1x16xf32>,
      %c1_229 = arith.constant 1 : index
      %c0_230 = arith.constant 0 : index
      %426 = vector.load %arg9[%c1_229, %c0_230] : memref<10x16xf32, #tpu.memory_space<vmem>>, vector<1x16xf32>
      %c7_231 = arith.constant 7 : index
      %c0_232 = arith.constant 0 : index
      %427 = vector.load %arg9[%c7_231, %c0_232] : memref<10x16xf32, #tpu.memory_space<vmem>>, vector<1x16xf32>
      %428 = arith.mulf %418, %426 : vector<1x16xf32>
      %429 = arith.mulf %419, %427 : vector<1x16xf32>
      %430 = arith.subf %428, %429 : vector<1x16xf32>
      %c1_233 = arith.constant 1 : index
      %c0_234 = arith.constant 0 : index
      %431 = vector.load %arg9[%c1_233, %c0_234] : memref<10x16xf32, #tpu.memory_space<vmem>>, vector<1x16xf32>
      tpu.vector_store %arg9[%c1_233, %c0_234], %430 {strides = array<i32>} : memref<10x16xf32, #tpu.memory_space<vmem>>, vector<1x16xf32>,
      %432 = arith.mulf %419, %426 : vector<1x16xf32>
      %433 = arith.mulf %418, %427 : vector<1x16xf32>
      %434 = arith.addf %432, %433 : vector<1x16xf32>
      %c7_235 = arith.constant 7 : index
      %c0_236 = arith.constant 0 : index
      %435 = vector.load %arg9[%c7_235, %c0_236] : memref<10x16xf32, #tpu.memory_space<vmem>>, vector<1x16xf32>
      tpu.vector_store %arg9[%c7_235, %c0_236], %434 {strides = array<i32>} : memref<10x16xf32, #tpu.memory_space<vmem>>, vector<1x16xf32>,
      %c3_237 = arith.constant 3 : index
      %c0_238 = arith.constant 0 : index
      %436 = vector.load %arg9[%c3_237, %c0_238] : memref<10x16xf32, #tpu.memory_space<vmem>>, vector<1x16xf32>
      %c8_239 = arith.constant 8 : index
      %c0_240 = arith.constant 0 : index
      %437 = vector.load %arg9[%c8_239, %c0_240] : memref<10x16xf32, #tpu.memory_space<vmem>>, vector<1x16xf32>
      %438 = arith.mulf %418, %436 : vector<1x16xf32>
      %439 = arith.mulf %419, %437 : vector<1x16xf32>
      %440 = arith.subf %438, %439 : vector<1x16xf32>
      %c3_241 = arith.constant 3 : index
      %c0_242 = arith.constant 0 : index
      %441 = vector.load %arg9[%c3_241, %c0_242] : memref<10x16xf32, #tpu.memory_space<vmem>>, vector<1x16xf32>
      tpu.vector_store %arg9[%c3_241, %c0_242], %440 {strides = array<i32>} : memref<10x16xf32, #tpu.memory_space<vmem>>, vector<1x16xf32>,
      %442 = arith.mulf %419, %436 : vector<1x16xf32>
      %443 = arith.mulf %418, %437 : vector<1x16xf32>
      %444 = arith.addf %442, %443 : vector<1x16xf32>
      %c8_243 = arith.constant 8 : index
      %c0_244 = arith.constant 0 : index
      %445 = vector.load %arg9[%c8_243, %c0_244] : memref<10x16xf32, #tpu.memory_space<vmem>>, vector<1x16xf32>
      tpu.vector_store %arg9[%c8_243, %c0_244], %444 {strides = array<i32>} : memref<10x16xf32, #tpu.memory_space<vmem>>, vector<1x16xf32>,
      %c0_245 = arith.constant 0 : index
      %c0_246 = arith.constant 0 : index
      %446 = vector.load %arg10[%c0_245, %c0_246] : memref<4x16xf32, #tpu.memory_space<vmem>>, vector<1x16xf32>
      %c3_247 = arith.constant 3 : index
      %c0_248 = arith.constant 0 : index
      %447 = vector.load %arg10[%c3_247, %c0_248] : memref<4x16xf32, #tpu.memory_space<vmem>>, vector<1x16xf32>
      %448 = arith.mulf %418, %446 : vector<1x16xf32>
      %449 = arith.mulf %419, %447 : vector<1x16xf32>
      %450 = arith.subf %448, %449 : vector<1x16xf32>
      %c0_249 = arith.constant 0 : index
      %c0_250 = arith.constant 0 : index
      %451 = vector.load %arg10[%c0_249, %c0_250] : memref<4x16xf32, #tpu.memory_space<vmem>>, vector<1x16xf32>
      tpu.vector_store %arg10[%c0_249, %c0_250], %450 {strides = array<i32>} : memref<4x16xf32, #tpu.memory_space<vmem>>, vector<1x16xf32>,
      %452 = arith.mulf %419, %446 : vector<1x16xf32>
      %453 = arith.mulf %418, %447 : vector<1x16xf32>
      %454 = arith.addf %452, %453 : vector<1x16xf32>
      %c3_251 = arith.constant 3 : index
      %c0_252 = arith.constant 0 : index
      %455 = vector.load %arg10[%c3_251, %c0_252] : memref<4x16xf32, #tpu.memory_space<vmem>>, vector<1x16xf32>
      tpu.vector_store %arg10[%c3_251, %c0_252], %454 {strides = array<i32>} : memref<4x16xf32, #tpu.memory_space<vmem>>, vector<1x16xf32>,
      %c2_253 = arith.constant 2 : index
      %c0_254 = arith.constant 0 : index
      %456 = vector.load %arg9[%c2_253, %c0_254] : memref<10x16xf32, #tpu.memory_space<vmem>>, vector<1x16xf32>
      %c5_255 = arith.constant 5 : index
      %c0_256 = arith.constant 0 : index
      %457 = vector.load %arg9[%c5_255, %c0_256] : memref<10x16xf32, #tpu.memory_space<vmem>>, vector<1x16xf32>
      %c4_257 = arith.constant 4 : index
      %c0_258 = arith.constant 0 : index
      %458 = vector.load %arg9[%c4_257, %c0_258] : memref<10x16xf32, #tpu.memory_space<vmem>>, vector<1x16xf32>
      %459 = arith.subf %457, %456 : vector<1x16xf32>
      %cst_259 = arith.constant 0.000000e+00 : f32
      %460 = vector.broadcast %cst_259 : f32 to vector<1x16xf32>
      %461 = arith.cmpf oge, %459, %460 : vector<1x16xf32>
      %cst_260 = arith.constant 1.000000e+00 : f32
      %cst_261 = arith.constant -1.000000e+00 : f32
      %462 = vector.broadcast %cst_260 : f32 to vector<1x16xf32>
      %463 = vector.broadcast %cst_261 : f32 to vector<1x16xf32>
      %464 = arith.select %461, %462, %463 : vector<1x16xi1>, vector<1x16xf32>
      %465 = arith.mulf %459, %459 : vector<1x16xf32>
      %466 = arith.mulf %458, %458 : vector<1x16xf32>
      %cst_262 = arith.constant 4.000000e+00 : f32
      %467 = vector.broadcast %cst_262 : f32 to vector<1x16xf32>
      %468 = arith.mulf %467, %466 : vector<1x16xf32>
      %469 = arith.addf %465, %468 : vector<1x16xf32>
      %470 = math.sqrt %469 : vector<1x16xf32>
      %cst_263 = arith.constant 2.000000e+00 : f32
      %471 = vector.broadcast %cst_263 : f32 to vector<1x16xf32>
      %472 = arith.mulf %471, %458 : vector<1x16xf32>
      %473 = arith.mulf %472, %464 : vector<1x16xf32>
      %474 = math.absf %459 : vector<1x16xf32>
      %475 = arith.addf %474, %470 : vector<1x16xf32>
      %cst_264 = arith.constant 1.000000e-30 : f32
      %476 = vector.broadcast %cst_264 : f32 to vector<1x16xf32>
      %477 = arith.addf %475, %476 : vector<1x16xf32>
      %478 = arith.divf %473, %477 : vector<1x16xf32>
      %479 = arith.mulf %478, %478 : vector<1x16xf32>
      %cst_265 = arith.constant 1.000000e+00 : f32
      %480 = vector.broadcast %cst_265 : f32 to vector<1x16xf32>
      %481 = arith.addf %480, %479 : vector<1x16xf32>
      %482 = math.rsqrt %481 : vector<1x16xf32>
      %483 = arith.mulf %478, %482 : vector<1x16xf32>
      %484 = arith.mulf %478, %458 : vector<1x16xf32>
      %485 = arith.subf %456, %484 : vector<1x16xf32>
      %c2_266 = arith.constant 2 : index
      %c0_267 = arith.constant 0 : index
      %486 = vector.load %arg9[%c2_266, %c0_267] : memref<10x16xf32, #tpu.memory_space<vmem>>, vector<1x16xf32>
      tpu.vector_store %arg9[%c2_266, %c0_267], %485 {strides = array<i32>} : memref<10x16xf32, #tpu.memory_space<vmem>>, vector<1x16xf32>,
      %487 = arith.addf %457, %484 : vector<1x16xf32>
      %c5_268 = arith.constant 5 : index
      %c0_269 = arith.constant 0 : index
      %488 = vector.load %arg9[%c5_268, %c0_269] : memref<10x16xf32, #tpu.memory_space<vmem>>, vector<1x16xf32>
      tpu.vector_store %arg9[%c5_268, %c0_269], %487 {strides = array<i32>} : memref<10x16xf32, #tpu.memory_space<vmem>>, vector<1x16xf32>,
      %c4_270 = arith.constant 4 : index
      %c0_271 = arith.constant 0 : index
      %489 = vector.load %arg9[%c4_270, %c0_271] : memref<10x16xf32, #tpu.memory_space<vmem>>, vector<1x16xf32>
      tpu.vector_store %arg9[%c4_270, %c0_271], %93 {strides = array<i32>} : memref<10x16xf32, #tpu.memory_space<vmem>>, vector<1x16xf32>,
      %c1_272 = arith.constant 1 : index
      %c0_273 = arith.constant 0 : index
      %490 = vector.load %arg9[%c1_272, %c0_273] : memref<10x16xf32, #tpu.memory_space<vmem>>, vector<1x16xf32>
      %c3_274 = arith.constant 3 : index
      %c0_275 = arith.constant 0 : index
      %491 = vector.load %arg9[%c3_274, %c0_275] : memref<10x16xf32, #tpu.memory_space<vmem>>, vector<1x16xf32>
      %492 = arith.mulf %482, %490 : vector<1x16xf32>
      %493 = arith.mulf %483, %491 : vector<1x16xf32>
      %494 = arith.subf %492, %493 : vector<1x16xf32>
      %c1_276 = arith.constant 1 : index
      %c0_277 = arith.constant 0 : index
      %495 = vector.load %arg9[%c1_276, %c0_277] : memref<10x16xf32, #tpu.memory_space<vmem>>, vector<1x16xf32>
      tpu.vector_store %arg9[%c1_276, %c0_277], %494 {strides = array<i32>} : memref<10x16xf32, #tpu.memory_space<vmem>>, vector<1x16xf32>,
      %496 = arith.mulf %483, %490 : vector<1x16xf32>
      %497 = arith.mulf %482, %491 : vector<1x16xf32>
      %498 = arith.addf %496, %497 : vector<1x16xf32>
      %c3_278 = arith.constant 3 : index
      %c0_279 = arith.constant 0 : index
      %499 = vector.load %arg9[%c3_278, %c0_279] : memref<10x16xf32, #tpu.memory_space<vmem>>, vector<1x16xf32>
      tpu.vector_store %arg9[%c3_278, %c0_279], %498 {strides = array<i32>} : memref<10x16xf32, #tpu.memory_space<vmem>>, vector<1x16xf32>,
      %c7_280 = arith.constant 7 : index
      %c0_281 = arith.constant 0 : index
      %500 = vector.load %arg9[%c7_280, %c0_281] : memref<10x16xf32, #tpu.memory_space<vmem>>, vector<1x16xf32>
      %c8_282 = arith.constant 8 : index
      %c0_283 = arith.constant 0 : index
      %501 = vector.load %arg9[%c8_282, %c0_283] : memref<10x16xf32, #tpu.memory_space<vmem>>, vector<1x16xf32>
      %502 = arith.mulf %482, %500 : vector<1x16xf32>
      %503 = arith.mulf %483, %501 : vector<1x16xf32>
      %504 = arith.subf %502, %503 : vector<1x16xf32>
      %c7_284 = arith.constant 7 : index
      %c0_285 = arith.constant 0 : index
      %505 = vector.load %arg9[%c7_284, %c0_285] : memref<10x16xf32, #tpu.memory_space<vmem>>, vector<1x16xf32>
      tpu.vector_store %arg9[%c7_284, %c0_285], %504 {strides = array<i32>} : memref<10x16xf32, #tpu.memory_space<vmem>>, vector<1x16xf32>,
      %506 = arith.mulf %483, %500 : vector<1x16xf32>
      %507 = arith.mulf %482, %501 : vector<1x16xf32>
      %508 = arith.addf %506, %507 : vector<1x16xf32>
      %c8_286 = arith.constant 8 : index
      %c0_287 = arith.constant 0 : index
      %509 = vector.load %arg9[%c8_286, %c0_287] : memref<10x16xf32, #tpu.memory_space<vmem>>, vector<1x16xf32>
      tpu.vector_store %arg9[%c8_286, %c0_287], %508 {strides = array<i32>} : memref<10x16xf32, #tpu.memory_space<vmem>>, vector<1x16xf32>,
      %c1_288 = arith.constant 1 : index
      %c0_289 = arith.constant 0 : index
      %510 = vector.load %arg10[%c1_288, %c0_289] : memref<4x16xf32, #tpu.memory_space<vmem>>, vector<1x16xf32>
      %c2_290 = arith.constant 2 : index
      %c0_291 = arith.constant 0 : index
      %511 = vector.load %arg10[%c2_290, %c0_291] : memref<4x16xf32, #tpu.memory_space<vmem>>, vector<1x16xf32>
      %512 = arith.mulf %482, %510 : vector<1x16xf32>
      %513 = arith.mulf %483, %511 : vector<1x16xf32>
      %514 = arith.subf %512, %513 : vector<1x16xf32>
      %c1_292 = arith.constant 1 : index
      %c0_293 = arith.constant 0 : index
      %515 = vector.load %arg10[%c1_292, %c0_293] : memref<4x16xf32, #tpu.memory_space<vmem>>, vector<1x16xf32>
      tpu.vector_store %arg10[%c1_292, %c0_293], %514 {strides = array<i32>} : memref<4x16xf32, #tpu.memory_space<vmem>>, vector<1x16xf32>,
      %516 = arith.mulf %483, %510 : vector<1x16xf32>
      %517 = arith.mulf %482, %511 : vector<1x16xf32>
      %518 = arith.addf %516, %517 : vector<1x16xf32>
      %c2_294 = arith.constant 2 : index
      %c0_295 = arith.constant 0 : index
      %519 = vector.load %arg10[%c2_294, %c0_295] : memref<4x16xf32, #tpu.memory_space<vmem>>, vector<1x16xf32>
      tpu.vector_store %arg10[%c2_294, %c0_295], %518 {strides = array<i32>} : memref<4x16xf32, #tpu.memory_space<vmem>>, vector<1x16xf32>,
      %c2_296 = arith.constant 2 : index
      %c0_297 = arith.constant 0 : index
      %520 = vector.load %arg9[%c2_296, %c0_297] : memref<10x16xf32, #tpu.memory_space<vmem>>, vector<1x16xf32>
      %c9_298 = arith.constant 9 : index
      %c0_299 = arith.constant 0 : index
      %521 = vector.load %arg9[%c9_298, %c0_299] : memref<10x16xf32, #tpu.memory_space<vmem>>, vector<1x16xf32>
      %c7_300 = arith.constant 7 : index
      %c0_301 = arith.constant 0 : index
      %522 = vector.load %arg9[%c7_300, %c0_301] : memref<10x16xf32, #tpu.memory_space<vmem>>, vector<1x16xf32>
      %523 = arith.subf %521, %520 : vector<1x16xf32>
      %cst_302 = arith.constant 0.000000e+00 : f32
      %524 = vector.broadcast %cst_302 : f32 to vector<1x16xf32>
      %525 = arith.cmpf oge, %523, %524 : vector<1x16xf32>
      %cst_303 = arith.constant 1.000000e+00 : f32
      %cst_304 = arith.constant -1.000000e+00 : f32
      %526 = vector.broadcast %cst_303 : f32 to vector<1x16xf32>
      %527 = vector.broadcast %cst_304 : f32 to vector<1x16xf32>
      %528 = arith.select %525, %526, %527 : vector<1x16xi1>, vector<1x16xf32>
      %529 = arith.mulf %523, %523 : vector<1x16xf32>
      %530 = arith.mulf %522, %522 : vector<1x16xf32>
      %cst_305 = arith.constant 4.000000e+00 : f32
      %531 = vector.broadcast %cst_305 : f32 to vector<1x16xf32>
      %532 = arith.mulf %531, %530 : vector<1x16xf32>
      %533 = arith.addf %529, %532 : vector<1x16xf32>
      %534 = math.sqrt %533 : vector<1x16xf32>
      %cst_306 = arith.constant 2.000000e+00 : f32
      %535 = vector.broadcast %cst_306 : f32 to vector<1x16xf32>
      %536 = arith.mulf %535, %522 : vector<1x16xf32>
      %537 = arith.mulf %536, %528 : vector<1x16xf32>
      %538 = math.absf %523 : vector<1x16xf32>
      %539 = arith.addf %538, %534 : vector<1x16xf32>
      %cst_307 = arith.constant 1.000000e-30 : f32
      %540 = vector.broadcast %cst_307 : f32 to vector<1x16xf32>
      %541 = arith.addf %539, %540 : vector<1x16xf32>
      %542 = arith.divf %537, %541 : vector<1x16xf32>
      %543 = arith.mulf %542, %542 : vector<1x16xf32>
      %cst_308 = arith.constant 1.000000e+00 : f32
      %544 = vector.broadcast %cst_308 : f32 to vector<1x16xf32>
      %545 = arith.addf %544, %543 : vector<1x16xf32>
      %546 = math.rsqrt %545 : vector<1x16xf32>
      %547 = arith.mulf %542, %546 : vector<1x16xf32>
      %548 = arith.mulf %542, %522 : vector<1x16xf32>
      %549 = arith.subf %520, %548 : vector<1x16xf32>
      %c2_309 = arith.constant 2 : index
      %c0_310 = arith.constant 0 : index
      %550 = vector.load %arg9[%c2_309, %c0_310] : memref<10x16xf32, #tpu.memory_space<vmem>>, vector<1x16xf32>
      tpu.vector_store %arg9[%c2_309, %c0_310], %549 {strides = array<i32>} : memref<10x16xf32, #tpu.memory_space<vmem>>, vector<1x16xf32>,
      %551 = arith.addf %521, %548 : vector<1x16xf32>
      %c9_311 = arith.constant 9 : index
      %c0_312 = arith.constant 0 : index
      %552 = vector.load %arg9[%c9_311, %c0_312] : memref<10x16xf32, #tpu.memory_space<vmem>>, vector<1x16xf32>
      tpu.vector_store %arg9[%c9_311, %c0_312], %551 {strides = array<i32>} : memref<10x16xf32, #tpu.memory_space<vmem>>, vector<1x16xf32>,
      %c7_313 = arith.constant 7 : index
      %c0_314 = arith.constant 0 : index
      %553 = vector.load %arg9[%c7_313, %c0_314] : memref<10x16xf32, #tpu.memory_space<vmem>>, vector<1x16xf32>
      tpu.vector_store %arg9[%c7_313, %c0_314], %93 {strides = array<i32>} : memref<10x16xf32, #tpu.memory_space<vmem>>, vector<1x16xf32>,
      %c1_315 = arith.constant 1 : index
      %c0_316 = arith.constant 0 : index
      %554 = vector.load %arg9[%c1_315, %c0_316] : memref<10x16xf32, #tpu.memory_space<vmem>>, vector<1x16xf32>
      %c6_317 = arith.constant 6 : index
      %c0_318 = arith.constant 0 : index
      %555 = vector.load %arg9[%c6_317, %c0_318] : memref<10x16xf32, #tpu.memory_space<vmem>>, vector<1x16xf32>
      %556 = arith.mulf %546, %554 : vector<1x16xf32>
      %557 = arith.mulf %547, %555 : vector<1x16xf32>
      %558 = arith.subf %556, %557 : vector<1x16xf32>
      %c1_319 = arith.constant 1 : index
      %c0_320 = arith.constant 0 : index
      %559 = vector.load %arg9[%c1_319, %c0_320] : memref<10x16xf32, #tpu.memory_space<vmem>>, vector<1x16xf32>
      tpu.vector_store %arg9[%c1_319, %c0_320], %558 {strides = array<i32>} : memref<10x16xf32, #tpu.memory_space<vmem>>, vector<1x16xf32>,
      %560 = arith.mulf %547, %554 : vector<1x16xf32>
      %561 = arith.mulf %546, %555 : vector<1x16xf32>
      %562 = arith.addf %560, %561 : vector<1x16xf32>
      %c6_321 = arith.constant 6 : index
      %c0_322 = arith.constant 0 : index
      %563 = vector.load %arg9[%c6_321, %c0_322] : memref<10x16xf32, #tpu.memory_space<vmem>>, vector<1x16xf32>
      tpu.vector_store %arg9[%c6_321, %c0_322], %562 {strides = array<i32>} : memref<10x16xf32, #tpu.memory_space<vmem>>, vector<1x16xf32>,
      %c4_323 = arith.constant 4 : index
      %c0_324 = arith.constant 0 : index
      %564 = vector.load %arg9[%c4_323, %c0_324] : memref<10x16xf32, #tpu.memory_space<vmem>>, vector<1x16xf32>
      %c8_325 = arith.constant 8 : index
      %c0_326 = arith.constant 0 : index
      %565 = vector.load %arg9[%c8_325, %c0_326] : memref<10x16xf32, #tpu.memory_space<vmem>>, vector<1x16xf32>
      %566 = arith.mulf %546, %564 : vector<1x16xf32>
      %567 = arith.mulf %547, %565 : vector<1x16xf32>
      %568 = arith.subf %566, %567 : vector<1x16xf32>
      %c4_327 = arith.constant 4 : index
      %c0_328 = arith.constant 0 : index
      %569 = vector.load %arg9[%c4_327, %c0_328] : memref<10x16xf32, #tpu.memory_space<vmem>>, vector<1x16xf32>
      tpu.vector_store %arg9[%c4_327, %c0_328], %568 {strides = array<i32>} : memref<10x16xf32, #tpu.memory_space<vmem>>, vector<1x16xf32>,
      %570 = arith.mulf %547, %564 : vector<1x16xf32>
      %571 = arith.mulf %546, %565 : vector<1x16xf32>
      %572 = arith.addf %570, %571 : vector<1x16xf32>
      %c8_329 = arith.constant 8 : index
      %c0_330 = arith.constant 0 : index
      %573 = vector.load %arg9[%c8_329, %c0_330] : memref<10x16xf32, #tpu.memory_space<vmem>>, vector<1x16xf32>
      tpu.vector_store %arg9[%c8_329, %c0_330], %572 {strides = array<i32>} : memref<10x16xf32, #tpu.memory_space<vmem>>, vector<1x16xf32>,
      %c1_331 = arith.constant 1 : index
      %c0_332 = arith.constant 0 : index
      %574 = vector.load %arg10[%c1_331, %c0_332] : memref<4x16xf32, #tpu.memory_space<vmem>>, vector<1x16xf32>
      %c3_333 = arith.constant 3 : index
      %c0_334 = arith.constant 0 : index
      %575 = vector.load %arg10[%c3_333, %c0_334] : memref<4x16xf32, #tpu.memory_space<vmem>>, vector<1x16xf32>
      %576 = arith.mulf %546, %574 : vector<1x16xf32>
      %577 = arith.mulf %547, %575 : vector<1x16xf32>
      %578 = arith.subf %576, %577 : vector<1x16xf32>
      %c1_335 = arith.constant 1 : index
      %c0_336 = arith.constant 0 : index
      %579 = vector.load %arg10[%c1_335, %c0_336] : memref<4x16xf32, #tpu.memory_space<vmem>>, vector<1x16xf32>
      tpu.vector_store %arg10[%c1_335, %c0_336], %578 {strides = array<i32>} : memref<4x16xf32, #tpu.memory_space<vmem>>, vector<1x16xf32>,
      %580 = arith.mulf %547, %574 : vector<1x16xf32>
      %581 = arith.mulf %546, %575 : vector<1x16xf32>
      %582 = arith.addf %580, %581 : vector<1x16xf32>
      %c3_337 = arith.constant 3 : index
      %c0_338 = arith.constant 0 : index
      %583 = vector.load %arg10[%c3_337, %c0_338] : memref<4x16xf32, #tpu.memory_space<vmem>>, vector<1x16xf32>
      tpu.vector_store %arg10[%c3_337, %c0_338], %582 {strides = array<i32>} : memref<4x16xf32, #tpu.memory_space<vmem>>, vector<1x16xf32>,
      %c5_339 = arith.constant 5 : index
      %c0_340 = arith.constant 0 : index
      %584 = vector.load %arg9[%c5_339, %c0_340] : memref<10x16xf32, #tpu.memory_space<vmem>>, vector<1x16xf32>
      %c9_341 = arith.constant 9 : index
      %c0_342 = arith.constant 0 : index
      %585 = vector.load %arg9[%c9_341, %c0_342] : memref<10x16xf32, #tpu.memory_space<vmem>>, vector<1x16xf32>
      %c8_343 = arith.constant 8 : index
      %c0_344 = arith.constant 0 : index
      %586 = vector.load %arg9[%c8_343, %c0_344] : memref<10x16xf32, #tpu.memory_space<vmem>>, vector<1x16xf32>
      %587 = arith.subf %585, %584 : vector<1x16xf32>
      %cst_345 = arith.constant 0.000000e+00 : f32
      %588 = vector.broadcast %cst_345 : f32 to vector<1x16xf32>
      %589 = arith.cmpf oge, %587, %588 : vector<1x16xf32>
      %cst_346 = arith.constant 1.000000e+00 : f32
      %cst_347 = arith.constant -1.000000e+00 : f32
      %590 = vector.broadcast %cst_346 : f32 to vector<1x16xf32>
      %591 = vector.broadcast %cst_347 : f32 to vector<1x16xf32>
      %592 = arith.select %589, %590, %591 : vector<1x16xi1>, vector<1x16xf32>
      %593 = arith.mulf %587, %587 : vector<1x16xf32>
      %594 = arith.mulf %586, %586 : vector<1x16xf32>
      %cst_348 = arith.constant 4.000000e+00 : f32
      %595 = vector.broadcast %cst_348 : f32 to vector<1x16xf32>
      %596 = arith.mulf %595, %594 : vector<1x16xf32>
      %597 = arith.addf %593, %596 : vector<1x16xf32>
      %598 = math.sqrt %597 : vector<1x16xf32>
      %cst_349 = arith.constant 2.000000e+00 : f32
      %599 = vector.broadcast %cst_349 : f32 to vector<1x16xf32>
      %600 = arith.mulf %599, %586 : vector<1x16xf32>
      %601 = arith.mulf %600, %592 : vector<1x16xf32>
      %602 = math.absf %587 : vector<1x16xf32>
      %603 = arith.addf %602, %598 : vector<1x16xf32>
      %cst_350 = arith.constant 1.000000e-30 : f32
      %604 = vector.broadcast %cst_350 : f32 to vector<1x16xf32>
      %605 = arith.addf %603, %604 : vector<1x16xf32>
      %606 = arith.divf %601, %605 : vector<1x16xf32>
      %607 = arith.mulf %606, %606 : vector<1x16xf32>
      %cst_351 = arith.constant 1.000000e+00 : f32
      %608 = vector.broadcast %cst_351 : f32 to vector<1x16xf32>
      %609 = arith.addf %608, %607 : vector<1x16xf32>
      %610 = math.rsqrt %609 : vector<1x16xf32>
      %611 = arith.mulf %606, %610 : vector<1x16xf32>
      %612 = arith.mulf %606, %586 : vector<1x16xf32>
      %613 = arith.subf %584, %612 : vector<1x16xf32>
      %c5_352 = arith.constant 5 : index
      %c0_353 = arith.constant 0 : index
      %614 = vector.load %arg9[%c5_352, %c0_353] : memref<10x16xf32, #tpu.memory_space<vmem>>, vector<1x16xf32>
      tpu.vector_store %arg9[%c5_352, %c0_353], %613 {strides = array<i32>} : memref<10x16xf32, #tpu.memory_space<vmem>>, vector<1x16xf32>,
      %615 = arith.addf %585, %612 : vector<1x16xf32>
      %c9_354 = arith.constant 9 : index
      %c0_355 = arith.constant 0 : index
      %616 = vector.load %arg9[%c9_354, %c0_355] : memref<10x16xf32, #tpu.memory_space<vmem>>, vector<1x16xf32>
      tpu.vector_store %arg9[%c9_354, %c0_355], %615 {strides = array<i32>} : memref<10x16xf32, #tpu.memory_space<vmem>>, vector<1x16xf32>,
      %c8_356 = arith.constant 8 : index
      %c0_357 = arith.constant 0 : index
      %617 = vector.load %arg9[%c8_356, %c0_357] : memref<10x16xf32, #tpu.memory_space<vmem>>, vector<1x16xf32>
      tpu.vector_store %arg9[%c8_356, %c0_357], %93 {strides = array<i32>} : memref<10x16xf32, #tpu.memory_space<vmem>>, vector<1x16xf32>,
      %c3_358 = arith.constant 3 : index
      %c0_359 = arith.constant 0 : index
      %618 = vector.load %arg9[%c3_358, %c0_359] : memref<10x16xf32, #tpu.memory_space<vmem>>, vector<1x16xf32>
      %c6_360 = arith.constant 6 : index
      %c0_361 = arith.constant 0 : index
      %619 = vector.load %arg9[%c6_360, %c0_361] : memref<10x16xf32, #tpu.memory_space<vmem>>, vector<1x16xf32>
      %620 = arith.mulf %610, %618 : vector<1x16xf32>
      %621 = arith.mulf %611, %619 : vector<1x16xf32>
      %622 = arith.subf %620, %621 : vector<1x16xf32>
      %c3_362 = arith.constant 3 : index
      %c0_363 = arith.constant 0 : index
      %623 = vector.load %arg9[%c3_362, %c0_363] : memref<10x16xf32, #tpu.memory_space<vmem>>, vector<1x16xf32>
      tpu.vector_store %arg9[%c3_362, %c0_363], %622 {strides = array<i32>} : memref<10x16xf32, #tpu.memory_space<vmem>>, vector<1x16xf32>,
      %624 = arith.mulf %611, %618 : vector<1x16xf32>
      %625 = arith.mulf %610, %619 : vector<1x16xf32>
      %626 = arith.addf %624, %625 : vector<1x16xf32>
      %c6_364 = arith.constant 6 : index
      %c0_365 = arith.constant 0 : index
      %627 = vector.load %arg9[%c6_364, %c0_365] : memref<10x16xf32, #tpu.memory_space<vmem>>, vector<1x16xf32>
      tpu.vector_store %arg9[%c6_364, %c0_365], %626 {strides = array<i32>} : memref<10x16xf32, #tpu.memory_space<vmem>>, vector<1x16xf32>,
      %c4_366 = arith.constant 4 : index
      %c0_367 = arith.constant 0 : index
      %628 = vector.load %arg9[%c4_366, %c0_367] : memref<10x16xf32, #tpu.memory_space<vmem>>, vector<1x16xf32>
      %c7_368 = arith.constant 7 : index
      %c0_369 = arith.constant 0 : index
      %629 = vector.load %arg9[%c7_368, %c0_369] : memref<10x16xf32, #tpu.memory_space<vmem>>, vector<1x16xf32>
      %630 = arith.mulf %610, %628 : vector<1x16xf32>
      %631 = arith.mulf %611, %629 : vector<1x16xf32>
      %632 = arith.subf %630, %631 : vector<1x16xf32>
      %c4_370 = arith.constant 4 : index
      %c0_371 = arith.constant 0 : index
      %633 = vector.load %arg9[%c4_370, %c0_371] : memref<10x16xf32, #tpu.memory_space<vmem>>, vector<1x16xf32>
      tpu.vector_store %arg9[%c4_370, %c0_371], %632 {strides = array<i32>} : memref<10x16xf32, #tpu.memory_space<vmem>>, vector<1x16xf32>,
      %634 = arith.mulf %611, %628 : vector<1x16xf32>
      %635 = arith.mulf %610, %629 : vector<1x16xf32>
      %636 = arith.addf %634, %635 : vector<1x16xf32>
      %c7_372 = arith.constant 7 : index
      %c0_373 = arith.constant 0 : index
      %637 = vector.load %arg9[%c7_372, %c0_373] : memref<10x16xf32, #tpu.memory_space<vmem>>, vector<1x16xf32>
      tpu.vector_store %arg9[%c7_372, %c0_373], %636 {strides = array<i32>} : memref<10x16xf32, #tpu.memory_space<vmem>>, vector<1x16xf32>,
      %c2_374 = arith.constant 2 : index
      %c0_375 = arith.constant 0 : index
      %638 = vector.load %arg10[%c2_374, %c0_375] : memref<4x16xf32, #tpu.memory_space<vmem>>, vector<1x16xf32>
      %c3_376 = arith.constant 3 : index
      %c0_377 = arith.constant 0 : index
      %639 = vector.load %arg10[%c3_376, %c0_377] : memref<4x16xf32, #tpu.memory_space<vmem>>, vector<1x16xf32>
      %640 = arith.mulf %610, %638 : vector<1x16xf32>
      %641 = arith.mulf %611, %639 : vector<1x16xf32>
      %642 = arith.subf %640, %641 : vector<1x16xf32>
      %c2_378 = arith.constant 2 : index
      %c0_379 = arith.constant 0 : index
      %643 = vector.load %arg10[%c2_378, %c0_379] : memref<4x16xf32, #tpu.memory_space<vmem>>, vector<1x16xf32>
      tpu.vector_store %arg10[%c2_378, %c0_379], %642 {strides = array<i32>} : memref<4x16xf32, #tpu.memory_space<vmem>>, vector<1x16xf32>,
      %644 = arith.mulf %611, %638 : vector<1x16xf32>
      %645 = arith.mulf %610, %639 : vector<1x16xf32>
      %646 = arith.addf %644, %645 : vector<1x16xf32>
      %c3_380 = arith.constant 3 : index
      %c0_381 = arith.constant 0 : index
      %647 = vector.load %arg10[%c3_380, %c0_381] : memref<4x16xf32, #tpu.memory_space<vmem>>, vector<1x16xf32>
      tpu.vector_store %arg10[%c3_380, %c0_381], %646 {strides = array<i32>} : memref<4x16xf32, #tpu.memory_space<vmem>>, vector<1x16xf32>,
    }
    %c0_48 = arith.constant 0 : index
    %c0_49 = arith.constant 0 : index
    %95 = vector.load %arg9[%c0_48, %c0_49] : memref<10x16xf32, #tpu.memory_space<vmem>>, vector<1x16xf32>
    %c2_50 = arith.constant 2 : index
    %c0_51 = arith.constant 0 : index
    %96 = vector.load %arg9[%c2_50, %c0_51] : memref<10x16xf32, #tpu.memory_space<vmem>>, vector<1x16xf32>
    %c5_52 = arith.constant 5 : index
    %c0_53 = arith.constant 0 : index
    %97 = vector.load %arg9[%c5_52, %c0_53] : memref<10x16xf32, #tpu.memory_space<vmem>>, vector<1x16xf32>
    %c9_54 = arith.constant 9 : index
    %c0_55 = arith.constant 0 : index
    %98 = vector.load %arg9[%c9_54, %c0_55] : memref<10x16xf32, #tpu.memory_space<vmem>>, vector<1x16xf32>
    %c0_56 = arith.constant 0 : index
    %c0_57 = arith.constant 0 : index
    %99 = vector.load %arg10[%c0_56, %c0_57] : memref<4x16xf32, #tpu.memory_space<vmem>>, vector<1x16xf32>
    %c1_58 = arith.constant 1 : index
    %c0_59 = arith.constant 0 : index
    %100 = vector.load %arg10[%c1_58, %c0_59] : memref<4x16xf32, #tpu.memory_space<vmem>>, vector<1x16xf32>
    %c2_60 = arith.constant 2 : index
    %c0_61 = arith.constant 0 : index
    %101 = vector.load %arg10[%c2_60, %c0_61] : memref<4x16xf32, #tpu.memory_space<vmem>>, vector<1x16xf32>
    %c3_62 = arith.constant 3 : index
    %c0_63 = arith.constant 0 : index
    %102 = vector.load %arg10[%c3_62, %c0_63] : memref<4x16xf32, #tpu.memory_space<vmem>>, vector<1x16xf32>
    %103 = arith.cmpf ogt, %95, %96 : vector<1x16xf32>
    %104 = arith.select %103, %96, %95 : vector<1x16xi1>, vector<1x16xf32>
    %105 = arith.select %103, %95, %96 : vector<1x16xi1>, vector<1x16xf32>
    %106 = arith.select %103, %100, %99 : vector<1x16xi1>, vector<1x16xf32>
    %107 = arith.select %103, %99, %100 : vector<1x16xi1>, vector<1x16xf32>
    %108 = arith.cmpf ogt, %97, %98 : vector<1x16xf32>
    %109 = arith.select %108, %98, %97 : vector<1x16xi1>, vector<1x16xf32>
    %110 = arith.select %108, %97, %98 : vector<1x16xi1>, vector<1x16xf32>
    %111 = arith.select %108, %102, %101 : vector<1x16xi1>, vector<1x16xf32>
    %112 = arith.select %108, %101, %102 : vector<1x16xi1>, vector<1x16xf32>
    %113 = arith.cmpf ogt, %104, %109 : vector<1x16xf32>
    %114 = arith.select %113, %109, %104 : vector<1x16xi1>, vector<1x16xf32>
    %115 = arith.select %113, %104, %109 : vector<1x16xi1>, vector<1x16xf32>
    %116 = arith.select %113, %111, %106 : vector<1x16xi1>, vector<1x16xf32>
    %117 = arith.select %113, %106, %111 : vector<1x16xi1>, vector<1x16xf32>
    %118 = arith.cmpf ogt, %105, %110 : vector<1x16xf32>
    %119 = arith.select %118, %110, %105 : vector<1x16xi1>, vector<1x16xf32>
    %120 = arith.select %118, %105, %110 : vector<1x16xi1>, vector<1x16xf32>
    %121 = arith.select %118, %112, %107 : vector<1x16xi1>, vector<1x16xf32>
    %122 = arith.select %118, %107, %112 : vector<1x16xi1>, vector<1x16xf32>
    %123 = arith.cmpf ogt, %119, %115 : vector<1x16xf32>
    %124 = arith.select %123, %115, %119 : vector<1x16xi1>, vector<1x16xf32>
    %125 = arith.select %123, %119, %115 : vector<1x16xi1>, vector<1x16xf32>
    %126 = arith.select %123, %117, %121 : vector<1x16xi1>, vector<1x16xf32>
    %127 = arith.select %123, %121, %117 : vector<1x16xi1>, vector<1x16xf32>
    %128 = arith.addf %114, %124 : vector<1x16xf32>
    %129 = arith.addf %128, %125 : vector<1x16xf32>
    %130 = arith.addf %129, %120 : vector<1x16xf32>
    %131 = arith.divf %120, %130 : vector<1x16xf32>
    %c0_64 = arith.constant 0 : index
    %c0_65 = arith.constant 0 : index
    %132 = vector.load %arg5[%c0_64, %c0_65] : memref<1x16xf32, #tpu.memory_space<vmem>>, vector<1x16xf32>
    tpu.vector_store %arg5[%c0_64, %c0_65], %131 {strides = array<i32>} : memref<1x16xf32, #tpu.memory_space<vmem>>, vector<1x16xf32>,
    %c0_66 = arith.constant 0 : index
    %c0_67 = arith.constant 0 : index
    %133 = vector.load %arg6[%c0_66, %c0_67] : memref<4x16xf32, #tpu.memory_space<vmem>>, vector<1x16xf32>
    tpu.vector_store %arg6[%c0_66, %c0_67], %116 {strides = array<i32>} : memref<4x16xf32, #tpu.memory_space<vmem>>, vector<1x16xf32>,
    %c1_68 = arith.constant 1 : index
    %c0_69 = arith.constant 0 : index
    %134 = vector.load %arg6[%c1_68, %c0_69] : memref<4x16xf32, #tpu.memory_space<vmem>>, vector<1x16xf32>
    tpu.vector_store %arg6[%c1_68, %c0_69], %126 {strides = array<i32>} : memref<4x16xf32, #tpu.memory_space<vmem>>, vector<1x16xf32>,
    %c2_70 = arith.constant 2 : index
    %c0_71 = arith.constant 0 : index
    %135 = vector.load %arg6[%c2_70, %c0_71] : memref<4x16xf32, #tpu.memory_space<vmem>>, vector<1x16xf32>
    tpu.vector_store %arg6[%c2_70, %c0_71], %127 {strides = array<i32>} : memref<4x16xf32, #tpu.memory_space<vmem>>, vector<1x16xf32>,
    %c3_72 = arith.constant 3 : index
    %c0_73 = arith.constant 0 : index
    %136 = vector.load %arg6[%c3_72, %c0_73] : memref<4x16xf32, #tpu.memory_space<vmem>>, vector<1x16xf32>
    tpu.vector_store %arg6[%c3_72, %c0_73], %122 {strides = array<i32>} : memref<4x16xf32, #tpu.memory_space<vmem>>, vector<1x16xf32>,
    %137 = vector.broadcast %116 : vector<1x16xf32> to vector<32x16xf32>
    %138 = arith.mulf %3, %137 : vector<32x16xf32>
    %139 = vector.broadcast %126 : vector<1x16xf32> to vector<32x16xf32>
    %140 = arith.mulf %5, %139 : vector<32x16xf32>
    %141 = arith.addf %138, %140 : vector<32x16xf32>
    %142 = vector.broadcast %127 : vector<1x16xf32> to vector<32x16xf32>
    %143 = arith.mulf %7, %142 : vector<32x16xf32>
    %144 = arith.addf %141, %143 : vector<32x16xf32>
    %145 = vector.broadcast %122 : vector<1x16xf32> to vector<32x16xf32>
    %146 = arith.mulf %9, %145 : vector<32x16xf32>
    %147 = arith.addf %144, %146 : vector<32x16xf32>
    %148 = math.absf %147 : vector<32x16xf32>
    %cst_74 = arith.constant -0.99999988 : f32
    %cst_75 = arith.constant 0.99999988 : f32
    %149 = vector.broadcast %cst_74 : f32 to vector<32x16xf32>
    %150 = arith.maximumf %149, %148 : vector<32x16xf32>
    %151 = vector.broadcast %cst_75 : f32 to vector<32x16xf32>
    %152 = arith.minimumf %151, %150 : vector<32x16xf32>
    %cst_76 = arith.constant -0.0012624911 : f32
    %153 = vector.broadcast %cst_76 : f32 to vector<32x16xf32>
    %154 = arith.mulf %153, %152 : vector<32x16xf32>
    %cst_77 = arith.constant 6.670090e-03 : f32
    %155 = vector.broadcast %cst_77 : f32 to vector<32x16xf32>
    %156 = arith.addf %154, %155 : vector<32x16xf32>
    %157 = arith.mulf %156, %152 : vector<32x16xf32>
    %cst_78 = arith.constant -0.0170881264 : f32
    %158 = vector.broadcast %cst_78 : f32 to vector<32x16xf32>
    %159 = arith.addf %157, %158 : vector<32x16xf32>
    %160 = arith.mulf %159, %152 : vector<32x16xf32>
    %cst_79 = arith.constant 0.0308918804 : f32
    %161 = vector.broadcast %cst_79 : f32 to vector<32x16xf32>
    %162 = arith.addf %160, %161 : vector<32x16xf32>
    %163 = arith.mulf %162, %152 : vector<32x16xf32>
    %cst_80 = arith.constant -0.0501743034 : f32
    %164 = vector.broadcast %cst_80 : f32 to vector<32x16xf32>
    %165 = arith.addf %163, %164 : vector<32x16xf32>
    %166 = arith.mulf %165, %152 : vector<32x16xf32>
    %cst_81 = arith.constant 0.0889789909 : f32
    %167 = vector.broadcast %cst_81 : f32 to vector<32x16xf32>
    %168 = arith.addf %166, %167 : vector<32x16xf32>
    %169 = arith.mulf %168, %152 : vector<32x16xf32>
    %cst_82 = arith.constant -0.214598805 : f32
    %170 = vector.broadcast %cst_82 : f32 to vector<32x16xf32>
    %171 = arith.addf %169, %170 : vector<32x16xf32>
    %172 = arith.mulf %171, %152 : vector<32x16xf32>
    %cst_83 = arith.constant 1.57079625 : f32
    %173 = vector.broadcast %cst_83 : f32 to vector<32x16xf32>
    %174 = arith.addf %172, %173 : vector<32x16xf32>
    %cst_84 = arith.constant 1.000000e+00 : f32
    %175 = vector.broadcast %cst_84 : f32 to vector<32x16xf32>
    %176 = arith.subf %175, %152 : vector<32x16xf32>
    %cst_85 = arith.constant 0.000000e+00 : f32
    %177 = vector.broadcast %cst_85 : f32 to vector<32x16xf32>
    %178 = arith.maximumf %176, %177 : vector<32x16xf32>
    %179 = math.sqrt %178 : vector<32x16xf32>
    %180 = arith.mulf %179, %174 : vector<32x16xf32>
    %cst_86 = arith.constant 0.636619746 : f32
    %181 = vector.broadcast %cst_86 : f32 to vector<32x16xf32>
    %182 = arith.mulf %181, %180 : vector<32x16xf32>
    %cst_87 = arith.constant 0.000000e+00 : f32
    %183 = vector.broadcast %cst_87 : f32 to vector<32x16xf32>
    %184 = arith.subf %183, %182 : vector<32x16xf32>
    %cst_88 = arith.constant dense<0xFF800000> : vector<16xf32>
    %185 = vector.multi_reduction <maximumf>, %184, %cst_88 [0] : vector<32x16xf32> to vector<16xf32>
    %186 = vector.shape_cast %185 : vector<16xf32> to vector<1x16xf32>
    %187 = vector.broadcast %186 : vector<1x16xf32> to vector<32x16xf32>
    %188 = arith.subf %184, %187 : vector<32x16xf32>
    %189 = math.exp %188 : vector<32x16xf32>
    %cst_89 = arith.constant dense<0.000000e+00> : vector<16xf32>
    %190 = vector.multi_reduction <add>, %189, %cst_89 [0] : vector<32x16xf32> to vector<16xf32>
    %191 = vector.shape_cast %190 : vector<16xf32> to vector<1x16xf32>
    %192 = vector.broadcast %191 : vector<1x16xf32> to vector<32x16xf32>
    %193 = arith.divf %189, %192 : vector<32x16xf32>
    %c0_90 = arith.constant 0 : index
    %c0_91 = arith.constant 0 : index
    %c0_92 = arith.constant 0 : index
    %194 = vector.load %arg3[%c0_90, %c0_91, %c0_92] : memref<32x16x16xf32, #tpu.memory_space<vmem>>, vector<32x16x16xf32>
    %195 = vector.shape_cast %193 : vector<32x16xf32> to vector<32x1x16xf32>
    %196 = vector.broadcast %195 : vector<32x1x16xf32> to vector<32x16x16xf32>
    %197 = arith.mulf %196, %194 : vector<32x16x16xf32>
    %cst_93 = arith.constant dense<0.000000e+00> : vector<16x16xf32>
    %198 = vector.multi_reduction <add>, %197, %cst_93 [0] : vector<32x16x16xf32> to vector<16x16xf32>
    %cst_94 = arith.constant 3.125000e-02 : f32
    %199 = vector.broadcast %cst_94 : f32 to vector<16x16xf32>
    %200 = arith.mulf %198, %199 : vector<16x16xf32>
    %c0_95 = arith.constant 0 : index
    %c0_96 = arith.constant 0 : index
    %201 = vector.load %arg7[%c0_95, %c0_96] : memref<16x16xf32, #tpu.memory_space<vmem>>, vector<16x16xf32>
    tpu.vector_store %arg7[%c0_95, %c0_96], %200 {strides = array<i32>} : memref<16x16xf32, #tpu.memory_space<vmem>>, vector<16x16xf32>,
    %cst_97 = arith.constant 14.2857141 : f32
    %202 = vector.broadcast %cst_97 : f32 to vector<32x16xf32>
    %203 = arith.mulf %193, %202 : vector<32x16xf32>
    %cst_98 = arith.constant 0.000000e+00 : f32
    %cst_99 = arith.constant 1.000000e+00 : f32
    %204 = vector.broadcast %cst_98 : f32 to vector<32x16xf32>
    %205 = arith.maximumf %204, %203 : vector<32x16xf32>
    %206 = vector.broadcast %cst_99 : f32 to vector<32x16xf32>
    %207 = arith.minimumf %206, %205 : vector<32x16xf32>
    %cst_100 = arith.constant 1.000000e+00 : f32
    %208 = vector.broadcast %cst_100 : f32 to vector<32x16xf32>
    %209 = arith.subf %208, %207 : vector<32x16xf32>
    %210 = math.log %209 : vector<32x16xf32>
    %cst_101 = arith.constant -1.000000e+02 : f32
    %211 = vector.broadcast %cst_101 : f32 to vector<32x16xf32>
    %212 = arith.maximumf %210, %211 : vector<32x16xf32>
    %cst_102 = arith.constant 0.000000e+00 : f32
    %213 = vector.broadcast %cst_102 : f32 to vector<32x16xf32>
    %214 = arith.subf %213, %212 : vector<32x16xf32>
    %cst_103 = arith.constant dense<0.000000e+00> : vector<32xf32>
    %215 = vector.multi_reduction <add>, %214, %cst_103 [1] : vector<32x16xf32> to vector<32xf32>
    %216 = vector.shape_cast %215 : vector<32xf32> to vector<32x1xf32>
    %cst_104 = arith.constant dense<0.000000e+00> : vector<1xf32>
    %217 = vector.multi_reduction <add>, %216, %cst_104 [0] : vector<32x1xf32> to vector<1xf32>
    %218 = vector.shape_cast %217 : vector<1xf32> to vector<1x1xf32>
    %219 = vector.extract_strided_slice %193 {offsets = [0, 0], sizes = [32, 8], strides = [1, 1]} : vector<32x16xf32> to vector<32x8xf32>
    %cst_105 = arith.constant dense<0xFF800000> : vector<32xf32>
    %220 = vector.multi_reduction <maximumf>, %219, %cst_105 [1] : vector<32x8xf32> to vector<32xf32>
    %221 = vector.shape_cast %220 : vector<32xf32> to vector<32x1xf32>
    %cst_106 = arith.constant 14.2857141 : f32
    %222 = vector.broadcast %cst_106 : f32 to vector<32x1xf32>
    %223 = arith.mulf %221, %222 : vector<32x1xf32>
    %cst_107 = arith.constant 0.000000e+00 : f32
    %cst_108 = arith.constant 1.000000e+00 : f32
    %224 = vector.broadcast %cst_107 : f32 to vector<32x1xf32>
    %225 = arith.maximumf %224, %223 : vector<32x1xf32>
    %226 = vector.broadcast %cst_108 : f32 to vector<32x1xf32>
    %227 = arith.minimumf %226, %225 : vector<32x1xf32>
    %228 = math.log %227 : vector<32x1xf32>
    %cst_109 = arith.constant -1.000000e+02 : f32
    %229 = vector.broadcast %cst_109 : f32 to vector<32x1xf32>
    %230 = arith.maximumf %228, %229 : vector<32x1xf32>
    %cst_110 = arith.constant 1.000000e+00 : f32
    %231 = vector.broadcast %cst_110 : f32 to vector<32x1xf32>
    %232 = arith.subf %231, %227 : vector<32x1xf32>
    %233 = math.log %232 : vector<32x1xf32>
    %cst_111 = arith.constant -1.000000e+02 : f32
    %234 = vector.broadcast %cst_111 : f32 to vector<32x1xf32>
    %235 = arith.maximumf %233, %234 : vector<32x1xf32>
    %236 = arith.subf %235, %230 : vector<32x1xf32>
    %cst_112 = arith.constant dense<0.000000e+00> : vector<1xf32>
    %237 = vector.multi_reduction <add>, %236, %cst_112 [0] : vector<32x1xf32> to vector<1xf32>
    %238 = vector.shape_cast %237 : vector<1xf32> to vector<1x1xf32>
    %239 = arith.addf %218, %238 : vector<1x1xf32>
    %240 = vector.extract_strided_slice %193 {offsets = [0, 8], sizes = [32, 8], strides = [1, 1]} : vector<32x16xf32> to vector<32x8xf32>
    %cst_113 = arith.constant dense<0xFF800000> : vector<32xf32>
    %241 = vector.multi_reduction <maximumf>, %240, %cst_113 [1] : vector<32x8xf32> to vector<32xf32>
    %242 = vector.shape_cast %241 : vector<32xf32> to vector<32x1xf32>
    %cst_114 = arith.constant 14.2857141 : f32
    %243 = vector.broadcast %cst_114 : f32 to vector<32x1xf32>
    %244 = arith.mulf %242, %243 : vector<32x1xf32>
    %cst_115 = arith.constant 0.000000e+00 : f32
    %cst_116 = arith.constant 1.000000e+00 : f32
    %245 = vector.broadcast %cst_115 : f32 to vector<32x1xf32>
    %246 = arith.maximumf %245, %244 : vector<32x1xf32>
    %247 = vector.broadcast %cst_116 : f32 to vector<32x1xf32>
    %248 = arith.minimumf %247, %246 : vector<32x1xf32>
    %249 = math.log %248 : vector<32x1xf32>
    %cst_117 = arith.constant -1.000000e+02 : f32
    %250 = vector.broadcast %cst_117 : f32 to vector<32x1xf32>
    %251 = arith.maximumf %249, %250 : vector<32x1xf32>
    %cst_118 = arith.constant 1.000000e+00 : f32
    %252 = vector.broadcast %cst_118 : f32 to vector<32x1xf32>
    %253 = arith.subf %252, %248 : vector<32x1xf32>
    %254 = math.log %253 : vector<32x1xf32>
    %cst_119 = arith.constant -1.000000e+02 : f32
    %255 = vector.broadcast %cst_119 : f32 to vector<32x1xf32>
    %256 = arith.maximumf %254, %255 : vector<32x1xf32>
    %257 = arith.subf %256, %251 : vector<32x1xf32>
    %cst_120 = arith.constant dense<0.000000e+00> : vector<1xf32>
    %258 = vector.multi_reduction <add>, %257, %cst_120 [0] : vector<32x1xf32> to vector<1xf32>
    %259 = vector.shape_cast %258 : vector<1xf32> to vector<1x1xf32>
    %260 = arith.addf %239, %259 : vector<1x1xf32>
    %cst_121 = arith.constant 0.001953125 : f32
    %261 = vector.broadcast %cst_121 : f32 to vector<1x1xf32>
    %262 = arith.mulf %260, %261 : vector<1x1xf32>
    %c0_122 = arith.constant 0 : index
    %c0_123 = arith.constant 0 : index
    %263 = vector.load %arg8[%c0_122, %c0_123] : memref<1x1xf32, #tpu.memory_space<vmem>>, vector<1x1xf32>
    tpu.vector_store %arg8[%c0_122, %c0_123], %262 {strides = array<i32>} : memref<1x1xf32, #tpu.memory_space<vmem>>, vector<1x1xf32>,
    return
  }
  func.func @transform_0(%arg0: i32) -> (i32, i32) {
    %c0_i32 = arith.constant 0 : i32
    %c0_i32_0 = arith.constant 0 : i32
    %c0_i32_1 = arith.constant 0 : i32
    return %c0_i32, %c0_i32_0 : i32, i32
  }
  func.func @transform_1(%arg0: i32) -> (i32, i32, i32) {
    %c0_i32 = arith.constant 0 : i32
    %c0_i32_0 = arith.constant 0 : i32
    %c0_i32_1 = arith.constant 0 : i32
    %c0_i32_2 = arith.constant 0 : i32
    return %c0_i32, %c0_i32_0, %c0_i32_1 : i32, i32, i32
  }
  func.func @transform_2(%arg0: i32) -> (i32, i32, i32) {
    %c0_i32 = arith.constant 0 : i32
    %c0_i32_0 = arith.constant 0 : i32
    %c0_i32_1 = arith.constant 0 : i32
    %c0_i32_2 = arith.constant 0 : i32
    return %c0_i32, %c0_i32_0, %c0_i32_1 : i32, i32, i32
  }
  func.func @transform_3(%arg0: i32) -> (i32, i32) {
    %c0_i32 = arith.constant 0 : i32
    %c0_i32_0 = arith.constant 0 : i32
    %c0_i32_1 = arith.constant 0 : i32
    return %c0_i32, %c0_i32_0 : i32, i32
  }
  func.func @transform_4(%arg0: i32) -> (i32, i32) {
    %c0_i32 = arith.constant 0 : i32
    %c0_i32_0 = arith.constant 0 : i32
    %c0_i32_1 = arith.constant 0 : i32
    return %c0_i32, %c0_i32_0 : i32, i32
  }
  func.func @transform_5(%arg0: i32) -> (i32, i32) {
    %c0_i32 = arith.constant 0 : i32
    %c0_i32_0 = arith.constant 0 : i32
    %c0_i32_1 = arith.constant 0 : i32
    return %c0_i32, %c0_i32_0 : i32, i32
  }
  func.func @transform_6(%arg0: i32) -> (i32, i32) {
    %c0_i32 = arith.constant 0 : i32
    %c0_i32_0 = arith.constant 0 : i32
    %c0_i32_1 = arith.constant 0 : i32
    return %c0_i32, %c0_i32_0 : i32, i32
  }
  func.func @transform_7(%arg0: i32) -> (i32, i32) {
    %c0_i32 = arith.constant 0 : i32
    %c0_i32_0 = arith.constant 0 : i32
    %c0_i32_1 = arith.constant 0 : i32
    return %c0_i32, %c0_i32_0 : i32, i32
  }
}

</mosaic_0001>

<bundles_post_ra>
// kernel: contrastive_pose_attentive_router.1
= control target key start
LH: loop header
LB: loop body
LE: loop exit
PB: predicated region body
PF: predicated region fallthrough
CT: control target
= control target key end

     0   :  { %13 = vsyncpa [#allocation5], 0  ;;  %vm67_vm0 = vcmask 130048   ;;  %vm121_vm1 = vcmask 122880   ;;  %vm300_vm2 = vcmask 124928   ;;  %v1938_v17 = vmov 0.0   ;;  %s2996_s0 = inlined_call_operand.vmem [shape: f32[32,16], index: 0, kind: input, shape index: {}]   ;;  %s2997_s1 = inlined_call_operand.vmem [shape: f32[4,32,16], index: 1, kind: input, shape index: {}]   ;;  %s2998_s2 = inlined_call_operand.vmem [shape: f32[32,16,16], index: 2, kind: input, shape index: {}]   ;;  %s2999_s3 = inlined_call_operand.vmem [shape: f32[16,16], index: 3, kind: input, shape index: {}]   ;;  %s3000_s4 = inlined_call_operand.vmem [shape: f32[1,16], index: 4, kind: output, shape index: {0}]   ;;  %s3001_s5 = inlined_call_operand.vmem [shape: f32[4,16], index: 5, kind: output, shape index: {1}]   ;;  %s3002_s6 = inlined_call_operand.vmem [shape: f32[16,16], index: 6, kind: output, shape index: {2}]   ;;  %s3003_s7 = inlined_call_operand.hbm [shape: f32[1,1], index: 7, kind: output, shape index: {3}]  }
   0x1   :  { %v22_v0 = vld [vmem:[%s2996_s0] sm:$0xff]  ;;  %v23_v1 = vld [vmem:[%s2996_s0 + $0x8] sm:$0xff]  ;;  %v24_v2 = vld [vmem:[%s2996_s0 + $0x10] sm:$0xff]  ;;  %301 = vst.msk [vmem:[#allocation3] sm:$0x7] %vm300_vm2, %v1938_v17  ;;  %v1939_v18 = vmov 1.0  }
   0x2   :  { %v63_v3 = vand.u32 2147483647, %v22_v0  ;;  %v25_v4 = vld [vmem:[%s2996_s0 + $0x18] sm:$0xff]  ;;  %v64_v5 = vand.u32 2147483647, %v23_v1  ;;  %v2004_v24 = vld [vmem:[%s2997_s1] sm:$0xff] }
   0x3   :  { %v65_v7 = vand.u32 2147483647, %v24_v2  ;;  %v66_v8 = vand.u32 2147483647, %v25_v4  ;;  %302 = vst.msk [vmem:[#allocation3 + $0x3] sm:$0x1] %vm121_vm1, %v1939_v18 }
   0x4   :  { %v68_v6 = vsel %vm67_vm0, %v63_v3, 0.0  ;;  %v69_v9 = vsel %vm67_vm0, %v64_v5, 0.0  ;;  %v2009_v25 = vld [vmem:[%s2997_s1 + $0x8] sm:$0xff]  ;;  %v2014_v26 = vld [vmem:[%s2997_s1 + $0x10] sm:$0xff]  ;;  %v2019_v27 = vld [vmem:[%s2997_s1 + $0x18] sm:$0xff]  ;;  %vm141_vm3 = vcmask 126980  }
   0x5   :  { %v70_v10 = vadd.f32 %v69_v9, %v68_v6  ;;  %v71_v11 = vsel %vm67_vm0, %v65_v7, 0.0  ;;  %v73_v12 = vsel %vm67_vm0, %v66_v8, 0.0  ;;  %v2024_v28 = vld [vmem:[%s2997_s1 + $0x20] sm:$0xff]  ;;  %v2027_v29 = vadd.f32 1e-07, %v2004_v24  ;;  %v2035_v31 = vld [vmem:[%s2997_s1 + $0x28] sm:$0xff] }
   0x6   :  { %v2030_v30 = vadd.f32 1e-07, %v2009_v25  ;;  %v2038_v32 = vadd.f32 1e-07, %v2014_v26  ;;  %v2043_v33 = vld [vmem:[%s2997_s1 + $0x30] sm:$0xff]  ;;  %v2048_v34 = vld [vmem:[%s2997_s1 + $0x38] sm:$0xff] }
   0x7   :  { %v72_v13 = vadd.f32 %v71_v11, %v70_v10  ;;  %v2053_v35 = vld [vmem:[%s2997_s1 + $0x40] sm:$0xff]  ;;  %v2056_v36 = vadd.f32 1e-07, %v2019_v27  ;;  %v2059_v37 = vadd.f32 1e-07, %v2024_v28  ;;  %v2064_v38 = vld [vmem:[%s2997_s1 + $0x48] sm:$0xff] }
   0x8   :  { %v2067_v39 = vadd.f32 1e-07, %v2035_v31  ;;  %v2072_v40 = vld [vmem:[%s2997_s1 + $0x50] sm:$0xff]  ;;  %v2077_v41 = vld [vmem:[%s2997_s1 + $0x58] sm:$0xff]  ;;  %v2082_v42 = vld [vmem:[%s2997_s1 + $0x60] sm:$0xff]  ;;  %vm161_vm4 = vcmask 128005  }
   0x9   :  { %v74_v14 = vadd.f32 %v73_v12, %v72_v13  ;;  %v2085_v43 = vadd.f32 1e-07, %v2043_v33  ;;  %v2088_v44 = vadd.f32 1e-07, %v2048_v34  ;;  %v2091_v45 = vadd.f32 1e-07, %v2053_v35 }
   0xa   :  { %v2094_v46 = vadd.f32 1e-07, %v2064_v38  ;;  %v2099_v47 = vld [vmem:[%s2997_s1 + $0x68] sm:$0xff]  ;;  %v2104_v48 = vld [vmem:[%s2997_s1 + $0x70] sm:$0xff]  ;;  %v2109_v49 = vld [vmem:[%s2997_s1 + $0x78] sm:$0xff]  ;;  %vm200_vm5 = vcmask 123905  }
   0xb   :  { %v75_v15 = vrot.slane %v74_v14, 4  ;;  %3007 = vst [vmem:[#allocation7_spill] sm:$0xff] %v2099_v47  ;;  %3008 = vst [vmem:[#allocation8_spill] sm:$0xff] %v2104_v48  ;;  %v2112_v51 = vadd.f32 1e-07, %v2072_v40  ;;  %vm220_vm6 = vcmask 124930  }
   0xc   :  { %3009 = vst [vmem:[#allocation9_spill] sm:$0xff] %v2109_v49  ;;  %v2115_v52 = vadd.f32 1e-07, %v2077_v41  ;;  %v2118_v53 = vadd.f32 1e-07, %v2082_v42  ;;  %vm278_vm7 = vcmask 129030  }
   0xd   :  { %v76_v16 = vadd.f32 %v75_v15, %v74_v14  ;;  %v2129_v58 = vadd.f32 1e-07, %v2099_v47  ;;  %v2132_v59 = vadd.f32 1e-07, %v2104_v48  ;;  %v2135_v60 = vadd.f32 1e-07, %v2109_v49 }
   0xe   :  { %vm298_vm8 = vcmask 130055  }
   0xf   :  { %v77_v19 = vrot.slane %v76_v16, 2 }
  0x11   :  { %v78_v20 = vadd.f32 %v77_v19, %v76_v16 }
  0x13   :  { %v79_v21 = vrot.slane %v78_v20, 1 }
  0x15   :  { %v80_v22 = vadd.f32 %v79_v21, %v78_v20 }
  0x17   :  { %v81_v23 = vmax.f32 %v80_v22, 1e-12 }
  0x19   :  { %1808 = vrcp.f32 %v81_v23 }
  0x23   :  { %v1809_v50 = vpop.eup %1808 }
  0x24   :  { %v2120_v54 = vmul.f32 %v1809_v50, %v22_v0  ;;  %v2122_v55 = vmul.f32 %v1809_v50, %v23_v1  ;;  %v2124_v56 = vmul.f32 %v1809_v50, %v24_v2  ;;  %v2126_v57 = vmul.f32 %v1809_v50, %v25_v4 }
  0x26   :  { %v87_v61 = vmul.f32 %v2120_v54, %v2027_v29  ;;  %v88_v62 = vmul.f32 %v2122_v55, %v2030_v30  ;;  %v89_v63 = vmul.f32 %v2124_v56, %v2038_v32  ;;  %v90_v0 = vmul.f32 %v2126_v57, %v2056_v36 }
  0x27   :  { %v91_v1 = vmul.f32 %v2120_v54, %v2059_v37  ;;  %v92_v2 = vmul.f32 %v2122_v55, %v2067_v39  ;;  %v93_v3 = vmul.f32 %v2124_v56, %v2085_v43  ;;  %v94_v4 = vmul.f32 %v2126_v57, %v2088_v44 }
  0x28   :  { %v103_v5 = vmul.f32 %v87_v61, %v2027_v29  ;;  %v104_v6 = vmul.f32 %v88_v62, %v2030_v30  ;;  %v105_v7 = vmul.f32 %v89_v63, %v2038_v32  ;;  %v106_v8 = vmul.f32 %v90_v0, %v2056_v36 }
  0x29   :  { %v123_v9 = vmul.f32 %v91_v1, %v2027_v29  ;;  %v124_v10 = vmul.f32 %v92_v2, %v2030_v30  ;;  %v125_v11 = vmul.f32 %v93_v3, %v2038_v32  ;;  %v126_v12 = vmul.f32 %v94_v4, %v2056_v36 }
  0x2a   :  { %v107_v13 = vsel %vm67_vm0, %v103_v5, 0.0  ;;  %v108_v14 = vsel %vm67_vm0, %v104_v6, 0.0  ;;  %v110_v15 = vsel %vm67_vm0, %v105_v7, 0.0  ;;  %v112_v16 = vsel %vm67_vm0, %v106_v8, 0.0 }
  0x2b   :  { %v109_v17 = vadd.f32 %v108_v14, %v107_v13  ;;  %v127_v18 = vsel %vm67_vm0, %v123_v9, 0.0  ;;  %v128_v19 = vsel %vm67_vm0, %v124_v10, 0.0  ;;  %v130_v20 = vsel %vm67_vm0, %v125_v11, 0.0 }
  0x2c   :  { %v129_v21 = vadd.f32 %v128_v19, %v127_v18  ;;  %v132_v22 = vsel %vm67_vm0, %v126_v12, 0.0  ;;  %v143_v23 = vmul.f32 %v91_v1, %v2059_v37  ;;  %v144_v50 = vmul.f32 %v92_v2, %v2067_v39 }
  0x2d   :  { %v111_v61 = vadd.f32 %v110_v15, %v109_v17  ;;  %v145_v62 = vmul.f32 %v93_v3, %v2085_v43  ;;  %v146_v63 = vmul.f32 %v94_v4, %v2088_v44  ;;  %v95_v0 = vmul.f32 %v2120_v54, %v2091_v45 }
  0x2e   :  { %v131_v5 = vadd.f32 %v130_v20, %v129_v21  ;;  %v147_v6 = vsel %vm67_vm0, %v143_v23, 0.0  ;;  %v148_v7 = vsel %vm67_vm0, %v144_v50, 0.0  ;;  %v96_v8 = vmul.f32 %v2122_v55, %v2094_v46 }
  0x2f   :  { %v113_v9 = vadd.f32 %v112_v16, %v111_v61  ;;  %v149_v1 = vadd.f32 %v148_v7, %v147_v6  ;;  %v150_v2 = vsel %vm67_vm0, %v145_v62, 0.0  ;;  %v152_v10 = vsel %vm67_vm0, %v146_v63, 0.0 }
  0x30   :  { %v133_v3 = vadd.f32 %v132_v22, %v131_v5  ;;  %v97_v4 = vmul.f32 %v2124_v56, %v2112_v51  ;;  %v98_v11 = vmul.f32 %v2126_v57, %v2115_v52  ;;  %v163_v12 = vmul.f32 %v95_v0, %v2027_v29 }
  0x31   :  { %v114_v13 = vrot.slane %v113_v9, 4  ;;  %v151_v14 = vadd.f32 %v150_v2, %v149_v1  ;;  %v164_v15 = vmul.f32 %v96_v8, %v2030_v30  ;;  %v182_v16 = vmul.f32 %v95_v0, %v2059_v37 }
  0x32   :  { %v134_v17 = vrot.slane %v133_v3, 4  ;;  %v165_v18 = vmul.f32 %v97_v4, %v2038_v32  ;;  %v166_v19 = vmul.f32 %v98_v11, %v2056_v36  ;;  %v167_v20 = vsel %vm67_vm0, %v163_v12, 0.0 }
  0x33   :  { %v115_v21 = vadd.f32 %v114_v13, %v113_v9  ;;  %v153_v22 = vadd.f32 %v152_v10, %v151_v14  ;;  %v168_v23 = vsel %vm67_vm0, %v164_v15, 0.0  ;;  %v183_v50 = vmul.f32 %v96_v8, %v2067_v39 }
  0x34   :  { %v135_v61 = vadd.f32 %v134_v17, %v133_v3  ;;  %v169_v62 = vadd.f32 %v168_v23, %v167_v20  ;;  %v170_v63 = vsel %vm67_vm0, %v165_v18, 0.0  ;;  %v172_v5 = vsel %vm67_vm0, %v166_v19, 0.0 }
  0x35   :  { %v116_v6 = vrot.slane %v115_v21, 2  ;;  %v154_v7 = vrot.slane %v153_v22, 4  ;;  %v184_v1 = vmul.f32 %v97_v4, %v2085_v43  ;;  %v185_v2 = vmul.f32 %v98_v11, %v2088_v44 }
  0x36   :  { %v136_v12 = vrot.slane %v135_v61, 2  ;;  %v171_v9 = vadd.f32 %v170_v63, %v169_v62  ;;  %v186_v10 = vsel %vm67_vm0, %v182_v16, 0.0  ;;  %v187_v13 = vsel %vm67_vm0, %v183_v50, 0.0  ;;  %v26_v16 = vld [vmem:[%s2999_s3] sm:$0xff] }
  0x37   :  { %v117_v14 = vadd.f32 %v116_v6, %v115_v21  ;;  %v155_v3 = vadd.f32 %v154_v7, %v153_v22  ;;  %v188_v15 = vadd.f32 %v187_v13, %v186_v10  ;;  %v189_v17 = vsel %vm67_vm0, %v184_v1, 0.0 }
  0x38   :  { %v137_v18 = vadd.f32 %v136_v12, %v135_v61  ;;  %v173_v19 = vadd.f32 %v172_v5, %v171_v9  ;;  %v191_v20 = vsel %vm67_vm0, %v185_v2, 0.0  ;;  %v202_v23 = vmul.f32 %v95_v0, %v2091_v45 }
  0x39   :  { %v118_v49 = vrot.slane %v117_v14, 1  ;;  %v156_v48 = vrot.slane %v155_v3, 2  ;;  %v190_v47 = vadd.f32 %v189_v17, %v188_v15  ;;  %v203_v62 = vmul.f32 %v96_v8, %v2094_v46 }
  0x3a   :  { %v138_v21 = vrot.slane %v137_v18, 1  ;;  %v174_v22 = vrot.slane %v173_v19, 4  ;;  %v204_v50 = vmul.f32 %v97_v4, %v2112_v51  ;;  %v205_v61 = vmul.f32 %v98_v11, %v2115_v52 }
  0x3b   :  { %v119_v63 = vadd.f32 %v118_v49, %v117_v14  ;;  %v157_v5 = vadd.f32 %v156_v48, %v155_v3  ;;  %v192_v6 = vadd.f32 %v191_v20, %v190_v47  ;;  %v206_v0 = vsel %vm67_vm0, %v202_v23, 0.0 }
  0x3c   :  { %v139_v7 = vadd.f32 %v138_v21, %v137_v18  ;;  %v175_v1 = vadd.f32 %v174_v22, %v173_v19  ;;  %v207_v2 = vsel %vm67_vm0, %v203_v62, 0.0  ;;  %v209_v8 = vsel %vm67_vm0, %v204_v50, 0.0 }
  0x3d   :  { %v120_v12 = vadd.f32 %v119_v63, %v26_v16  ;;  %v158_v9 = vrot.slane %v157_v5, 1  ;;  %v193_v10 = vrot.slane %v192_v6, 4  ;;  %v208_v13 = vadd.f32 %v207_v2, %v206_v0 }
  0x3e   :  { %v140_v15 = vadd.f32 %v139_v7, %v26_v16  ;;  %v176_v17 = vrot.slane %v175_v1, 2  ;;  %v211_v4 = vsel %vm67_vm0, %v205_v61, 0.0  ;;  %v99_v48 = vmul.f32 %v2120_v54, %v2118_v53 }
  0x3f   :  { %122 = vst.msk [vmem:[#allocation2] sm:$0x1] %vm121_vm1, %v120_v12  ;;  %v159_v47 = vadd.f32 %v158_v9, %v157_v5  ;;  %v194_v49 = vadd.f32 %v193_v10, %v192_v6  ;;  %v210_v11 = vadd.f32 %v209_v8, %v208_v13  ;;  %v100_v14 = vmul.f32 %v2122_v55, %v2129_v58 }
  0x40   :  { %142 = vst.msk [vmem:[#allocation2 - $0x3] sm:$0x10] %vm141_vm3, %v140_v15  ;;  %v177_v3 = vadd.f32 %v176_v17, %v175_v1  ;;  %v101_v18 = vmul.f32 %v2124_v56, %v2132_v59  ;;  %v102_v19 = vmul.f32 %v2126_v57, %v2135_v60  ;;  %v222_v54 = vmul.f32 %v99_v48, %v2027_v29  ;;  %v2231_v56 = vld [vmem:[%s2999_s3 + $0x8] sm:$0xff]  ;;  %s2272_s3 = smov 0  }
  0x41   :  { %v160_v20 = vadd.f32 %v159_v47, %v26_v16  ;;  %v195_v23 = vrot.slane %v194_v49, 2  ;;  %v212_v62 = vadd.f32 %v211_v4, %v210_v11  ;;  %v223_v21 = vmul.f32 %v100_v14, %v2030_v30 }
  0x42   :  { %v178_v22 = vrot.slane %v177_v3, 1  ;;  %v224_v55 = vmul.f32 %v101_v18, %v2038_v32  ;;  %v225_v50 = vmul.f32 %v102_v19, %v2056_v36  ;;  %v226_v61 = vsel %vm67_vm0, %v222_v54, 0.0 }
  0x43   :  { %162 = vst.msk [vmem:[#allocation2 - $0x3] sm:$0x20] %vm161_vm4, %v160_v20  ;;  %v196_v29 = vadd.f32 %v195_v23, %v194_v49  ;;  %v213_v57 = vrot.slane %v212_v62, 4  ;;  %v227_v16 = vsel %vm67_vm0, %v223_v21, 0.0  ;;  %v241_v30 = vmul.f32 %v99_v48, %v2059_v37 }
  0x44   :  { %v179_v63 = vadd.f32 %v178_v22, %v177_v3  ;;  %v228_v5 = vadd.f32 %v227_v16, %v226_v61  ;;  %v229_v32 = vsel %vm67_vm0, %v224_v55, 0.0  ;;  %v231_v36 = vsel %vm67_vm0, %v225_v50, 0.0 }
  0x45   :  { %v197_v6 = vrot.slane %v196_v29, 1  ;;  %v214_v0 = vadd.f32 %v213_v57, %v212_v62  ;;  %v242_v7 = vmul.f32 %v100_v14, %v2067_v39  ;;  %v243_v1 = vmul.f32 %v101_v18, %v2085_v43 }
  0x46   :  { %v180_v2 = vadd.f32 %v179_v63, %v2231_v56  ;;  %v230_v8 = vadd.f32 %v229_v32, %v228_v5  ;;  %v244_v12 = vmul.f32 %v102_v19, %v2088_v44  ;;  %v245_v37 = vsel %vm67_vm0, %v241_v30, 0.0 }
  0x47   :  { %v198_v9 = vadd.f32 %v197_v6, %v196_v29  ;;  %v215_v10 = vrot.slane %v214_v0, 2  ;;  %v246_v13 = vsel %vm67_vm0, %v242_v7, 0.0  ;;  %v248_v15 = vsel %vm67_vm0, %v243_v1, 0.0 }
  0x48   :  { %181 = vst.msk [vmem:[#allocation2 + $0x3] sm:$0x1] %vm121_vm1, %v180_v2  ;;  %v232_v17 = vadd.f32 %v231_v36, %v230_v8  ;;  %v247_v39 = vadd.f32 %v246_v13, %v245_v37  ;;  %v250_v43 = vsel %vm67_vm0, %v244_v12, 0.0  ;;  %v260_v4 = vmul.f32 %v99_v48, %v2091_v45 }
  0x49   :  { %v199_v47 = vadd.f32 %v198_v9, %v2231_v56  ;;  %v216_v49 = vadd.f32 %v215_v10, %v214_v0  ;;  %v261_v44 = vmul.f32 %v100_v14, %v2094_v46  ;;  %v262_v11 = vmul.f32 %v101_v18, %v2112_v51 }
  0x4a   :  { %v233_v3 = vrot.slane %v232_v17, 4  ;;  %v249_v54 = vadd.f32 %v248_v15, %v247_v39  ;;  %v263_v20 = vmul.f32 %v102_v19, %v2115_v52  ;;  %v264_v23 = vsel %vm67_vm0, %v260_v4, 0.0 }
  0x4b   :  { %201 = vst.msk [vmem:[#allocation2 + $0x3] sm:$0x2] %vm200_vm5, %v199_v47  ;;  %v217_v62 = vrot.slane %v216_v49, 1  ;;  %v265_v21 = vsel %vm67_vm0, %v261_v44, 0.0  ;;  %v267_v45 = vsel %vm67_vm0, %v262_v11, 0.0  ;;  %v280_v22 = vmul.f32 %v99_v48, %v2118_v53 }
  0x4c   :  { %v234_v55 = vadd.f32 %v233_v3, %v232_v17  ;;  %v251_v50 = vadd.f32 %v250_v43, %v249_v54  ;;  %v266_v46 = vadd.f32 %v265_v21, %v264_v23  ;;  %v269_v51 = vsel %vm67_vm0, %v263_v20, 0.0 }
  0x4d   :  { %v218_v61 = vadd.f32 %v217_v62, %v216_v49  ;;  %v281_v29 = vmul.f32 %v100_v14, %v2129_v58  ;;  %v282_v52 = vmul.f32 %v101_v18, %v2132_v59  ;;  %v283_v57 = vmul.f32 %v102_v19, %v2135_v60 }
  0x4e   :  { %v235_v16 = vrot.slane %v234_v55, 2  ;;  %v252_v30 = vrot.slane %v251_v50, 4  ;;  %v268_v63 = vadd.f32 %v267_v45, %v266_v46  ;;  %v284_v5 = vsel %vm67_vm0, %v280_v22, 0.0 }
  0x4f   :  { %v219_v32 = vadd.f32 %v218_v61, %v2231_v56  ;;  %v285_v53 = vsel %vm67_vm0, %v281_v29, 0.0  ;;  %v287_v48 = vsel %vm67_vm0, %v282_v52, 0.0  ;;  %v289_v58 = vsel %vm67_vm0, %v283_v57, 0.0 }
  0x50   :  { %v236_v36 = vadd.f32 %v235_v16, %v234_v55  ;;  %v253_v6 = vadd.f32 %v252_v30, %v251_v50  ;;  %v270_v0 = vadd.f32 %v269_v51, %v268_v63  ;;  %v286_v7 = vadd.f32 %v285_v53, %v284_v5 }
  0x51   :  { %221 = vst.msk [vmem:[#allocation2 + $0x3] sm:$0x4] %vm220_vm6, %v219_v32 }
  0x52   :  { %v237_v59 = vrot.slane %v236_v36, 1  ;;  %v254_v60 = vrot.slane %v253_v6, 2  ;;  %v271_v14 = vrot.slane %v270_v0, 4  ;;  %v288_v18 = vadd.f32 %v287_v48, %v286_v7 }
  0x54   :  { %v238_v19 = vadd.f32 %v237_v59, %v236_v36  ;;  %v255_v1 = vadd.f32 %v254_v60, %v253_v6  ;;  %v272_v2 = vadd.f32 %v271_v14, %v270_v0  ;;  %v290_v8 = vadd.f32 %v289_v58, %v288_v18 }
  0x56   :  { %v239_v12 = vadd.f32 %v238_v19, %v2231_v56  ;;  %v256_v37 = vrot.slane %v255_v1, 1  ;;  %v273_v9 = vrot.slane %v272_v2, 2  ;;  %v291_v10 = vrot.slane %v290_v8, 4 }
  0x58   :  { %240 = vst.msk [vmem:[#allocation2 + $0x2] sm:$0x10] %vm141_vm3, %v239_v12  ;;  %v257_v13 = vadd.f32 %v256_v37, %v255_v1  ;;  %v274_v15 = vadd.f32 %v273_v9, %v272_v2  ;;  %v292_v17 = vadd.f32 %v291_v10, %v290_v8 }
  0x5a   :  { %v258_v39 = vadd.f32 %v257_v13, %v2231_v56  ;;  %v275_v43 = vrot.slane %v274_v15, 1  ;;  %v293_v4 = vrot.slane %v292_v17, 2 }
  0x5c   :  { %259 = vst.msk [vmem:[#allocation2 + $0x2] sm:$0x20] %vm161_vm4, %v258_v39  ;;  %v276_v47 = vadd.f32 %v275_v43, %v274_v15  ;;  %v294_v49 = vadd.f32 %v293_v4, %v292_v17 }
  0x5e   :  { %v277_v44 = vadd.f32 %v276_v47, %v2231_v56  ;;  %v295_v11 = vrot.slane %v294_v49, 1 }
  0x60   :  { %279 = vst.msk [vmem:[#allocation2 + $0x2] sm:$0x40] %vm278_vm7, %v277_v44  ;;  %v296_v3 = vadd.f32 %v295_v11, %v294_v49 }
  0x62   :  { %v297_v54 = vadd.f32 %v296_v3, %v2231_v56 }
  0x64   :  { %299 = vst.msk [vmem:[#allocation2 + $0x2] sm:$0x80] %vm298_vm8, %v297_v54 }
  0x65 LB: > { %v309_v20 = vld [vmem:[#allocation2] sm:$0x1]  ;;  %v310_v23 = vld [vmem:[#allocation2 + $0x2] sm:$0x1]  ;;  %v311_v62 = vld [vmem:[#allocation2 + $0x1] sm:$0x1]  ;;  %s1936_s3 = sphi %s2272_s3, %s308_s3  }
  0x66   : > { %v312_v21 = vsub.f32 %v310_v23, %v309_v20  ;;  %v316_v45 = vmul.f32 %v311_v62, %v311_v62  ;;  %v1940_v50 = vmov 0.0   ;;  %v326_v63 = vmul.f32 2.0, %v311_v62  ;;  %v343_v60 = vld [vmem:[#allocation2 + $0x3] sm:$0x1]  ;;  %v353_v14 = vld [vmem:[#allocation2 + $0x6] sm:$0x1] }
  0x67   : > { %342 = vst.msk [vmem:[#allocation2 + $0x1] sm:$0x1] %vm121_vm1, %v1940_v50  ;;  %v1941_v5 = vmov -1.0   ;;  %v363_v18 = vld [vmem:[#allocation3] sm:$0x1]  ;;  %s308_s3 = sadd.s32 1, %s1936_s3  }
  0x68   : > { %v315_v22 = vmul.f32 %v312_v21, %v312_v21  ;;  %v317_v55 = vmul.f32 4.0, %v316_v45  ;;  %v328_v29 = vand.u32 2147483647, %v312_v21  ;;  %vm313_vm11 = vcmp.ge.f32.partialorder %v312_v21, 0.0  ;;  %v344_v1 = vld [vmem:[#allocation2 + $0x4] sm:$0x1] }
  0x69   : > { %v314_v32 = vsel %vm313_vm11, 1.0, %v1941_v5  ;;  %v354_v2 = vld [vmem:[#allocation2 + $0x7] sm:$0x1]  ;;  %v364_v8 = vld [vmem:[#allocation3 + $0x1] sm:$0x1]  ;;  %p305_p0 = scmp.ge.s32.totalorder %s308_s3, 5  }
  0x6a   : > { %v318_v56 = vadd.f32 %v317_v55, %v315_v22  ;;  %v327_v53 = vmul.f32 %v326_v63, %v314_v32  ;;  %v374_v45 = vld [vmem:[#allocation2 + $0x5] sm:$0x1] }
  0x6c   : > { %1810 = vrsqrt.f32 %v318_v56  ;;  %vm321_vm9 = vcmp.eq.f32.partialorder %v318_v56, inf  ;;  %v324_v51 = vand.u32 2147483648, %v318_v56  ;;  %vm323_vm10 = vcmp.eq.f32.partialorder %v318_v56, 0.0 }
  0x76   : > { %v1811_v46 = vpop.eup %1810 }
  0x77   : > { %v320_v61 = vmul.f32 %v1811_v46, %v318_v56 }
  0x79   : > { %v322_v52 = vsel %vm321_vm9, %v318_v56, %v320_v61 }
  0x7a   : > { %v325_v57 = vsel %vm323_vm10, %v324_v51, %v322_v52 }
  0x7b   : > { %v329_v16 = vadd.f32 %v328_v29, %v325_v57 }
  0x7d   : > { %v330_v30 = vadd.f32 1e-30, %v329_v16 }
  0x7f   : > { %1812 = vrcp.f32 %v330_v30 }
  0x89   : > { %v1813_v48 = vpop.eup %1812 }
  0x8a   : > { %v332_v36 = vmul.f32 %v1813_v48, %v327_v53 }
  0x8c   : > { %v333_v6 = vmul.f32 %v332_v36, %v332_v36  ;;  %v337_v0 = vmul.f32 %v332_v36, %v311_v62 }
  0x8e   : > { %v334_v7 = vadd.f32 1.0, %v333_v6  ;;  %v338_v58 = vsub.f32 %v309_v20, %v337_v0  ;;  %v340_v59 = vadd.f32 %v337_v0, %v310_v23 }
  0x90   : > { %1814 = vrsqrt.f32 %v334_v7  ;;  %339 = vst.msk [vmem:[#allocation2] sm:$0x1] %vm121_vm1, %v338_v58  ;;  %341 = vst.msk [vmem:[#allocation2 + $0x2] sm:$0x1] %vm121_vm1, %v340_v59 }
  0x97   : > { %v373_v21 = vld [vmem:[#allocation2] sm:$0x1] }
  0x98   : > { %v376_v22 = vsub.f32 %v374_v45, %v373_v21 }
  0x9a   : > { %v1815_v19 = vpop.eup %1814  ;;  %v379_v56 = vmul.f32 %v376_v22, %v376_v22  ;;  %v392_v30 = vand.u32 2147483647, %v376_v22  ;;  %vm377_vm14 = vcmp.ge.f32.partialorder %v376_v22, 0.0 }
  0x9b   : > { %v336_v12 = vmul.f32 %v1815_v19, %v332_v36  ;;  %v345_v37 = vmul.f32 %v1815_v19, %v343_v60  ;;  %v350_v9 = vmul.f32 %v1815_v19, %v344_v1  ;;  %v355_v10 = vmul.f32 %v1815_v19, %v353_v14 }
  0x9c   : > { %v365_v13 = vmul.f32 %v1815_v19, %v363_v18  ;;  %v360_v15 = vmul.f32 %v1815_v19, %v354_v2  ;;  %v370_v17 = vmul.f32 %v1815_v19, %v364_v8  ;;  %v378_v36 = vsel %vm377_vm14, 1.0, %v1941_v5  ;;  %v418_v19 = vld [vmem:[#allocation2 + $0x8] sm:$0x1] }
  0x9d   : > { %v346_v39 = vmul.f32 %v344_v1, %v336_v12  ;;  %v349_v43 = vmul.f32 %v343_v60, %v336_v12  ;;  %v356_v4 = vmul.f32 %v354_v2, %v336_v12  ;;  %v366_v47 = vmul.f32 %v364_v8, %v336_v12  ;;  %v407_v1 = vld [vmem:[#allocation2 + $0x1] sm:$0x1] }
  0x9e   : > { %v359_v49 = vmul.f32 %v353_v14, %v336_v12  ;;  %v369_v44 = vmul.f32 %v363_v18, %v336_v12 }
  0x9f   : > { %v347_v11 = vsub.f32 %v345_v37, %v346_v39  ;;  %v351_v3 = vadd.f32 %v350_v9, %v349_v43  ;;  %v357_v54 = vsub.f32 %v355_v10, %v356_v4  ;;  %v367_v20 = vsub.f32 %v365_v13, %v366_v47  ;;  %v428_v10 = vld [vmem:[#allocation3 + $0x2] sm:$0x1] }
  0xa0   : > { %v361_v23 = vadd.f32 %v360_v15, %v359_v49  ;;  %v371_v62 = vadd.f32 %v370_v17, %v369_v44 }
  0xa1   : > { %348 = vst.msk [vmem:[#allocation2 + $0x3] sm:$0x1] %vm121_vm1, %v347_v11  ;;  %352 = vst.msk [vmem:[#allocation2 + $0x4] sm:$0x1] %vm121_vm1, %v351_v3 }
  0xa2   : > { %358 = vst.msk [vmem:[#allocation2 + $0x6] sm:$0x1] %vm121_vm1, %v357_v54  ;;  %368 = vst.msk [vmem:[#allocation3] sm:$0x1] %vm121_vm1, %v367_v20 }
  0xa3   : > { %362 = vst.msk [vmem:[#allocation2 + $0x7] sm:$0x1] %vm121_vm1, %v361_v23  ;;  %372 = vst.msk [vmem:[#allocation3 + $0x1] sm:$0x1] %vm121_vm1, %v371_v62 }
  0xa8   : > { %v375_v55 = vld [vmem:[#allocation2 + $0x3] sm:$0x1]  ;;  %v408_v2 = vld [vmem:[#allocation2 + $0x4] sm:$0x1] }
  0xa9   : > { %v380_v46 = vmul.f32 %v375_v55, %v375_v55  ;;  %406 = vst.msk [vmem:[#allocation2 + $0x3] sm:$0x1] %vm121_vm1, %v1940_v50  ;;  %v390_v48 = vmul.f32 2.0, %v375_v55  ;;  %v417_v8 = vld [vmem:[#allocation2 + $0x6] sm:$0x1] }
  0xaa   : > { %v427_v9 = vld [vmem:[#allocation3] sm:$0x1] }
  0xab   : > { %v381_v51 = vmul.f32 4.0, %v380_v46  ;;  %v391_v6 = vmul.f32 %v390_v48, %v378_v36  ;;  %v2301_v46 = vld [vmem:[#allocation2 + $0x2] sm:$0x1] }
  0xad   : > { %v382_v61 = vadd.f32 %v381_v51, %v379_v56 }
  0xaf   : > { %1816 = vrsqrt.f32 %v382_v61  ;;  %vm385_vm12 = vcmp.eq.f32.partialorder %v382_v61, inf  ;;  %v388_v57 = vand.u32 2147483648, %v382_v61  ;;  %vm387_vm13 = vcmp.eq.f32.partialorder %v382_v61, 0.0 }
  0xb9   : > { %v1817_v29 = vpop.eup %1816 }
  0xba   : > { %v384_v52 = vmul.f32 %v1817_v29, %v382_v61 }
  0xbc   : > { %v386_v16 = vsel %vm385_vm12, %v382_v61, %v384_v52 }
  0xbd   : > { %v389_v63 = vsel %vm387_vm13, %v388_v57, %v386_v16 }
  0xbe   : > { %v393_v32 = vadd.f32 %v392_v30, %v389_v63 }
  0xc0   : > { %v394_v53 = vadd.f32 1e-30, %v393_v32 }
  0xc2   : > { %1818 = vrcp.f32 %v394_v53 }
  0xcc   : > { %v1819_v0 = vpop.eup %1818 }
  0xcd   : > { %v396_v7 = vmul.f32 %v1819_v0, %v391_v6 }
  0xcf   : > { %v397_v58 = vmul.f32 %v396_v7, %v396_v7  ;;  %v401_v59 = vmul.f32 %v396_v7, %v375_v55  ;;  %v438_v55 = vld [vmem:[#allocation2 + $0x9] sm:$0x1] }
  0xd1   : > { %v398_v60 = vadd.f32 1.0, %v397_v58  ;;  %v402_v14 = vsub.f32 %v373_v21, %v401_v59  ;;  %v404_v18 = vadd.f32 %v401_v59, %v374_v45 }
  0xd3   : > { %1820 = vrsqrt.f32 %v398_v60  ;;  %403 = vst.msk [vmem:[#allocation2] sm:$0x1] %vm121_vm1, %v402_v14  ;;  %405 = vst.msk [vmem:[#allocation2 + $0x5] sm:$0x1] %vm121_vm1, %v404_v18 }
  0xda   : > { %v2299_v56 = vld [vmem:[#allocation2] sm:$0x1]  ;;  %v502_v51 = vld [vmem:[#allocation2 + $0x5] sm:$0x1] }
  0xdb   : > { %v440_v61 = vsub.f32 %v438_v55, %v2299_v56  ;;  %v504_v29 = vsub.f32 %v502_v51, %v2301_v46 }
  0xdd   : > { %v1821_v12 = vpop.eup %1820  ;;  %v443_v63 = vmul.f32 %v440_v61, %v440_v61  ;;  %v507_v53 = vmul.f32 %v504_v29, %v504_v29  ;;  %v456_v60 = vand.u32 2147483647, %v440_v61  ;;  %vm441_vm5 = vcmp.ge.f32.partialorder %v440_v61, 0.0 }
  0xde   : > { %v400_v37 = vmul.f32 %v1821_v12, %v396_v7  ;;  %v409_v13 = vmul.f32 %v1821_v12, %v407_v1  ;;  %v414_v15 = vmul.f32 %v1821_v12, %v408_v2  ;;  %v419_v17 = vmul.f32 %v1821_v12, %v417_v8 }
  0xdf   : > { %v424_v39 = vmul.f32 %v1821_v12, %v418_v19  ;;  %v429_v44 = vmul.f32 %v1821_v12, %v427_v9  ;;  %v434_v54 = vmul.f32 %v1821_v12, %v428_v10  ;;  %vm505_vm6 = vcmp.ge.f32.partialorder %v504_v29, 0.0 }
  0xe0   : > { %v410_v43 = vmul.f32 %v408_v2, %v400_v37  ;;  %v413_v4 = vmul.f32 %v407_v1, %v400_v37  ;;  %v420_v47 = vmul.f32 %v418_v19, %v400_v37  ;;  %v423_v49 = vmul.f32 %v417_v8, %v400_v37 }
  0xe1   : > { %v430_v11 = vmul.f32 %v428_v10, %v400_v37  ;;  %v433_v3 = vmul.f32 %v427_v9, %v400_v37  ;;  %v520_v8 = vand.u32 2147483647, %v504_v29 }
  0xe2   : > { %v411_v20 = vsub.f32 %v409_v13, %v410_v43  ;;  %v415_v23 = vadd.f32 %v414_v15, %v413_v4  ;;  %v421_v62 = vsub.f32 %v419_v17, %v420_v47  ;;  %v425_v21 = vadd.f32 %v424_v39, %v423_v49 }
  0xe3   : > { %v431_v45 = vsub.f32 %v429_v44, %v430_v11  ;;  %v435_v22 = vadd.f32 %v434_v54, %v433_v3  ;;  %v442_v39 = vsel %vm441_vm5, 1.0, %v1941_v5  ;;  %v506_v4 = vsel %vm505_vm6, 1.0, %v1941_v5 }
  0xe4   : > { %412 = vst.msk [vmem:[#allocation2 + $0x1] sm:$0x1] %vm121_vm1, %v411_v20  ;;  %416 = vst.msk [vmem:[#allocation2 + $0x4] sm:$0x1] %vm121_vm1, %v415_v23 }
  0xe5   : > { %422 = vst.msk [vmem:[#allocation2 + $0x6] sm:$0x1] %vm121_vm1, %v421_v62  ;;  %426 = vst.msk [vmem:[#allocation2 + $0x8] sm:$0x1] %vm121_vm1, %v425_v21 }
  0xe6   : > { %432 = vst.msk [vmem:[#allocation3] sm:$0x1] %vm121_vm1, %v431_v45  ;;  %436 = vst.msk [vmem:[#allocation3 + $0x2] sm:$0x1] %vm121_vm1, %v435_v22 }
  0xeb   : > { %v503_v57 = vld [vmem:[#allocation2 + $0x4] sm:$0x1] }
  0xec   : > { %v439_v52 = vld [vmem:[#allocation2 + $0x6] sm:$0x1]  ;;  %v508_v30 = vmul.f32 %v503_v57, %v503_v57  ;;  %534 = vst.msk [vmem:[#allocation2 + $0x4] sm:$0x1] %vm121_vm1, %v1940_v50  ;;  %v518_v17 = vmul.f32 2.0, %v503_v57 }
  0xed   : > { %v444_v16 = vmul.f32 %v439_v52, %v439_v52  ;;  %470 = vst.msk [vmem:[#allocation2 + $0x6] sm:$0x1] %vm121_vm1, %v1940_v50  ;;  %v454_v15 = vmul.f32 2.0, %v439_v52 }
  0xee   : > { %v509_v48 = vmul.f32 4.0, %v508_v30  ;;  %v519_v49 = vmul.f32 %v518_v17, %v506_v4  ;;  %v492_v30 = vld [vmem:[#allocation3 + $0x3] sm:$0x1] }
  0xef   : > { %v445_v32 = vmul.f32 4.0, %v444_v16  ;;  %v455_v43 = vmul.f32 %v454_v15, %v442_v39 }
  0xf0   : > { %v510_v6 = vadd.f32 %v509_v48, %v507_v53 }
  0xf1   : > { %v446_v36 = vadd.f32 %v445_v32, %v443_v63 }
  0xf2   : > { %vm513_vm3 = vcmp.eq.f32.partialorder %v510_v6, inf  ;;  %v516_v19 = vand.u32 2147483648, %v510_v6  ;;  %vm515_vm4 = vcmp.eq.f32.partialorder %v510_v6, 0.0 }
  0xf3   : > { %1822 = vrsqrt.f32 %v446_v36  ;;  %vm449_vm15 = vcmp.eq.f32.partialorder %v446_v36, inf  ;;  %v452_v59 = vand.u32 2147483648, %v446_v36  ;;  %vm451_vm2 = vcmp.eq.f32.partialorder %v446_v36, 0.0 }
  0xf4   : > { %1824 = vrsqrt.f32 %v510_v6 }
  0xfd   : > { %v1823_v0 = vpop.eup %1822 }
  0xfe   : > { %v1825_v7 = vpop.eup %1824  ;;  %v448_v58 = vmul.f32 %v1823_v0, %v446_v36 }
  0xff   : > { %v512_v14 = vmul.f32 %v1825_v7, %v510_v6 }
 0x100   : > { %v450_v18 = vsel %vm449_vm15, %v446_v36, %v448_v58  ;;  %v491_v36 = vld [vmem:[#allocation3] sm:$0x1] }
 0x101   : > { %v453_v1 = vsel %vm451_vm2, %v452_v59, %v450_v18  ;;  %v514_v2 = vsel %vm513_vm3, %v510_v6, %v512_v14  ;;  %v555_v6 = vld [vmem:[#allocation3 + $0x1] sm:$0x1] }
 0x102   : > { %v457_v12 = vadd.f32 %v456_v60, %v453_v1  ;;  %v517_v37 = vsel %vm515_vm4, %v516_v19, %v514_v2  ;;  %v556_v1 = vld [vmem:[#allocation3 + $0x2] sm:$0x1] }
 0x103   : > { %v521_v9 = vadd.f32 %v520_v8, %v517_v37 }
 0x104   : > { %v458_v10 = vadd.f32 1e-30, %v457_v12 }
 0x105   : > { %v522_v13 = vadd.f32 1e-30, %v521_v9 }
 0x106   : > { %1826 = vrcp.f32 %v458_v10 }
 0x107   : > { %1828 = vrcp.f32 %v522_v13 }
 0x110   : > { %v1827_v47 = vpop.eup %1826 }
 0x111   : > { %v1829_v44 = vpop.eup %1828  ;;  %v460_v11 = vmul.f32 %v1827_v47, %v455_v43 }
 0x112   : > { %v524_v3 = vmul.f32 %v1829_v44, %v519_v49 }
 0x113   : > { %v461_v54 = vmul.f32 %v460_v11, %v460_v11  ;;  %v465_v20 = vmul.f32 %v460_v11, %v439_v52  ;;  %v472_v52 = vld [vmem:[#allocation2 + $0x7] sm:$0x1] }
 0x114   : > { %v525_v23 = vmul.f32 %v524_v3, %v524_v3  ;;  %v529_v62 = vmul.f32 %v524_v3, %v503_v57  ;;  %v481_v57 = vld [vmem:[#allocation2 + $0x3] sm:$0x1] }
 0x115   : > { %v462_v21 = vadd.f32 1.0, %v461_v54  ;;  %v466_v45 = vsub.f32 %v2299_v56, %v465_v20  ;;  %v468_v22 = vadd.f32 %v465_v20, %v438_v55  ;;  %v471_v56 = vld [vmem:[#allocation2 + $0x1] sm:$0x1] }
 0x116   : > { %v526_v61 = vadd.f32 1.0, %v525_v23  ;;  %v530_v29 = vsub.f32 %v2301_v46, %v529_v62  ;;  %v532_v16 = vadd.f32 %v529_v62, %v502_v51  ;;  %v482_v51 = vld [vmem:[#allocation2 + $0x8] sm:$0x1] }
 0x117   : > { %1830 = vrsqrt.f32 %v462_v21  ;;  %467 = vst.msk [vmem:[#allocation2] sm:$0x1] %vm121_vm1, %v466_v45  ;;  %469 = vst.msk [vmem:[#allocation2 + $0x9] sm:$0x1] %vm121_vm1, %v468_v22 }
 0x118   : > { %1832 = vrsqrt.f32 %v526_v61  ;;  %531 = vst.msk [vmem:[#allocation2 + $0x2] sm:$0x1] %vm121_vm1, %v530_v29  ;;  %533 = vst.msk [vmem:[#allocation2 + $0x5] sm:$0x1] %vm121_vm1, %v532_v16 }
 0x121   : > { %v1831_v63 = vpop.eup %1830 }
 0x122   : > { %v1833_v55 = vpop.eup %1832  ;;  %v464_v32 = vmul.f32 %v1831_v63, %v460_v11  ;;  %v473_v53 = vmul.f32 %v1831_v63, %v471_v56  ;;  %v478_v46 = vmul.f32 %v1831_v63, %v472_v52  ;;  %v483_v48 = vmul.f32 %v1831_v63, %v481_v57 }
 0x123   : > { %v528_v0 = vmul.f32 %v1833_v55, %v524_v3  ;;  %v488_v7 = vmul.f32 %v1831_v63, %v482_v51  ;;  %v493_v58 = vmul.f32 %v1831_v63, %v491_v36  ;;  %v498_v59 = vmul.f32 %v1831_v63, %v492_v30  ;;  %v565_v63 = vld [vmem:[#allocation2 + $0x2] sm:$0x1] }
 0x124   : > { %v474_v60 = vmul.f32 %v472_v52, %v464_v32  ;;  %v477_v14 = vmul.f32 %v471_v56, %v464_v32  ;;  %v484_v18 = vmul.f32 %v482_v51, %v464_v32  ;;  %v487_v19 = vmul.f32 %v481_v57, %v464_v32  ;;  %v566_v56 = vld [vmem:[#allocation2 + $0x9] sm:$0x1] }
 0x125   : > { %v494_v2 = vmul.f32 %v492_v30, %v464_v32  ;;  %v497_v8 = vmul.f32 %v491_v36, %v464_v32  ;;  %v557_v12 = vmul.f32 %v1833_v55, %v555_v6  ;;  %v558_v37 = vmul.f32 %v556_v1, %v528_v0 }
 0x126   : > { %v475_v9 = vsub.f32 %v473_v53, %v474_v60  ;;  %v479_v10 = vadd.f32 %v478_v46, %v477_v14  ;;  %v485_v13 = vsub.f32 %v483_v48, %v484_v18  ;;  %v489_v15 = vadd.f32 %v488_v7, %v487_v19 }
 0x127   : > { %v495_v17 = vsub.f32 %v493_v58, %v494_v2  ;;  %v499_v39 = vadd.f32 %v498_v59, %v497_v8  ;;  %v559_v43 = vsub.f32 %v557_v12, %v558_v37  ;;  %v561_v4 = vmul.f32 %v555_v6, %v528_v0 }
 0x128   : > { %476 = vst.msk [vmem:[#allocation2 + $0x1] sm:$0x1] %vm121_vm1, %v475_v9  ;;  %480 = vst.msk [vmem:[#allocation2 + $0x7] sm:$0x1] %vm121_vm1, %v479_v10  ;;  %v562_v47 = vmul.f32 %v1833_v55, %v556_v1  ;;  %v568_v32 = vsub.f32 %v566_v56, %v565_v63 }
 0x129   : > { %486 = vst.msk [vmem:[#allocation2 + $0x3] sm:$0x1] %vm121_vm1, %v485_v13  ;;  %490 = vst.msk [vmem:[#allocation2 + $0x8] sm:$0x1] %vm121_vm1, %v489_v15  ;;  %v600_v15 = vld [vmem:[#allocation2 + $0x6] sm:$0x1] }
 0x12a   : > { %496 = vst.msk [vmem:[#allocation3] sm:$0x1] %vm121_vm1, %v495_v17  ;;  %500 = vst.msk [vmem:[#allocation3 + $0x3] sm:$0x1] %vm121_vm1, %v499_v39  ;;  %v563_v49 = vadd.f32 %v562_v47, %v561_v4  ;;  %v584_v58 = vand.u32 2147483647, %v568_v32 }
 0x12b   : > { %560 = vst.msk [vmem:[#allocation3 + $0x1] sm:$0x1] %vm121_vm1, %v559_v43  ;;  %vm569_vm9 = vcmp.ge.f32.partialorder %v568_v32, 0.0  ;;  %v609_v17 = vld [vmem:[#allocation2 + $0x4] sm:$0x1] }
 0x12c   : > { %564 = vst.msk [vmem:[#allocation3 + $0x2] sm:$0x1] %vm121_vm1, %v563_v49  ;;  %v570_v19 = vsel %vm569_vm9, 1.0, %v1941_v5 }
 0x12f   : > { %v535_v44 = vld [vmem:[#allocation2 + $0x1] sm:$0x1]  ;;  %v545_v3 = vld [vmem:[#allocation2 + $0x7] sm:$0x1] }
 0x130   : > { %v536_v11 = vld [vmem:[#allocation2 + $0x3] sm:$0x1]  ;;  %v537_v54 = vmul.f32 %v1833_v55, %v535_v44  ;;  %v541_v23 = vmul.f32 %v535_v44, %v528_v0  ;;  %v546_v21 = vld [vmem:[#allocation2 + $0x8] sm:$0x1]  ;;  %v547_v45 = vmul.f32 %v1833_v55, %v545_v3  ;;  %v551_v61 = vmul.f32 %v545_v3, %v528_v0 }
 0x131   : > { %v538_v20 = vmul.f32 %v536_v11, %v528_v0  ;;  %v542_v62 = vmul.f32 %v1833_v55, %v536_v11  ;;  %v548_v22 = vmul.f32 %v546_v21, %v528_v0  ;;  %v552_v29 = vmul.f32 %v1833_v55, %v546_v21 }
 0x132   : > { %v571_v55 = vmul.f32 %v568_v32, %v568_v32  ;;  %v619_v21 = vld [vmem:[#allocation3 + $0x1] sm:$0x1] }
 0x133   : > { %v539_v16 = vsub.f32 %v537_v54, %v538_v20  ;;  %v543_v52 = vadd.f32 %v542_v62, %v541_v23  ;;  %v549_v57 = vsub.f32 %v547_v45, %v548_v22  ;;  %v553_v30 = vadd.f32 %v552_v29, %v551_v61  ;;  %v620_v45 = vld [vmem:[#allocation3 + $0x3] sm:$0x1] }
 0x135   : > { %540 = vst.msk [vmem:[#allocation2 + $0x1] sm:$0x1] %vm121_vm1, %v539_v16  ;;  %544 = vst.msk [vmem:[#allocation2 + $0x3] sm:$0x1] %vm121_vm1, %v543_v52 }
 0x136   : > { %550 = vst.msk [vmem:[#allocation2 + $0x7] sm:$0x1] %vm121_vm1, %v549_v57  ;;  %554 = vst.msk [vmem:[#allocation2 + $0x8] sm:$0x1] %vm121_vm1, %v553_v30 }
 0x13c   : > { %v599_v4 = vld [vmem:[#allocation2 + $0x1] sm:$0x1] }
 0x13d   : > { %v567_v53 = vld [vmem:[#allocation2 + $0x7] sm:$0x1]  ;;  %v610_v47 = vld [vmem:[#allocation2 + $0x8] sm:$0x1] }
 0x13e   : > { %v572_v46 = vmul.f32 %v567_v53, %v567_v53  ;;  %598 = vst.msk [vmem:[#allocation2 + $0x7] sm:$0x1] %vm121_vm1, %v1940_v50  ;;  %v582_v18 = vmul.f32 2.0, %v567_v53 }
 0x140   : > { %v573_v51 = vmul.f32 4.0, %v572_v46  ;;  %v583_v1 = vmul.f32 %v582_v18, %v570_v19  ;;  %v629_v46 = vld [vmem:[#allocation2 + $0x5] sm:$0x1] }
 0x142   : > { %v574_v48 = vadd.f32 %v573_v51, %v571_v55 }
 0x144   : > { %1834 = vrsqrt.f32 %v574_v48  ;;  %vm577_vm7 = vcmp.eq.f32.partialorder %v574_v48, inf  ;;  %v580_v0 = vand.u32 2147483648, %v574_v48  ;;  %vm579_vm8 = vcmp.eq.f32.partialorder %v574_v48, 0.0 }
 0x14e   : > { %v1835_v36 = vpop.eup %1834 }
 0x14f   : > { %v576_v6 = vmul.f32 %v1835_v36, %v574_v48 }
 0x151   : > { %v578_v7 = vsel %vm577_vm7, %v574_v48, %v576_v6 }
 0x152   : > { %v581_v59 = vsel %vm579_vm8, %v580_v0, %v578_v7 }
 0x153   : > { %v585_v60 = vadd.f32 %v584_v58, %v581_v59 }
 0x155   : > { %v586_v14 = vadd.f32 1e-30, %v585_v60 }
 0x157   : > { %1836 = vrcp.f32 %v586_v14 }
 0x161   : > { %v1837_v2 = vpop.eup %1836 }
 0x162   : > { %v588_v8 = vmul.f32 %v1837_v2, %v583_v1 }
 0x164   : > { %v589_v12 = vmul.f32 %v588_v8, %v588_v8  ;;  %v593_v37 = vmul.f32 %v588_v8, %v567_v53 }
 0x166   : > { %v590_v9 = vadd.f32 1.0, %v589_v12  ;;  %v594_v10 = vsub.f32 %v565_v63, %v593_v37  ;;  %v596_v13 = vadd.f32 %v593_v37, %v566_v56 }
 0x168   : > { %1838 = vrsqrt.f32 %v590_v9  ;;  %595 = vst.msk [vmem:[#allocation2 + $0x2] sm:$0x1] %vm121_vm1, %v594_v10  ;;  %597 = vst.msk [vmem:[#allocation2 + $0x9] sm:$0x1] %vm121_vm1, %v596_v13 }
 0x16f   : > { %v630_v53 = vld [vmem:[#allocation2 + $0x9] sm:$0x1] }
 0x170   : > { %v632_v55 = vsub.f32 %v630_v53, %v629_v46 }
 0x172   : > { %v1839_v39 = vpop.eup %1838  ;;  %v635_v36 = vmul.f32 %v632_v55, %v632_v55  ;;  %v648_v14 = vand.u32 2147483647, %v632_v55  ;;  %vm633_vm12 = vcmp.ge.f32.partialorder %v632_v55, 0.0  ;;  %v694_v55 = vld [vmem:[#allocation2 + $0x2] sm:$0x1] (%p305_p0) }
 0x173   : > { %v592_v43 = vmul.f32 %v1839_v39, %v588_v8  ;;  %v601_v49 = vmul.f32 %v1839_v39, %v599_v4  ;;  %v606_v44 = vmul.f32 %v1839_v39, %v600_v15  ;;  %v611_v11 = vmul.f32 %v1839_v39, %v609_v17 }
 0x174   : > { %v616_v3 = vmul.f32 %v1839_v39, %v610_v47  ;;  %v621_v22 = vmul.f32 %v1839_v39, %v619_v21  ;;  %v626_v16 = vmul.f32 %v1839_v39, %v620_v45  ;;  %v634_v8 = vsel %vm633_vm12, 1.0, %v1941_v5  ;;  %v674_v39 = vld [vmem:[#allocation2 + $0x7] sm:$0x1] }
 0x175   : > { %v602_v54 = vmul.f32 %v600_v15, %v592_v43  ;;  %v605_v20 = vmul.f32 %v599_v4, %v592_v43  ;;  %v612_v23 = vmul.f32 %v610_v47, %v592_v43  ;;  %v615_v62 = vmul.f32 %v609_v17, %v592_v43  ;;  %v663_v47 = vld [vmem:[#allocation2 + $0x3] sm:$0x1] }
 0x176   : > { %v622_v61 = vmul.f32 %v620_v45, %v592_v43  ;;  %v625_v29 = vmul.f32 %v619_v21, %v592_v43  ;;  %v683_v45 = vld [vmem:[#allocation3 + $0x2] sm:$0x1]  ;;  %vm1677_vm12 = vcmask (%p305_p0), 130112  }
 0x177   : > { %v603_v52 = vsub.f32 %v601_v49, %v602_v54  ;;  %v607_v57 = vadd.f32 %v606_v44, %v605_v20  ;;  %v613_v30 = vsub.f32 %v611_v11, %v612_v23  ;;  %v617_v63 = vadd.f32 %v616_v3, %v615_v62 }
 0x178   : > { %v623_v56 = vsub.f32 %v621_v22, %v622_v61  ;;  %v627_v32 = vadd.f32 %v626_v16, %v625_v29 }
 0x179   : > { %604 = vst.msk [vmem:[#allocation2 + $0x1] sm:$0x1] %vm121_vm1, %v603_v52  ;;  %608 = vst.msk [vmem:[#allocation2 + $0x6] sm:$0x1] %vm121_vm1, %v607_v57 }
 0x17a   : > { %614 = vst.msk [vmem:[#allocation2 + $0x4] sm:$0x1] %vm121_vm1, %v613_v30  ;;  %618 = vst.msk [vmem:[#allocation2 + $0x8] sm:$0x1] %vm121_vm1, %v617_v63 }
 0x17b   : > { %624 = vst.msk [vmem:[#allocation3 + $0x1] sm:$0x1] %vm121_vm1, %v623_v56  ;;  %628 = vst.msk [vmem:[#allocation3 + $0x3] sm:$0x1] %vm121_vm1, %v627_v32 }
 0x180   : > { %v664_v49 = vld [vmem:[#allocation2 + $0x6] sm:$0x1] }
 0x181   : > { %v631_v51 = vld [vmem:[#allocation2 + $0x8] sm:$0x1]  ;;  %v673_v44 = vld [vmem:[#allocation2 + $0x4] sm:$0x1] }
 0x182   : > { %v636_v48 = vmul.f32 %v631_v51, %v631_v51  ;;  %662 = vst.msk [vmem:[#allocation2 + $0x8] sm:$0x1] %vm121_vm1, %v1940_v50  ;;  %v646_v2 = vmul.f32 2.0, %v631_v51  ;;  %v684_v22 = vld [vmem:[#allocation3 + $0x3] sm:$0x1] }
 0x184   : > { %v637_v6 = vmul.f32 4.0, %v636_v48  ;;  %v647_v50 = vmul.f32 %v646_v2, %v634_v8  ;;  %v736_v48 = vlaneseq (%p305_p0) }
 0x186   : > { %v638_v0 = vadd.f32 %v637_v6, %v635_v36  ;;  %v697_v6 = vld [vmem:[#allocation3] sm:$0x1] (%p305_p0) }
 0x188   : > { %1840 = vrsqrt.f32 %v638_v0  ;;  %vm641_vm10 = vcmp.eq.f32.partialorder %v638_v0, inf  ;;  %v644_v59 = vand.u32 2147483648, %v638_v0  ;;  %vm643_vm11 = vcmp.eq.f32.partialorder %v638_v0, 0.0 }
 0x192   : > { %v1841_v7 = vpop.eup %1840 }
 0x193   : > { %v640_v58 = vmul.f32 %v1841_v7, %v638_v0 }
 0x195   : > { %v642_v60 = vsel %vm641_vm10, %v638_v0, %v640_v58  ;;  %v698_v0 = vld [vmem:[#allocation3 + $0x1] sm:$0x1] (%p305_p0) }
 0x196   : > { %v645_v18 = vsel %vm643_vm11, %v644_v59, %v642_v60  ;;  %vm1610_vm11 = vcmask (%p305_p0), 64512  }
 0x197   : > { %v649_v19 = vadd.f32 %v648_v14, %v645_v18 }
 0x199   : > { %v650_v1 = vadd.f32 1e-30, %v649_v19  ;;  %v2354_v19 = vshrl.u32 (%p305_p0), %v736_v48, 7 }
 0x19b   : > { %1842 = vrcp.f32 %v650_v1 }
 0x1a5   : > { %v1843_v12 = vpop.eup %1842 }
 0x1a6   : > { %v652_v37 = vmul.f32 %v1843_v12, %v647_v50  ;;  %v2357_v12 = vsub.s32 (%p305_p0), 0, %v2354_v19 }
 0x1a8   : > { %v653_v9 = vmul.f32 %v652_v37, %v652_v37  ;;  %v657_v10 = vmul.f32 %v652_v37, %v631_v51 }
 0x1aa   : > { %v654_v13 = vadd.f32 1.0, %v653_v9  ;;  %v658_v15 = vsub.f32 %v629_v46, %v657_v10  ;;  %v660_v17 = vadd.f32 %v657_v10, %v630_v53  ;;  %v693_v46 = vld [vmem:[#allocation2] sm:$0x1] (%p305_p0) }
 0x1ab   :  { %vm701_vm13 = vcmp.gt.f32.partialorder (%p305_p0), %v693_v46, %v694_v55 }
 0x1ac   : > { %1844 = vrsqrt.f32 %v654_v13  ;;  %659 = vst.msk [vmem:[#allocation2 + $0x5] sm:$0x1] %vm121_vm1, %v658_v15  ;;  %661 = vst.msk [vmem:[#allocation2 + $0x9] sm:$0x1] %vm121_vm1, %v660_v17  ;;  %v702_v59 = vsel (%p305_p0), %vm701_vm13, %v694_v55, %v693_v46  ;;  %v703_v60 = vsel (%p305_p0), %vm701_vm13, %v693_v46, %v694_v55  ;;  %v704_v14 = vsel (%p305_p0), %vm701_vm13, %v698_v0, %v697_v6 }
 0x1ad   :  { %v705_v18 = vsel (%p305_p0), %vm701_vm13, %v697_v6, %v698_v0 }
 0x1b3   :  { %v695_v51 = vld [vmem:[#allocation2 + $0x5] sm:$0x1] (%p305_p0)  ;;  %v696_v36 = vld [vmem:[#allocation2 + $0x9] sm:$0x1] (%p305_p0) }
 0x1b4   :  { %vm706_vm14 = vcmp.gt.f32.partialorder (%p305_p0), %v695_v51, %v696_v36 }
 0x1b5   :  { %v707_v1 = vsel (%p305_p0), %vm706_vm14, %v696_v36, %v695_v51  ;;  %v708_v2 = vsel (%p305_p0), %vm706_vm14, %v695_v51, %v696_v36 }
 0x1b6   : > { %v1845_v43 = vpop.eup %1844  ;;  %vm711_vm15 = vcmp.gt.f32.partialorder (%p305_p0), %v702_v59, %v707_v1  ;;  %vm716_vm2 = vcmp.gt.f32.partialorder (%p305_p0), %v703_v60, %v708_v2 }
 0x1b7   : > { %v656_v4 = vmul.f32 %v1845_v43, %v652_v37  ;;  %v665_v5 = vmul.f32 %v1845_v43, %v663_v47  ;;  %v670_v11 = vmul.f32 %v1845_v43, %v664_v49  ;;  %v675_v3 = vmul.f32 %v1845_v43, %v673_v44 }
 0x1b8   : > { %v680_v54 = vmul.f32 %v1845_v43, %v674_v39  ;;  %v685_v61 = vmul.f32 %v1845_v43, %v683_v45  ;;  %v690_v52 = vmul.f32 %v1845_v43, %v684_v22  ;;  %v713_v37 = vsel (%p305_p0), %vm711_vm15, %v702_v59, %v707_v1 }
 0x1b9   : > { %v666_v20 = vmul.f32 %v664_v49, %v656_v4  ;;  %v669_v23 = vmul.f32 %v663_v47, %v656_v4  ;;  %v676_v62 = vmul.f32 %v674_v39, %v656_v4  ;;  %v679_v21 = vmul.f32 %v673_v44, %v656_v4  ;;  %307 = sbr.rel (!%p305_p0) target bundleno = 101 (0x65), region = 70 }
 0x1ba   : > { %v686_v29 = vmul.f32 %v684_v22, %v656_v4  ;;  %v689_v16 = vmul.f32 %v683_v45, %v656_v4  ;;  %v717_v13 = vsel (%p305_p0), %vm716_vm2, %v708_v2, %v703_v60  ;;  %v718_v51 = vsel (%p305_p0), %vm716_vm2, %v703_v60, %v708_v2 }
 0x1bb   : > { %v667_v57 = vsub.f32 %v665_v5, %v666_v20  ;;  %v671_v30 = vadd.f32 %v670_v11, %v669_v23  ;;  %v677_v63 = vsub.f32 %v675_v3, %v676_v62  ;;  %v681_v56 = vadd.f32 %v680_v54, %v679_v21 }
 0x1bc   : > { %v687_v32 = vsub.f32 %v685_v61, %v686_v29  ;;  %v691_v53 = vadd.f32 %v690_v52, %v689_v16  ;;  %vm721_vm3 = vcmp.gt.f32.partialorder (%p305_p0), %v717_v13, %v713_v37  ;;  %v3010_v16 = vld [vmem:[#allocation7_spill] sm:$0xff] (%p305_p0)  ;;  %v3011_v52 = vld [vmem:[#allocation8_spill] sm:$0xff] (%p305_p0) }
 0x1bd   : > { %668 = vst.msk [vmem:[#allocation2 + $0x3] sm:$0x1] %vm121_vm1, %v667_v57  ;;  %672 = vst.msk [vmem:[#allocation2 + $0x6] sm:$0x1] %vm121_vm1, %v671_v30  ;;  %v3012_v57 = vld [vmem:[#allocation9_spill] sm:$0xff] (%p305_p0) }
 0x1be   : > { %678 = vst.msk [vmem:[#allocation2 + $0x4] sm:$0x1] %vm121_vm1, %v677_v63  ;;  %682 = vst.msk [vmem:[#allocation2 + $0x7] sm:$0x1] %vm121_vm1, %v681_v56  ;;  %v723_v56 = vsel (%p305_p0), %vm721_vm3, %v717_v13, %v713_v37 }
 0x1bf   : > { %688 = vst.msk [vmem:[#allocation3 + $0x2] sm:$0x1] %vm121_vm1, %v687_v32  ;;  %692 = vst.msk [vmem:[#allocation3 + $0x3] sm:$0x1] %vm121_vm1, %v691_v53 }
 0x1c6   :  { %v699_v7 = vld [vmem:[#allocation3 + $0x2] sm:$0x1]  ;;  %v700_v58 = vld [vmem:[#allocation3 + $0x3] sm:$0x1] }
 0x1c7   :  { %v709_v8 = vsel %vm706_vm14, %v700_v58, %v699_v7  ;;  %v710_v50 = vsel %vm706_vm14, %v699_v7, %v700_v58 }
 0x1c8   :  { %v714_v9 = vsel %vm711_vm15, %v709_v8, %v704_v14  ;;  %v715_v10 = vsel %vm711_vm15, %v704_v14, %v709_v8  ;;  %v719_v15 = vsel %vm716_vm2, %v710_v50, %v705_v18  ;;  %v720_v17 = vsel %vm716_vm2, %v705_v18, %v710_v50 }
 0x1c9   :  { %732 = vst.msk [vmem:[%s3001_s5] sm:$0x1] %vm121_vm1, %v714_v9  ;;  %v724_v39 = vsel %vm721_vm3, %v715_v10, %v719_v15  ;;  %v725_v43 = vsel %vm721_vm3, %v719_v15, %v715_v10  ;;  %735 = vst.msk [vmem:[%s3001_s5 + $0x3] sm:$0x1] %vm121_vm1, %v720_v17  ;;  %v739_v4 = vrot.slane %v714_v9, %v2357_v12 }
 0x1ca   :  { %734 = vst.msk [vmem:[%s3001_s5 + $0x2] sm:$0x1] %vm121_vm1, %v725_v43  ;;  %v747_v47 = vrot.slane %v724_v39, %v2357_v12  ;;  %v759_v49 = vrot.slane %v725_v43, %v2357_v12  ;;  %v771_v44 = vrot.slane %v720_v17, %v2357_v12  ;;  %733 = vst.msk [vmem:[%s3001_s5 + $0x1] sm:$0x1] %vm121_vm1, %v724_v39 }
 0x1cb   :  { %v740_v5 = vmul.f32 %v739_v4, %v2004_v24  ;;  %v741_v11 = vmul.f32 %v739_v4, %v2009_v25  ;;  %v742_v3 = vmul.f32 %v739_v4, %v2014_v26  ;;  %v743_v54 = vmul.f32 %v739_v4, %v2019_v27 }
 0x1cc   :  { %v748_v20 = vmul.f32 %v2024_v28, %v747_v47  ;;  %v749_v23 = vmul.f32 %v2035_v31, %v747_v47  ;;  %v750_v62 = vmul.f32 %v2043_v33, %v747_v47  ;;  %v751_v21 = vmul.f32 %v2048_v34, %v747_v47 }
 0x1cd   :  { %v760_v45 = vmul.f32 %v2053_v35, %v759_v49  ;;  %v761_v22 = vmul.f32 %v2064_v38, %v759_v49  ;;  %v762_v24 = vmul.f32 %v2072_v40, %v759_v49  ;;  %v763_v25 = vmul.f32 %v2077_v41, %v759_v49 }
 0x1ce   :  { %v752_v61 = vadd.f32 %v748_v20, %v740_v5  ;;  %v753_v26 = vadd.f32 %v749_v23, %v741_v11  ;;  %v754_v29 = vadd.f32 %v750_v62, %v742_v3  ;;  %v755_v27 = vadd.f32 %v751_v21, %v743_v54 }
 0x1cf   :  { %v772_v28 = vmul.f32 %v2082_v42, %v771_v44  ;;  %v773_v31 = vmul.f32 %v3010_v16, %v771_v44  ;;  %v774_v33 = vmul.f32 %v3011_v52, %v771_v44  ;;  %v775_v34 = vmul.f32 %v3012_v57, %v771_v44 }
 0x1d0   :  { %v764_v30 = vadd.f32 %v760_v45, %v752_v61  ;;  %v765_v35 = vadd.f32 %v761_v22, %v753_v26  ;;  %v766_v63 = vadd.f32 %v762_v24, %v754_v29  ;;  %v767_v38 = vadd.f32 %v763_v25, %v755_v27 }
 0x1d1   :  { %v712_v40 = vsel %vm711_vm15, %v707_v1, %v702_v59  ;;  %v722_v41 = vsel %vm721_vm3, %v713_v37, %v717_v13 }
 0x1d2   :  { %v776_v32 = vadd.f32 %v772_v28, %v764_v30  ;;  %v777_v53 = vadd.f32 %v773_v31, %v765_v35  ;;  %v778_v46 = vadd.f32 %v774_v33, %v766_v63  ;;  %v779_v42 = vadd.f32 %v775_v34, %v767_v38 }
 0x1d3   :  { %v726_v55 = vadd.f32 %v722_v41, %v712_v40 }
 0x1d4   :  { %v780_v48 = vand.u32 2147483647, %v776_v32  ;;  %v781_v36 = vand.u32 2147483647, %v777_v53  ;;  %v782_v6 = vand.u32 2147483647, %v778_v46 }
 0x1d5   :  { %v783_v0 = vand.u32 2147483647, %v779_v42  ;;  %v727_v7 = vadd.f32 %v726_v55, %v723_v56 }
 0x1d6   :  { %v2407_v58 = vclamps-f32 %v780_v48, 0.9999999  ;;  %v2409_v14 = vclamps-f32 %v781_v36, 0.9999999  ;;  %v2411_v59 = vclamps-f32 %v782_v6, 0.9999999 }
 0x1d7   :  { %v2413_v18 = vclamps-f32 %v783_v0, 0.9999999  ;;  %v728_v1 = vadd.f32 %v727_v7, %v718_v51 }
 0x1d8   :  { %v792_v8 = vmul.f32 -0.0012624911, %v2407_v58  ;;  %v793_v50 = vmul.f32 -0.0012624911, %v2409_v14  ;;  %v794_v60 = vmul.f32 -0.0012624911, %v2411_v59 }
 0x1d9   :  { %v795_v2 = vmul.f32 -0.0012624911, %v2413_v18  ;;  %v848_v37 = vsub.f32 1.0, %v2407_v58  ;;  %v849_v9 = vsub.f32 1.0, %v2409_v14  ;;  %v850_v10 = vsub.f32 1.0, %v2411_v59 }
 0x1da   :  { %v796_v13 = vadd.f32 0.00667009, %v792_v8  ;;  %v797_v15 = vadd.f32 0.00667009, %v793_v50  ;;  %v798_v17 = vadd.f32 0.00667009, %v794_v60  ;;  %1846 = vrcp.f32 %v728_v1 }
 0x1db   :  { %v799_v39 = vadd.f32 0.00667009, %v795_v2  ;;  %v851_v43 = vsub.f32 1.0, %v2413_v18  ;;  %v2423_v4 = vmax.f32 %v848_v37, 0.0  ;;  %v2425_v47 = vmax.f32 %v849_v9, 0.0 }
 0x1dc   :  { %v800_v49 = vmul.f32 %v2407_v58, %v796_v13  ;;  %v801_v44 = vmul.f32 %v2409_v14, %v797_v15  ;;  %v802_v5 = vmul.f32 %v2411_v59, %v798_v17  ;;  %v2431_v3 = vmax.f32 %v850_v10, 0.0 }
 0x1dd   :  { %v803_v11 = vmul.f32 %v2413_v18, %v799_v39  ;;  %v2433_v54 = vmax.f32 %v851_v43, 0.0  ;;  %1848 = vrsqrt.f32 %v2423_v4  ;;  %vm858_vm4 = vcmp.eq.f32.partialorder %v2423_v4, inf }
 0x1de   :  { %v804_v20 = vadd.f32 -0.017088126, %v800_v49  ;;  %v805_v23 = vadd.f32 -0.017088126, %v801_v44  ;;  %v806_v62 = vadd.f32 -0.017088126, %v802_v5  ;;  %1850 = vrsqrt.f32 %v2425_v47 }
 0x1df   :  { %v807_v21 = vadd.f32 -0.017088126, %v803_v11  ;;  %1852 = vrsqrt.f32 %v2431_v3  ;;  %vm860_vm5 = vcmp.eq.f32.partialorder %v2423_v4, 0.0  ;;  %v861_v40 = vand.u32 2147483648, %v2423_v4 }
 0x1e0   :  { %v808_v45 = vmul.f32 %v2407_v58, %v804_v20  ;;  %v809_v22 = vmul.f32 %v2409_v14, %v805_v23  ;;  %v810_v24 = vmul.f32 %v2411_v59, %v806_v62  ;;  %1854 = vrsqrt.f32 %v2433_v54 }
 0x1e1   :  { %v811_v25 = vmul.f32 %v2413_v18, %v807_v21  ;;  %vm865_vm6 = vcmp.eq.f32.partialorder %v2425_v47, inf  ;;  %vm867_vm7 = vcmp.eq.f32.partialorder %v2425_v47, 0.0  ;;  %v868_v55 = vand.u32 2147483648, %v2425_v47 }
 0x1e2   :  { %v812_v61 = vadd.f32 0.03089188, %v808_v45  ;;  %v813_v26 = vadd.f32 0.03089188, %v809_v22  ;;  %v814_v29 = vadd.f32 0.03089188, %v810_v24 }
 0x1e3   :  { %v815_v27 = vadd.f32 0.03089188, %v811_v25  ;;  %vm872_vm8 = vcmp.eq.f32.partialorder %v2431_v3, inf  ;;  %v875_v1 = vand.u32 2147483648, %v2431_v3  ;;  %vm879_vm9 = vcmp.eq.f32.partialorder %v2433_v54, inf }
 0x1e4   :  { %v1847_v28 = vpop.eup %1846  ;;  %v816_v16 = vmul.f32 %v2407_v58, %v812_v61  ;;  %v817_v31 = vmul.f32 %v2409_v14, %v813_v26  ;;  %v818_v52 = vmul.f32 %v2411_v59, %v814_v29  ;;  %v882_v37 = vand.u32 2147483648, %v2433_v54 }
 0x1e5   :  { %v819_v33 = vmul.f32 %v2413_v18, %v815_v27  ;;  %v730_v57 = vmul.f32 %v1847_v28, %v718_v51  ;;  %vm881_vm10 = vcmp.eq.f32.partialorder %v2433_v54, 0.0 }
 0x1e6   :  { %v820_v34 = vadd.f32 -0.050174303, %v816_v16  ;;  %v821_v30 = vadd.f32 -0.050174303, %v817_v31  ;;  %v822_v35 = vadd.f32 -0.050174303, %v818_v52 }
 0x1e7   :  { %v1849_v63 = vpop.eup %1848  ;;  %v823_v38 = vadd.f32 -0.050174303, %v819_v33  ;;  %731 = vst.msk [vmem:[%s3000_s4] sm:$0x1] %vm121_vm1, %v730_v57  ;;  %vm874_vm1 = vcmp.eq.f32.partialorder %v2431_v3, 0.0 }
 0x1e8   :  { %v1851_v41 = vpop.eup %1850  ;;  %v824_v56 = vmul.f32 %v2407_v58, %v820_v34  ;;  %v825_v32 = vmul.f32 %v2409_v14, %v821_v30  ;;  %v826_v53 = vmul.f32 %v2411_v59, %v822_v35  ;;  %v857_v42 = vmul.f32 %v1849_v63, %v2423_v4 }
 0x1e9   :  { %v827_v46 = vmul.f32 %v2413_v18, %v823_v38  ;;  %v864_v6 = vmul.f32 %v1851_v41, %v2425_v47  ;;  %v1853_v0 = vpop.eup %1852 }
 0x1ea   :  { %v828_v51 = vadd.f32 0.08897899, %v824_v56  ;;  %v829_v48 = vadd.f32 0.08897899, %v825_v32  ;;  %v830_v36 = vadd.f32 0.08897899, %v826_v53  ;;  %v1855_v8 = vpop.eup %1854  ;;  %v859_v10 = vsel %vm858_vm4, %v2423_v4, %v857_v42 }
 0x1eb   :  { %v831_v7 = vadd.f32 0.08897899, %v827_v46  ;;  %v871_v13 = vmul.f32 %v1853_v0, %v2431_v3  ;;  %v878_v15 = vmul.f32 %v1855_v8, %v2433_v54  ;;  %v866_v49 = vsel %vm865_vm6, %v2425_v47, %v864_v6 }
 0x1ec   :  { %v832_v50 = vmul.f32 %v2407_v58, %v828_v51  ;;  %v833_v60 = vmul.f32 %v2409_v14, %v829_v48  ;;  %v834_v2 = vmul.f32 %v2411_v59, %v830_v36  ;;  %v862_v45 = vsel %vm860_vm5, %v861_v40, %v859_v10 }
 0x1ed   :  { %v835_v9 = vmul.f32 %v2413_v18, %v831_v7  ;;  %v873_v5 = vsel %vm872_vm8, %v2431_v3, %v871_v13  ;;  %v880_v11 = vsel %vm879_vm9, %v2433_v54, %v878_v15  ;;  %v869_v22 = vsel %vm867_vm7, %v868_v55, %v866_v49 }
 0x1ee   :  { %v836_v17 = vadd.f32 -0.2145988, %v832_v50  ;;  %v837_v39 = vadd.f32 -0.2145988, %v833_v60  ;;  %v838_v43 = vadd.f32 -0.2145988, %v834_v2  ;;  %v876_v24 = vsel %vm874_vm1, %v875_v1, %v873_v5 }
 0x1ef   :  { %v839_v44 = vadd.f32 -0.2145988, %v835_v9  ;;  %v883_v26 = vsel %vm881_vm10, %v882_v37, %v880_v11 }
 0x1f0   :  { %v840_v20 = vmul.f32 %v2407_v58, %v836_v17  ;;  %v841_v23 = vmul.f32 %v2409_v14, %v837_v39  ;;  %v842_v62 = vmul.f32 %v2411_v59, %v838_v43 }
 0x1f1   :  { %v843_v21 = vmul.f32 %v2413_v18, %v839_v44 }
 0x1f2   :  { %v844_v25 = vadd.f32 1.5707963, %v840_v20  ;;  %v845_v61 = vadd.f32 1.5707963, %v841_v23  ;;  %v846_v54 = vadd.f32 1.5707963, %v842_v62 }
 0x1f3   :  { %v847_v58 = vadd.f32 1.5707963, %v843_v21  ;;  %v1942_v20 = vmov 1966171168  }
 0x1f4   :  { %v884_v29 = vmul.f32 %v862_v45, %v844_v25  ;;  %v885_v14 = vmul.f32 %v869_v22, %v845_v61  ;;  %v886_v27 = vmul.f32 %v876_v24, %v846_v54  ;;  %v1009_v23 = vunpack.c.l.s4 %v1942_v20 }
 0x1f5   :  { %v887_v59 = vmul.f32 %v883_v26, %v847_v58 }
 0x1f6   :  { %v888_v28 = vmul.f32 0.63661975, %v884_v29  ;;  %v889_v18 = vmul.f32 0.63661975, %v885_v14  ;;  %v890_v16 = vmul.f32 0.63661975, %v886_v27  ;;  %v1010_v62 = vunpack.c.0.s8 %v1009_v23 }
 0x1f7   :  { %v891_v4 = vmul.f32 0.63661975, %v887_v59 }
 0x1f8   :  { %v892_v31 = vsub.f32 0.0, %v888_v28  ;;  %v893_v52 = vsub.f32 0.0, %v889_v18  ;;  %v894_v47 = vsub.f32 0.0, %v890_v16  ;;  %v2512_v25 = vsub.s32 %v1010_v62, %v2354_v19 }
 0x1f9   :  { %v895_v33 = vsub.f32 0.0, %v891_v4 }
 0x1fa   :  { %v896_v3 = vsel %vm67_vm0, %v892_v31, -inf  ;;  %v897_v57 = vsel %vm67_vm0, %v893_v52, -inf  ;;  %v898_v34 = vsel %vm67_vm0, %v894_v47, -inf }
 0x1fb   :  { %v899_v30 = vsel %vm67_vm0, %v895_v33, -inf  ;;  %v900_v35 = vmax.f32 %v896_v3, %v897_v57  ;;  %v939_v57 = vld [vmem:[%s2998_s2] sm:$0xff] }
 0x1fc   :  { %v901_v63 = vmax.f32 %v898_v34, %v899_v30  ;;  %v940_v30 = vld [vmem:[%s2998_s2 + $0x8] sm:$0xff] }
 0x1fe   :  { %v902_v38 = vmax.f32 %v900_v35, %v901_v63  ;;  %v941_v35 = vld [vmem:[%s2998_s2 + $0x10] sm:$0xff] }
 0x200   :  { %v903_v40 = vrot.slane %v902_v38, 4 }
 0x202   :  { %v904_v41 = vmax.f32 %v902_v38, %v903_v40 }
 0x204   :  { %v905_v56 = vrot.slane %v904_v41, 2 }
 0x206   :  { %v906_v32 = vmax.f32 %v904_v41, %v905_v56 }
 0x208   :  { %v907_v53 = vrot.slane %v906_v32, 1 }
 0x20a   :  { %v908_v46 = vmax.f32 %v906_v32, %v907_v53 }
 0x20c   :  { %v909_v42 = vsub.f32 %v892_v31, %v908_v46  ;;  %v910_v55 = vsub.f32 %v893_v52, %v908_v46  ;;  %v911_v51 = vsub.f32 %v894_v47, %v908_v46  ;;  %v912_v48 = vsub.f32 %v895_v33, %v908_v46  ;;  %v942_v46 = vld [vmem:[%s2998_s2 + $0x18] sm:$0xff] }
 0x20e   :  { %v913_v36 = vmul.f32 1.442695, %v909_v42  ;;  %v915_v6 = vmul.f32 1.442695, %v910_v55  ;;  %v917_v0 = vmul.f32 1.442695, %v911_v51 }
 0x20f   :  { %v919_v7 = vmul.f32 1.442695, %v912_v48  ;;  %v943_v42 = vld [vmem:[%s2998_s2 + $0x20] sm:$0xff]  ;;  %v945_v55 = vld [vmem:[%s2998_s2 + $0x30] sm:$0xff]  ;;  %v944_v48 = vld [vmem:[%s2998_s2 + $0x28] sm:$0xff] }
 0x210   :  { %1856 = vpow2.f32 %v913_v36 }
 0x211   :  { %1858 = vpow2.f32 %v915_v6 }
 0x212   :  { %1860 = vpow2.f32 %v917_v0 }
 0x213   :  { %1862 = vpow2.f32 %v919_v7 }
 0x21a   :  { %v1857_v1 = vpop.eup %1856 }
 0x21b   :  { %v1859_v8 = vpop.eup %1858  ;;  %v921_v50 = vsel %vm67_vm0, %v1857_v1, 0.0 }
 0x21c   :  { %v1861_v60 = vpop.eup %1860  ;;  %v922_v2 = vsel %vm67_vm0, %v1859_v8, 0.0 }
 0x21d   :  { %v1863_v37 = vpop.eup %1862  ;;  %v923_v9 = vadd.f32 %v922_v2, %v921_v50  ;;  %v924_v10 = vsel %vm67_vm0, %v1861_v60, 0.0  ;;  %v946_v50 = vld [vmem:[%s2998_s2 + $0x38] sm:$0xff] }
 0x21e   :  { %v926_v13 = vsel %vm67_vm0, %v1863_v37, 0.0 }
 0x21f   :  { %v925_v15 = vadd.f32 %v924_v10, %v923_v9 }
 0x221   :  { %v927_v17 = vadd.f32 %v926_v13, %v925_v15 }
 0x223   :  { %v928_v39 = vrot.slane %v927_v17, 4 }
 0x225   :  { %v929_v43 = vadd.f32 %v928_v39, %v927_v17  ;;  %v947_v39 = vld [vmem:[%s2998_s2 + $0x40] sm:$0xff] }
 0x227   :  { %v930_v49 = vrot.slane %v929_v43, 2 }
 0x229   :  { %v931_v44 = vadd.f32 %v930_v49, %v929_v43 }
 0x22b   :  { %v932_v5 = vrot.slane %v931_v44, 1 }
 0x22d   :  { %v933_v11 = vadd.f32 %v932_v5, %v931_v44  ;;  %v948_v44 = vld [vmem:[%s2998_s2 + $0x48] sm:$0xff] }
 0x22f   :  { %1864 = vrcp.f32 %v933_v11 }
 0x239   :  { %v1865_v21 = vpop.eup %1864 }
 0x23a   :  { %v2505_v45 = vmul.f32 %v1865_v21, %v1861_v60  ;;  %v2507_v22 = vmul.f32 %v1865_v21, %v1857_v1  ;;  %v2509_v24 = vmul.f32 %v1865_v21, %v1859_v8  ;;  %v2555_v41 = vmul.f32 %v1865_v21, %v1863_v37 }
 0x23c   :  { %v1617_v61 = vsel %vm1610_vm11, %v2505_v45, -inf  ;;  %v1611_v54 = vsel %vm1610_vm11, %v2507_v22, -inf  ;;  %v1056_v26 = vcombine.high %v2509_v24, %v2509_v24  ;;  %v1678_v58 = vsel %vm1677_vm12, %v2507_v22, -inf }
 0x23d   :  { %1618 = vmax.xlane.f32.xlu1 %v1617_v61  ;;  %1612 = vmax.xlane.f32.xlu0 %v1611_v54  ;;  %v2524_v29 = vrot.slane %v2509_v24, %v2512_v25  ;;  %v1014_v14 = vrot.slane %v2507_v22, %v2512_v25  ;;  %v1007_v27 = vcombine.high %v2507_v22, %v2507_v22  ;;  %v949_v61 = vld [vmem:[%s2998_s2 + $0x50] sm:$0xff] }
 0x23e   :  { %v2527_v19 = vrot.slane %v1056_v26, %v2512_v25  ;;  %v1105_v59 = vcombine.high %v2505_v45, %v2505_v45  ;;  %v1112_v28 = vrot.slane %v2505_v45, %v2512_v25 }
 0x23f   :  { %v1022_v18 = vcombine.high %v1014_v14, %v1014_v14  ;;  %v1021_v16 = vrot.slane %v1007_v27, %v2512_v25  ;;  %v1030_v4 = vrot.slane %v1014_v14, %v2512_v25 }
 0x240   :  { %v1119_v31 = vrot.slane %v1105_v59, %v2512_v25  ;;  %v1120_v52 = vcombine.high %v1112_v28, %v1112_v28  ;;  %v2542_v3 = vrot.slane %v1112_v28, %v2512_v25 }
 0x241   :  { %1679 = vmax.xlane.f32.xlu1 %v1678_v58  ;;  %v1044_v47 = vrot.slane %v1022_v18, %v2512_v25  ;;  %v1023_v33 = vcombine.high %v1021_v16, %v1021_v16  ;;  %v1037_v34 = vrot.slane %v1021_v16, %v2512_v25  ;;  %v1052_v63 = vcombine.high %v1030_v4, %v1030_v4 }
 0x242   :  { %v1206_v40 = vrot.slane %v1030_v4, %v2357_v12  ;;  %v1121_v56 = vcombine.high %v1119_v31, %v1119_v31  ;;  %v2558_v32 = vrot.slane %v1119_v31, %v2512_v25  ;;  %v2561_v53 = vrot.slane %v1120_v52, %v2512_v25  ;;  %v950_v31 = vld [vmem:[%s2998_s2 + $0x58] sm:$0xff] }
 0x243   :  { %v1054_v38 = vcombine.high %v1044_v47, %v1044_v47  ;;  %v1210_v51 = vrot.slane %v1044_v47, %v2357_v12  ;;  %v2577_v36 = vrot.slane %v1023_v33, %v2512_v25  ;;  %v1214_v6 = vrot.slane %v1052_v63, %v2357_v12 }
 0x244   :  { %v1363_v7 = vmul.f32 %v1206_v40, %v939_v57  ;;  %v1150_v1 = vcombine.high %v2542_v3, %v2542_v3  ;;  %v1270_v8 = vrot.slane %v2542_v3, %v2357_v12  ;;  %v1222_v60 = vrot.slane %v1037_v34, %v2357_v12  ;;  %v971_v57 = vld [vmem:[%s2998_s2 + $0x100] sm:$0xff] }
 0x245   :  { %v1218_v0 = vrot.slane %v1054_v38, %v2357_v12  ;;  %v1365_v2 = vmul.f32 %v1210_v51, %v941_v35  ;;  %v1364_v37 = vmul.f32 %v1206_v40, %v940_v30  ;;  %v1366_v9 = vmul.f32 %v1210_v51, %v942_v46  ;;  %v972_v38 = vld [vmem:[%s2998_s2 + $0x108] sm:$0xff] }
 0x246   :  { %v1367_v10 = vmul.f32 %v1214_v6, %v943_v42  ;;  %v2590_v15 = vrot.slane %v1121_v56, %v2512_v25  ;;  %v1151_v17 = vcombine.high %v2558_v32, %v2558_v32  ;;  %v1053_v43 = vcombine.high %v1037_v34, %v1037_v34  ;;  %v951_v42 = vld [vmem:[%s2998_s2 + $0x60] sm:$0xff] }
 0x247   :  { %v1369_v13 = vmul.f32 %v1218_v0, %v945_v55  ;;  %v1368_v49 = vmul.f32 %v1214_v6, %v944_v48  ;;  %v1226_v5 = vrot.slane %v2577_v36, %v2357_v12  ;;  %v1370_v11 = vmul.f32 %v1218_v0, %v946_v50 }
 0x248   :  { %v1427_v20 = vsel %vm67_vm0, %v1363_v7, 0.0  ;;  %v1428_v23 = vsel %vm67_vm0, %v1365_v2, 0.0  ;;  %v1152_v62 = vcombine.high %v2561_v53, %v2561_v53  ;;  %v1274_v21 = vrot.slane %v2561_v53, %v2357_v12  ;;  %v952_v7 = vld [vmem:[%s2998_s2 + $0x68] sm:$0xff] }
 0x249   :  { %v1429_v54 = vadd.f32 %v1428_v23, %v1427_v20  ;;  %v1430_v26 = vsel %vm67_vm0, %v1367_v10, 0.0  ;;  %v1371_v58 = vmul.f32 %v1222_v60, %v947_v39  ;;  %v1432_v14 = vsel %vm67_vm0, %v1369_v13, 0.0  ;;  %v974_v10 = vld [vmem:[%s2998_s2 + $0x118] sm:$0xff] }
 0x24a   :  { %v1490_v27 = vsel %vm67_vm0, %v1364_v37, 0.0  ;;  %v1491_v59 = vsel %vm67_vm0, %v1366_v9, 0.0  ;;  %v1372_v28 = vmul.f32 %v1222_v60, %v948_v44  ;;  %v1493_v4 = vsel %vm67_vm0, %v1368_v49, 0.0  ;;  %v973_v60 = vld [vmem:[%s2998_s2 + $0x110] sm:$0xff] }
 0x24b   :  { %v1431_v18 = vadd.f32 %v1430_v26, %v1429_v54  ;;  %v1492_v16 = vadd.f32 %v1491_v59, %v1490_v27  ;;  %v1230_v52 = vrot.slane %v1053_v43, %v2357_v12  ;;  %v1373_v47 = vmul.f32 %v1226_v5, %v949_v61  ;;  %v955_v54 = vld [vmem:[%s2998_s2 + $0x80] sm:$0xff]  ;;  %v976_v26 = vld [vmem:[%s2998_s2 + $0x128] sm:$0xff] }
 0x24c   :  { %v1495_v33 = vsel %vm67_vm0, %v1370_v11, 0.0  ;;  %v1071_v3 = vcombine.high %v2524_v29, %v2524_v29  ;;  %v1072_v35 = vcombine.high %v2527_v19, %v2527_v19  ;;  %v1079_v63 = vrot.slane %v2524_v29, %v2512_v25 }
 0x24d   :  { %v1433_v34 = vadd.f32 %v1432_v14, %v1431_v18  ;;  %v1494_v30 = vadd.f32 %v1493_v4, %v1492_v16  ;;  %v1434_v40 = vsel %vm67_vm0, %v1371_v58, 0.0  ;;  %v1086_v56 = vrot.slane %v2527_v19, %v2512_v25  ;;  %v956_v18 = vld [vmem:[%s2998_s2 + $0x88] sm:$0xff] }
 0x24e   :  { %v1093_v53 = vrot.slane %v1071_v3, %v2512_v25  ;;  %v1614_v46 = vsel %vm1610_vm11, %v2509_v24, -inf  ;;  %v1374_v55 = vmul.f32 %v1226_v5, %v950_v31  ;;  %v1497_v51 = vsel %vm67_vm0, %v1372_v28, 0.0 }
 0x24f   :  { %v1496_v29 = vadd.f32 %v1495_v33, %v1494_v30  ;;  %v1100_v48 = vrot.slane %v1072_v35, %v2512_v25  ;;  %1615 = vmax.xlane.f32.xlu0 %v1614_v46  ;;  %v1278_v6 = vrot.slane %v1150_v1, %v2357_v12  ;;  %v2647_v19 = vrot.slane %v2558_v32, %v2357_v12  ;;  %v953_v32 = vld [vmem:[%s2998_s2 + $0x70] sm:$0xff]  ;;  %v959_v33 = vld [vmem:[%s2998_s2 + $0xa0] sm:$0xff]  ;;  %v960_v30 = vld [vmem:[%s2998_s2 + $0xa8] sm:$0xff] }
 0x250   :  { %v2649_v0 = vmul.f32 %v1270_v8, %v971_v57  ;;  %v1055_v50 = vcombine.high %v2577_v36, %v2577_v36  ;;  %v1153_v1 = vcombine.high %v2590_v15, %v2590_v15  ;;  %v2662_v2 = vrot.slane %v1152_v62, %v2357_v12  ;;  %v961_v35 = vld [vmem:[%s2998_s2 + $0xb0] sm:$0xff] }
 0x251   :  { %v2664_v37 = vmul.f32 %v1270_v8, %v972_v38  ;;  %v1435_v9 = vadd.f32 %v1434_v40, %v1433_v34  ;;  %v1375_v13 = vmul.f32 %v1230_v52, %v951_v42  ;;  %v1436_v36 = vsel %vm67_vm0, %v1373_v47, 0.0  ;;  %v975_v8 = vld [vmem:[%s2998_s2 + $0x120] sm:$0xff]  ;;  %v958_v47 = vld [vmem:[%s2998_s2 + $0x98] sm:$0xff] }
 0x252   :  { %v1498_v39 = vadd.f32 %v1497_v51, %v1496_v29  ;;  %v1101_v43 = vcombine.high %v1079_v63, %v1079_v63  ;;  %v1376_v49 = vmul.f32 %v1230_v52, %v952_v7  ;;  %v1499_v44 = vsel %vm67_vm0, %v1374_v55, 0.0  ;;  %v954_v42 = vld [vmem:[%s2998_s2 + $0x78] sm:$0xff] }
 0x253   :  { %v1103_v5 = vcombine.high %v1093_v53, %v1093_v53  ;;  %v1238_v11 = vrot.slane %v1079_v63, %v2357_v12  ;;  %v2677_v20 = vrot.slane %v2590_v15, %v2357_v12  ;;  %v2683_v23 = vrot.slane %v1151_v17, %v2357_v12  ;;  %v962_v63 = vld [vmem:[%s2998_s2 + $0xb8] sm:$0xff]  ;;  %v981_v15 = vld [vmem:[%s2998_s2 + $0x150] sm:$0xff] }
 0x254   :  { %v2685_v62 = vmul.f32 %v1274_v21, %v973_v60  ;;  %v1234_v61 = vrot.slane %v1055_v50, %v2357_v12  ;;  %v2694_v58 = vmul.f32 %v1274_v21, %v974_v10  ;;  %v1437_v14 = vadd.f32 %v1436_v36, %v1435_v9  ;;  %v957_v21 = vld [vmem:[%s2998_s2 + $0x90] sm:$0xff] }
 0x255   :  { %v1102_v17 = vcombine.high %v1086_v56, %v1086_v56  ;;  %v1242_v27 = vrot.slane %v1093_v53, %v2357_v12  ;;  %v1438_v59 = vsel %vm67_vm0, %v1375_v13, 0.0  ;;  %v1500_v28 = vadd.f32 %v1499_v44, %v1498_v39  ;;  %v963_v13 = vld [vmem:[%s2998_s2 + $0xc0] sm:$0xff] }
 0x256   :  { %v1104_v16 = vcombine.high %v1100_v48, %v1100_v48  ;;  %v1246_v4 = vrot.slane %v1101_v43, %v2357_v12  ;;  %v2708_v31 = vmul.f32 %v1278_v6, %v975_v8  ;;  %v1501_v52 = vsel %vm67_vm0, %v1376_v49, 0.0 }
 0x257   :  { %v1250_v3 = vrot.slane %v1103_v5, %v2357_v12  ;;  %v1379_v57 = vmul.f32 %v1238_v11, %v955_v54  ;;  %v2718_v34 = vmul.f32 %v1278_v6, %v976_v26  ;;  %v1254_v38 = vrot.slane %v1086_v56, %v2357_v12 }
 0x258   :  { %v1258_v40 = vrot.slane %v1100_v48, %v2357_v12  ;;  %v1377_v53 = vmul.f32 %v1234_v61, %v953_v32  ;;  %v1439_v46 = vadd.f32 %v1438_v59, %v1437_v14  ;;  %v2735_v55 = vrot.slane %v1102_v17, %v2357_v12  ;;  %v965_v17 = vld [vmem:[%s2998_s2 + $0xd0] sm:$0xff] }
 0x259   :  { %v1380_v29 = vmul.f32 %v1238_v11, %v956_v18  ;;  %v1381_v51 = vmul.f32 %v1242_v27, %v957_v21  ;;  %v1502_v6 = vadd.f32 %v1501_v52, %v1500_v28  ;;  %v2738_v7 = vrot.slane %v1104_v16, %v2357_v12  ;;  %v977_v21 = vld [vmem:[%s2998_s2 + $0x130] sm:$0xff] }
 0x25a   :  { %v1382_v50 = vmul.f32 %v1242_v27, %v958_v47  ;;  %v1383_v60 = vmul.f32 %v1246_v4, %v959_v33  ;;  %v1384_v56 = vmul.f32 %v1246_v4, %v960_v30  ;;  %v1385_v9 = vmul.f32 %v1250_v3, %v961_v35  ;;  %v966_v33 = vld [vmem:[%s2998_s2 + $0xd8] sm:$0xff] }
 0x25b   :  { %v1386_v48 = vmul.f32 %v1250_v3, %v962_v63  ;;  %v1442_v10 = vsel %vm67_vm0, %v1379_v57, 0.0  ;;  %v1378_v36 = vmul.f32 %v1234_v61, %v954_v42  ;;  %v1440_v39 = vsel %vm67_vm0, %v1377_v53, 0.0  ;;  %v964_v61 = vld [vmem:[%s2998_s2 + $0xc8] sm:$0xff]  ;;  %v967_v3 = vld [vmem:[%s2998_s2 + $0xe0] sm:$0xff]  ;;  %v978_v53 = vld [vmem:[%s2998_s2 + $0x138] sm:$0xff] }
 0x25c   :  { %v1154_v43 = vcombine.high %v2555_v41, %v2555_v41  ;;  %v1161_v49 = vrot.slane %v2555_v41, %v2512_v25  ;;  %v1444_v44 = vsel %vm67_vm0, %v1381_v51, 0.0  ;;  %v1505_v5 = vsel %vm67_vm0, %v1380_v29, 0.0 }
 0x25d   :  { %v1441_v11 = vadd.f32 %v1440_v39, %v1439_v46  ;;  %v1620_v8 = vsel %vm1610_vm11, %v2555_v41, -inf  ;;  %v1503_v54 = vsel %vm67_vm0, %v1378_v36, 0.0  ;;  %v1387_v27 = vmul.f32 %v1254_v38, %v963_v13  ;;  %v979_v46 = vld [vmem:[%s2998_s2 + $0x140] sm:$0xff] }
 0x25e   :  { %v1168_v26 = vrot.slane %v1154_v43, %v2512_v25  ;;  %v1169_v14 = vcombine.high %v1161_v49, %v1161_v49  ;;  %v2759_v32 = vrot.slane %v1161_v49, %v2512_v25  ;;  %1621 = vmax.xlane.f32.xlu1 %v1620_v8  ;;  %v1446_v59 = vsel %vm67_vm0, %v1383_v60, 0.0  ;;  %v968_v60 = vld [vmem:[%s2998_s2 + $0xe8] sm:$0xff]  ;;  %v983_v43 = vld [vmem:[%s2998_s2 + $0x160] sm:$0xff]  ;;  %v982_v8 = vld [vmem:[%s2998_s2 + $0x158] sm:$0xff] }
 0x25f   :  { %v1443_v28 = vadd.f32 %v1442_v10, %v1441_v11  ;;  %v1504_v18 = vadd.f32 %v1503_v54, %v1502_v6  ;;  %v1507_v16 = vsel %vm67_vm0, %v1382_v50, 0.0  ;;  %v1388_v57 = vmul.f32 %v1254_v38, %v964_v61 }
 0x260   :  { %v1170_v4 = vcombine.high %v1168_v26, %v1168_v26  ;;  %v2770_v52 = vrot.slane %v1168_v26, %v2512_v25  ;;  %v2773_v47 = vrot.slane %v1169_v14, %v2512_v25  ;;  %v1681_v63 = vsel %vm1677_vm12, %v2509_v24, -inf }
 0x261   :  { %v1445_v30 = vadd.f32 %v1444_v44, %v1443_v28  ;;  %v1506_v35 = vadd.f32 %v1505_v5, %v1504_v18  ;;  %v1389_v42 = vmul.f32 %v1258_v40, %v965_v17  ;;  %v1448_v29 = vsel %vm67_vm0, %v1385_v9, 0.0  ;;  %1682 = vmax.xlane.f32.xlu0 %v1681_v63  ;;  %v969_v9 = vld [vmem:[%s2998_s2 + $0xf0] sm:$0xff]  ;;  %v970_v5 = vld [vmem:[%s2998_s2 + $0xf8] sm:$0xff] }
 0x262   :  { %v1509_v51 = vsel %vm67_vm0, %v1384_v56, 0.0  ;;  %v2792_v38 = vrot.slane %v1170_v4, %v2512_v25  ;;  %v1298_v6 = vrot.slane %v1153_v1, %v2357_v12  ;;  %v1401_v50 = vmul.f32 %v2662_v2, %v977_v21  ;;  %v980_v25 = vld [vmem:[%s2998_s2 + $0x148] sm:$0xff] }
 0x263   :  { %v1447_v56 = vadd.f32 %v1446_v59, %v1445_v30  ;;  %v1508_v10 = vadd.f32 %v1507_v16, %v1506_v35  ;;  %v1390_v1 = vmul.f32 %v1258_v40, %v966_v33  ;;  %v1391_v13 = vmul.f32 %v2735_v55, %v967_v3 }
 0x264   :  { %v1450_v36 = vsel %vm67_vm0, %v1387_v27, 0.0  ;;  %v1511_v39 = vsel %vm67_vm0, %v1386_v48, 0.0  ;;  %v1402_v49 = vmul.f32 %v2662_v2, %v978_v53  ;;  %v1403_v44 = vmul.f32 %v2647_v19, %v979_v46  ;;  %v984_v48 = vld [vmem:[%s2998_s2 + $0x168] sm:$0xff] }
 0x265   :  { %v1449_v11 = vadd.f32 %v1448_v29, %v1447_v56  ;;  %v1510_v40 = vadd.f32 %v1509_v51, %v1508_v10  ;;  %v1392_v61 = vmul.f32 %v2735_v55, %v968_v60  ;;  %v1393_v2 = vmul.f32 %v2738_v7, %v969_v9 }
 0x266   :  { %v1452_v54 = vsel %vm67_vm0, %v1389_v42, 0.0  ;;  %v1513_v26 = vsel %vm67_vm0, %v1388_v57, 0.0  ;;  %v1404_v14 = vmul.f32 %v2647_v19, %v980_v25  ;;  %v1405_v17 = vmul.f32 %v2677_v20, %v981_v15 }
 0x267   :  { %v1451_v27 = vadd.f32 %v1450_v36, %v1449_v11  ;;  %v1512_v59 = vadd.f32 %v1511_v39, %v1510_v40  ;;  %v1407_v28 = vmul.f32 %v2683_v23, %v983_v43  ;;  %v1394_v18 = vmul.f32 %v2738_v7, %v970_v5 }
 0x268   :  { %v1454_v21 = vsel %vm67_vm0, %v1391_v13, 0.0  ;;  %v1515_v55 = vsel %vm67_vm0, %v1390_v1, 0.0  ;;  %v1406_v16 = vmul.f32 %v2677_v20, %v982_v8  ;;  %v1408_v4 = vmul.f32 %v2683_v23, %v984_v48  ;;  %v985_v23 = vld [vmem:[%s2998_s2 + $0x170] sm:$0xff] }
 0x269   :  { %v1453_v33 = vadd.f32 %v1452_v54, %v1451_v27  ;;  %v1514_v3 = vadd.f32 %v1513_v26, %v1512_v59  ;;  %v1458_v19 = vsel %vm67_vm0, %v2649_v0, 0.0  ;;  %v1460_v57 = vsel %vm67_vm0, %v2685_v62, 0.0  ;;  %v986_v0 = vld [vmem:[%s2998_s2 + $0x178] sm:$0xff] }
 0x26a   :  { %v1456_v30 = vsel %vm67_vm0, %v1393_v2, 0.0  ;;  %v1517_v7 = vsel %vm67_vm0, %v1392_v61, 0.0  ;;  %v1462_v35 = vsel %vm67_vm0, %v2708_v31, 0.0  ;;  %v1464_v63 = vsel %vm67_vm0, %v1401_v50, 0.0 }
 0x26b   :  { %v1455_v20 = vadd.f32 %v1454_v21, %v1453_v33  ;;  %v1516_v53 = vadd.f32 %v1515_v55, %v1514_v3  ;;  %v1466_v62 = vsel %vm67_vm0, %v1403_v44, 0.0  ;;  %v1468_v46 = vsel %vm67_vm0, %v1405_v17, 0.0 }
 0x26c   :  { %v2858_v42 = vsel %vm67_vm0, %v1407_v28, 0.0  ;;  %v1519_v31 = vsel %vm67_vm0, %v1394_v18, 0.0  ;;  %v1521_v29 = vsel %vm67_vm0, %v2664_v37, 0.0  ;;  %v1523_v51 = vsel %vm67_vm0, %v2694_v58, 0.0 }
 0x26d   :  { %v1457_v50 = vadd.f32 %v1456_v30, %v1455_v20  ;;  %v1518_v60 = vadd.f32 %v1517_v7, %v1516_v53  ;;  %v1525_v9 = vsel %vm67_vm0, %v2718_v34, 0.0  ;;  %v1527_v56 = vsel %vm67_vm0, %v1402_v49, 0.0 }
 0x26e   :  { %v1409_v10 = vmul.f32 %v1298_v6, %v985_v23  ;;  %v1410_v25 = vmul.f32 %v1298_v6, %v986_v0  ;;  %v1529_v15 = vsel %vm67_vm0, %v1404_v14, 0.0  ;;  %v1531_v1 = vsel %vm67_vm0, %v1406_v16, 0.0  ;;  %v987_v14 = vld [vmem:[%s2998_s2 + $0x180] sm:$0xff]  ;;  %v989_v16 = vld [vmem:[%s2998_s2 + $0x190] sm:$0xff] }
 0x26f   :  { %v1459_v13 = vadd.f32 %v1458_v19, %v1457_v50  ;;  %v1520_v36 = vadd.f32 %v1519_v31, %v1518_v60  ;;  %v2871_v37 = vsel %vm67_vm0, %v1408_v4, 0.0  ;;  %v1687_v58 = vsel %vm1677_vm12, %v2555_v41, -inf  ;;  %v992_v31 = vld [vmem:[%s2998_s2 + $0x1a8] sm:$0xff]  ;;  %v994_v60 = vld [vmem:[%s2998_s2 + $0x1b8] sm:$0xff] }
 0x270   :  { %v1684_v39 = vsel %vm1677_vm12, %v2505_v45, -inf  ;;  %v1557_v34 = vmul.f32 14.285714, %v2507_v22  ;;  %1688 = vmax.xlane.f32.xlu1 %v1687_v58  ;;  %v1558_v6 = vmul.f32 14.285714, %v2509_v24  ;;  %v1472_v5 = vsel %vm67_vm0, %v1409_v10, 0.0 }
 0x271   :  { %v1461_v43 = vadd.f32 %v1460_v57, %v1459_v13  ;;  %v1522_v49 = vadd.f32 %v1521_v29, %v1520_v36  ;;  %1685 = vmax.xlane.f32.xlu0 %v1684_v39  ;;  %v1559_v44 = vmul.f32 14.285714, %v2505_v45  ;;  %v2882_v11 = vsel %vm67_vm0, %v1410_v25, 0.0  ;;  %v993_v29 = vld [vmem:[%s2998_s2 + $0x1b0] sm:$0xff]  ;;  %v998_v39 = vld [vmem:[%s2998_s2 + $0x1d8] sm:$0xff] }
 0x272   :  { %v1561_v40 = vmax.f32 %v1557_v34, 0.0  ;;  %v1560_v8 = vmul.f32 14.285714, %v2555_v41  ;;  %v1562_v2 = vmax.f32 %v1558_v6, 0.0  ;;  %v1199_v54 = vcombine.high %v2759_v32, %v2759_v32  ;;  %v997_v58 = vld [vmem:[%s2998_s2 + $0x1d0] sm:$0xff] }
 0x273   :  { %v1524_v48 = vadd.f32 %v1523_v51, %v1522_v49  ;;  %v1463_v61 = vadd.f32 %v1462_v35, %v1461_v43  ;;  %v1563_v22 = vmax.f32 %v1559_v44, 0.0  ;;  %v1302_v24 = vrot.slane %v2759_v32, %v2357_v12  ;;  %v988_v32 = vld [vmem:[%s2998_s2 + $0x188] sm:$0xff]  ;;  %v991_v35 = vld [vmem:[%s2998_s2 + $0x1a0] sm:$0xff] }
 0x274   :  { %v1565_v26 = vmin.f32 %v1561_v40, 1.0  ;;  %v1564_v45 = vmax.f32 %v1560_v8, 0.0  ;;  %v1566_v59 = vmin.f32 %v1562_v2, 1.0  ;;  %v1201_v28 = vcombine.high %v2773_v47, %v2773_v47 }
 0x275   :  { %v1465_v17 = vadd.f32 %v1464_v63, %v1463_v61  ;;  %v1526_v27 = vadd.f32 %v1525_v9, %v1524_v48  ;;  %v1567_v41 = vmin.f32 %v1563_v22, 1.0  ;;  %v1306_v18 = vrot.slane %v2773_v47, %v2357_v12  ;;  %v990_v47 = vld [vmem:[%s2998_s2 + $0x198] sm:$0xff]  ;;  %v1001_v48 = vld [vmem:[%s2998_s2 + $0x1f0] sm:$0xff] }
 0x276   :  { %v1569_v21 = vsub.f32 1.0, %v1565_v26  ;;  %v1568_v55 = vmin.f32 %v1564_v45, 1.0  ;;  %v1570_v3 = vsub.f32 1.0, %v1566_v59  ;;  %v1310_v57 = vrot.slane %v1199_v54, %v2357_v12 }
 0x277   :  { %v1467_v4 = vadd.f32 %v1466_v62, %v1465_v17  ;;  %v1528_v33 = vadd.f32 %v1527_v56, %v1526_v27  ;;  %v1571_v19 = vsub.f32 1.0, %v1567_v41  ;;  %v1411_v30 = vmul.f32 %v1302_v24, %v987_v14 }
 0x278   :  { %1866 = vlog2.f32 %v1569_v21  ;;  %v1572_v7 = vsub.f32 1.0, %v1568_v55  ;;  %v1200_v63 = vcombine.high %v2770_v52, %v2770_v52  ;;  %v1314_v23 = vrot.slane %v1201_v28, %v2357_v12 }
 0x279   :  { %v1469_v20 = vadd.f32 %v1468_v46, %v1467_v4  ;;  %v1530_v53 = vadd.f32 %v1529_v15, %v1528_v33  ;;  %1868 = vlog2.f32 %v1570_v3  ;;  %v1412_v0 = vmul.f32 %v1302_v24, %v988_v32  ;;  %v995_v15 = vld [vmem:[%s2998_s2 + $0x1c0] sm:$0xff]  ;;  %v1002_v24 = vld [vmem:[%s2998_s2 + $0x1f8] sm:$0xff] }
 0x27a   :  { %v1413_v62 = vmul.f32 %v1306_v18, %v989_v16  ;;  %1870 = vlog2.f32 %v1571_v19  ;;  %v1202_v51 = vcombine.high %v2792_v38, %v2792_v38  ;;  %v1318_v9 = vrot.slane %v2770_v52, %v2357_v12 }
 0x27b   :  { %v1471_v46 = vadd.f32 %v2858_v42, %v1469_v20  ;;  %v1532_v50 = vadd.f32 %v1531_v1, %v1530_v53  ;;  %1872 = vlog2.f32 %v1572_v7  ;;  %v1414_v56 = vmul.f32 %v1306_v18, %v990_v47  ;;  %v996_v42 = vld [vmem:[%s2998_s2 + $0x1c8] sm:$0xff] }
 0x27c   :  { %v1415_v10 = vmul.f32 %v1310_v57, %v991_v35  ;;  %v1474_v25 = vsel %vm67_vm0, %v1411_v30, 0.0  ;;  %v1322_v1 = vrot.slane %v2792_v38, %v2357_v12  ;;  %v1326_v13 = vrot.slane %v1200_v63, %v2357_v12  ;;  %v999_v38 = vld [vmem:[%s2998_s2 + $0x1e0] sm:$0xff] }
 0x27d   :  { %v1473_v36 = vadd.f32 %v1472_v5, %v1471_v46  ;;  %v1534_v52 = vadd.f32 %v2871_v37, %v1532_v50  ;;  %v1416_v34 = vmul.f32 %v1310_v57, %v992_v31  ;;  %v1417_v43 = vmul.f32 %v1314_v23, %v993_v29  ;;  %v1000_v37 = vld [vmem:[%s2998_s2 + $0x1e8] sm:$0xff] }
 0x27e   :  { %v1476_v49 = vsel %vm67_vm0, %v1413_v62, 0.0  ;;  %v1537_v6 = vsel %vm67_vm0, %v1412_v0, 0.0  ;;  %v1330_v44 = vrot.slane %v1202_v51, %v2357_v12  ;;  %v1418_v5 = vmul.f32 %v1314_v23, %v994_v60 }
 0x27f   :  { %v1475_v40 = vadd.f32 %v1474_v25, %v1473_v36  ;;  %v1536_v8 = vadd.f32 %v2882_v11, %v1534_v52  ;;  %v1419_v61 = vmul.f32 %v1318_v9, %v995_v15  ;;  %v1420_v2 = vmul.f32 %v1318_v9, %v996_v42 }
 0x280   :  { %v1478_v22 = vsel %vm67_vm0, %v1415_v10, 0.0  ;;  %v1539_v54 = vsel %vm67_vm0, %v1414_v56, 0.0  ;;  %v1421_v26 = vmul.f32 %v1322_v1, %v997_v58  ;;  %v1422_v12 = vmul.f32 %v1322_v1, %v998_v39 }
 0x281   :  { %v1477_v45 = vadd.f32 %v1476_v49, %v1475_v40  ;;  %v1538_v14 = vadd.f32 %v1537_v6, %v1536_v8  ;;  %v1423_v11 = vmul.f32 %v1326_v13, %v999_v38  ;;  %v1424_v27 = vmul.f32 %v1326_v13, %v1000_v37 }
 0x282   :  { %v1867_v17 = vpop.eup %1866  ;;  %v1480_v59 = vsel %vm67_vm0, %v1417_v43, 0.0  ;;  %v1541_v41 = vsel %vm67_vm0, %v1416_v34, 0.0  ;;  %v1425_v18 = vmul.f32 %v1330_v44, %v1001_v48  ;;  %v1426_v4 = vmul.f32 %v1330_v44, %v1002_v24 }
 0x283   :  { %v1869_v28 = vpop.eup %1868  ;;  %v1479_v21 = vadd.f32 %v1478_v22, %v1477_v45  ;;  %v1540_v55 = vadd.f32 %v1539_v54, %v1538_v14  ;;  %v1574_v32 = vmul.f32 0.6931472, %v1867_v17  ;;  %v1482_v33 = vsel %vm67_vm0, %v1419_v61, 0.0 }
 0x284   :  { %v1871_v16 = vpop.eup %1870  ;;  %v1543_v3 = vsel %vm67_vm0, %v1418_v5, 0.0  ;;  %v1576_v19 = vmul.f32 0.6931472, %v1869_v28  ;;  %v1484_v63 = vsel %vm67_vm0, %v1421_v26, 0.0  ;;  %v1545_v20 = vsel %vm67_vm0, %v1420_v2, 0.0 }
 0x285   :  { %v1873_v57 = vpop.eup %1872  ;;  %v1481_v30 = vadd.f32 %v1480_v59, %v1479_v21  ;;  %v1542_v7 = vadd.f32 %v1541_v41, %v1540_v55  ;;  %v1581_v47 = vmax.f32 %v1574_v32, -100.0  ;;  %v1578_v35 = vmul.f32 0.6931472, %v1871_v16 }
 0x286   :  { %v1582_v53 = vmax.f32 %v1576_v19, -100.0  ;;  %v1580_v23 = vmul.f32 0.6931472, %v1873_v57  ;;  %v1486_v51 = vsel %vm67_vm0, %v1423_v11, 0.0  ;;  %v1547_v46 = vsel %vm67_vm0, %v1422_v12, 0.0 }
 0x287   :  { %v1483_v0 = vadd.f32 %v1482_v33, %v1481_v30  ;;  %v1544_v62 = vadd.f32 %v1543_v3, %v1542_v7  ;;  %v1585_v31 = vsub.f32 0.0, %v1581_v47  ;;  %v1583_v29 = vmax.f32 %v1578_v35, -100.0 }
 0x288   :  { %v1586_v50 = vsub.f32 0.0, %v1582_v53  ;;  %v1584_v60 = vmax.f32 %v1580_v23, -100.0  ;;  %v1488_v15 = vsel %vm67_vm0, %v1425_v18, 0.0  ;;  %v1549_v42 = vsel %vm67_vm0, %v1424_v27, 0.0 }
 0x289   :  { %v1485_v9 = vadd.f32 %v1484_v63, %v1483_v0  ;;  %v1546_v56 = vadd.f32 %v1545_v20, %v1544_v62  ;;  %v1589_v10 = vsel %vm67_vm0, %v1585_v31, 0.0  ;;  %v1587_v25 = vsub.f32 0.0, %v1583_v29 }
 0x28a   :  { %1590 = vadd.xlane.f32.xlu0 %v1589_v10  ;;  %v1592_v1 = vsel %vm67_vm0, %v1586_v50, 0.0  ;;  %v1588_v13 = vsub.f32 0.0, %v1584_v60  ;;  %v1551_v39 = vsel %vm67_vm0, %v1426_v4, 0.0 }
 0x28b   :  { %v1487_v36 = vadd.f32 %v1486_v51, %v1485_v9  ;;  %v1548_v52 = vadd.f32 %v1547_v46, %v1546_v56  ;;  %1593 = vadd.xlane.f32.xlu1 %v1592_v1  ;;  %v1595_v58 = vsel %vm67_vm0, %v1587_v25, 0.0 }
 0x28c   :  { %v1598_v34 = vsel %vm67_vm0, %v1588_v13, 0.0 }
 0x28d   :  { %v1489_v43 = vadd.f32 %v1488_v15, %v1487_v36  ;;  %v1550_v49 = vadd.f32 %v1549_v42, %v1548_v52 }
 0x28e   :  { %1596 = vadd.xlane.f32.xlu0 %v1595_v58 }
 0x28f   :  { %v1552_v6 = vadd.f32 %v1551_v39, %v1550_v49  ;;  %v1553_v38 = vmul.f32 0.03125, %v1489_v43  ;;  %1599 = vadd.xlane.f32.xlu1 %v1598_v34 }
 0x291   :  { %v1554_v37 = vmul.f32 0.03125, %v1552_v6  ;;  %1555 = vst.msk [vmem:[%s3002_s6] sm:$0xff] %vm67_vm0, %v1553_v38 }
 0x293   :  { %1556 = vst.msk [vmem:[%s3002_s6 + $0x8] sm:$0xff] %vm67_vm0, %v1554_v37  ;;  %s1943_s6 = smov [#allocation4]   ;;  %vm1745_vm0 = vcmask 0  }
 0x294   :  { %s1759_s20 = sshll.u32 %s1943_s6, 4  ;;  %s1760_s20 = int_to_ptr.vmem [resolvable:$true] %s1759_s20 }
 0x295   :  { %s1906_s21 = scalar_lea.vmem %s1760_s20, 16  ;;  %s1910_s22 = scalar_lea.vmem %s1760_s20, 32 }
 0x296   :  { %p1907_p1 = scmp.ne.s32.totalorder %s1760_s20, %s1906_s21  ;;  %p1911_p2 = scmp.lt.s32.totalorder %s1760_s20, %s1760_s20 }
 0x297   :  { %p1912_p3 = scmp.lt.s32.totalorder %s1910_s22, %s1906_s21 }
 0x299   :  { %p1913_p4 = por %p1912_p3, %p1911_p2 }
 0x29b   :  { %p1914_p5 = pnand %p1913_p4, %p1907_p1 }
 0x2ca   :  { %v1613_v44 = vpop.xlane.xlu0 %1612  ;;  %v1619_v40 = vpop.xlane.xlu1 %1618 }
 0x2cb   :  { %v1623_v48 = vmul.f32 14.285714, %v1613_v44  ;;  %v1625_v22 = vmul.f32 14.285714, %v1619_v40 }
 0x2cd   :  { %v1627_v2 = vmax.f32 %v1623_v48, 0.0  ;;  %v1629_v12 = vmax.f32 %v1625_v22, 0.0 }
 0x2ce   :  { %v1680_v54 = vpop.xlane.xlu1 %1679 }
 0x2cf   :  { %v1631_v26 = vmin.f32 %v1627_v2, 1.0  ;;  %v1633_v27 = vmin.f32 %v1629_v12, 1.0  ;;  %v1690_v41 = vmul.f32 14.285714, %v1680_v54 }
 0x2d1   :  { %v1647_v17 = vsub.f32 1.0, %v1631_v26  ;;  %v1649_v55 = vsub.f32 1.0, %v1633_v27  ;;  %v1694_v16 = vmax.f32 %v1690_v41, 0.0 }
 0x2d3   :  { %v1698_v3 = vmin.f32 %v1694_v16, 1.0 }
 0x2d5   :  { %v1714_v47 = vsub.f32 1.0, %v1698_v3 }
 0x2dc   :  { %v1616_v5 = vpop.xlane.xlu0 %1615 }
 0x2dd   :  { %v1624_v8 = vmul.f32 14.285714, %v1616_v5 }
 0x2df   :  { %v1628_v61 = vmax.f32 %v1624_v8, 0.0 }
 0x2e1   :  { %v1632_v24 = vmin.f32 %v1628_v61, 1.0 }
 0x2e3   :  { %v1648_v45 = vsub.f32 1.0, %v1632_v24 }
 0x2e5   :  { %1874 = vlog2.f32 %v1648_v45 }
 0x2e6   :  { %1876 = vlog2.f32 %v1647_v17 }
 0x2e7   :  { %1878 = vlog2.f32 %v1632_v24 }
 0x2e8   :  { %1880 = vlog2.f32 %v1631_v26 }
 0x2e9   :  { %1882 = vlog2.f32 %v1633_v27 }
 0x2ea   :  { %1884 = vlog2.f32 %v1649_v55 }
 0x2eb   :  { %v1622_v14 = vpop.xlane.xlu1 %1621 }
 0x2ec   :  { %v1626_v11 = vmul.f32 14.285714, %v1622_v14 }
 0x2ee   :  { %v1630_v59 = vmax.f32 %v1626_v11, 0.0  ;;  %v1683_v28 = vpop.xlane.xlu0 %1682 }
 0x2ef   :  { %v1691_v21 = vmul.f32 14.285714, %v1683_v28  ;;  %v1875_v19 = vpop.eup %1874 }
 0x2f0   :  { %v1634_v18 = vmin.f32 %v1630_v59, 1.0  ;;  %v1877_v57 = vpop.eup %1876  ;;  %v1654_v63 = vmul.f32 0.6931472, %v1875_v19 }
 0x2f1   :  { %v1695_v32 = vmax.f32 %v1691_v21, 0.0  ;;  %v1879_v7 = vpop.eup %1878  ;;  %v1652_v53 = vmul.f32 0.6931472, %v1877_v57 }
 0x2f2   :  { %v1650_v4 = vsub.f32 1.0, %v1634_v18  ;;  %1886 = vlog2.f32 %v1634_v18  ;;  %v1881_v35 = vpop.eup %1880  ;;  %v1638_v23 = vmul.f32 0.6931472, %v1879_v7  ;;  %v1660_v50 = vmax.f32 %v1654_v63, -100.0 }
 0x2f3   :  { %v1699_v33 = vmin.f32 %v1695_v32, 1.0  ;;  %v1883_v20 = vpop.eup %1882  ;;  %v1636_v29 = vmul.f32 0.6931472, %v1881_v35  ;;  %v1659_v15 = vmax.f32 %v1652_v53, -100.0 }
 0x2f4   :  { %1888 = vlog2.f32 %v1650_v4  ;;  %v1885_v31 = vpop.eup %1884  ;;  %v1640_v56 = vmul.f32 0.6931472, %v1883_v20  ;;  %v1644_v42 = vmax.f32 %v1638_v23, -100.0 }
 0x2f5   :  { %v1715_v30 = vsub.f32 1.0, %v1699_v33  ;;  %1890 = vlog2.f32 %v1698_v3  ;;  %v1656_v25 = vmul.f32 0.6931472, %v1885_v31  ;;  %v1643_v13 = vmax.f32 %v1636_v29, -100.0 }
 0x2f6   :  { %v1664_v52 = vsub.f32 %v1660_v50, %v1644_v42  ;;  %v1645_v43 = vmax.f32 %v1640_v56, -100.0 }
 0x2f7   :  { %1892 = vlog2.f32 %v1715_v30  ;;  %v1661_v6 = vmax.f32 %v1656_v25, -100.0  ;;  %v1663_v38 = vsub.f32 %v1659_v15, %v1643_v13 }
 0x2f8   :  { %1894 = vlog2.f32 %v1714_v47 }
 0x2f9   :  { %1896 = vlog2.f32 %v1699_v33  ;;  %v1667_v40 = vadd.f32 %v1664_v52, %v1663_v38  ;;  %v1665_v22 = vsub.f32 %v1661_v6, %v1645_v43 }
 0x2fb   :  { %v1668_v45 = vadd.f32 %v1667_v40, %v1665_v22 }
 0x2fc   :  { %v1887_v46 = vpop.eup %1886 }
 0x2fd   :  { %v1689_v0 = vpop.xlane.xlu1 %1688  ;;  %v1642_v58 = vmul.f32 0.6931472, %v1887_v46 }
 0x2fe   :  { %v1686_v62 = vpop.xlane.xlu0 %1685  ;;  %v1693_v51 = vmul.f32 14.285714, %v1689_v0  ;;  %v1889_v9 = vpop.eup %1888 }
 0x2ff   :  { %v1692_v60 = vmul.f32 14.285714, %v1686_v62  ;;  %v1658_v39 = vmul.f32 0.6931472, %v1889_v9  ;;  %v1891_v44 = vpop.eup %1890  ;;  %v1646_v8 = vmax.f32 %v1642_v58, -100.0 }
 0x300   :  { %v1697_v10 = vmax.f32 %v1693_v51, 0.0  ;;  %v1703_v24 = vmul.f32 0.6931472, %v1891_v44 }
 0x301   :  { %v1696_v1 = vmax.f32 %v1692_v60, 0.0  ;;  %v1893_v5 = vpop.eup %1892  ;;  %v1662_v48 = vmax.f32 %v1658_v39, -100.0 }
 0x302   :  { %v1701_v36 = vmin.f32 %v1697_v10, 1.0  ;;  %v1895_v61 = vpop.eup %1894  ;;  %v1721_v54 = vmul.f32 0.6931472, %v1893_v5  ;;  %v1710_v59 = vmax.f32 %v1703_v24, -100.0 }
 0x303   :  { %v1700_v34 = vmin.f32 %v1696_v1, 1.0  ;;  %v1897_v2 = vpop.eup %1896  ;;  %v1719_v26 = vmul.f32 0.6931472, %v1895_v61  ;;  %v1666_v12 = vsub.f32 %v1662_v48, %v1646_v8 }
 0x304   :  { %1898 = vlog2.f32 %v1701_v36  ;;  %v1717_v49 = vsub.f32 1.0, %v1701_v36  ;;  %v1705_v14 = vmul.f32 0.6931472, %v1897_v2  ;;  %v1727_v11 = vmax.f32 %v1721_v54, -100.0 }
 0x305   :  { %1900 = vlog2.f32 %v1700_v34  ;;  %v1716_v37 = vsub.f32 1.0, %v1700_v34  ;;  %v1726_v41 = vmax.f32 %v1719_v26, -100.0  ;;  %v1669_v28 = vadd.f32 %v1668_v45, %v1666_v12 }
 0x306   :  { %1902 = vlog2.f32 %v1717_v49  ;;  %v1711_v21 = vmax.f32 %v1705_v14, -100.0 }
 0x307   :  { %1904 = vlog2.f32 %v1716_v37  ;;  %v1730_v19 = vsub.f32 %v1726_v41, %v1710_v59  ;;  %v1670_v57 = vrot.slane %v1669_v28, 4 }
 0x308   :  { %v1731_v33 = vsub.f32 %v1727_v11, %v1711_v21 }
 0x309   :  { %v1671_v0 = vadd.f32 %v1670_v57, %v1669_v28 }
 0x30a   :  { %v1734_v63 = vadd.f32 %v1731_v33, %v1730_v19 }
 0x30b   :  { %v1672_v9 = vrot.slane %v1671_v0, 2 }
 0x30d   :  { %v1673_v42 = vadd.f32 %v1672_v9, %v1671_v0 }
 0x30e   :  { %v1899_v17 = vpop.eup %1898 }
 0x30f   :  { %v1901_v27 = vpop.eup %1900  ;;  %v1709_v55 = vmul.f32 0.6931472, %v1899_v17  ;;  %v1674_v58 = vrot.slane %v1673_v42, 1 }
 0x310   :  { %v1903_v18 = vpop.eup %1902  ;;  %v1707_v32 = vmul.f32 0.6931472, %v1901_v27 }
 0x311   :  { %v1905_v16 = vpop.eup %1904  ;;  %v1725_v4 = vmul.f32 0.6931472, %v1903_v18  ;;  %v1713_v30 = vmax.f32 %v1709_v55, -100.0  ;;  %v1675_v49 = vadd.f32 %v1674_v58, %v1673_v42 }
 0x312   :  { %v1723_v3 = vmul.f32 0.6931472, %v1905_v16  ;;  %v1712_v47 = vmax.f32 %v1707_v32, -100.0 }
 0x313   :  { %v1729_v7 = vmax.f32 %v1725_v4, -100.0 }
 0x314   :  { %v1728_v35 = vmax.f32 %v1723_v3, -100.0 }
 0x315   :  { %v1733_v62 = vsub.f32 %v1729_v7, %v1713_v30 }
 0x316   :  { %v1732_v20 = vsub.f32 %v1728_v35, %v1712_v47 }
 0x317   :  { %v1591_v53 = vpop.xlane.xlu0 %1590 }
 0x318   :  { %v1594_v23 = vpop.xlane.xlu1 %1593  ;;  %v1735_v31 = vadd.f32 %v1734_v63, %v1732_v20 }
 0x319   :  { %v1601_v29 = vadd.f32 %v1594_v23, %v1591_v53 }
 0x31a   :  { %v1736_v46 = vadd.f32 %v1735_v31, %v1733_v62 }
 0x31b   :  { %v1597_v51 = vpop.xlane.xlu0 %1596 }
 0x31c   :  { %v1602_v50 = vadd.f32 %v1601_v29, %v1597_v51  ;;  %v1600_v60 = vpop.xlane.xlu1 %1599  ;;  %v1737_v56 = vrot.slane %v1736_v46, 4 }
 0x31e   :  { %v1603_v10 = vadd.f32 %v1602_v50, %v1600_v60  ;;  %v1738_v25 = vadd.f32 %v1737_v56, %v1736_v46 }
 0x320   :  { %v1604_v15 = vrot.slane %v1603_v10, 4  ;;  %v1739_v1 = vrot.slane %v1738_v25, 2 }
 0x322   :  { %v1605_v13 = vadd.f32 %v1604_v15, %v1603_v10  ;;  %v1740_v36 = vadd.f32 %v1739_v1, %v1738_v25 }
 0x324   :  { %v1606_v52 = vrot.slane %v1605_v13, 2  ;;  %v1741_v34 = vrot.slane %v1740_v36, 1 }
 0x326   :  { %v1607_v39 = vadd.f32 %v1606_v52, %v1605_v13  ;;  %v1742_v38 = vadd.f32 %v1741_v34, %v1740_v36 }
 0x328   :  { %v1608_v43 = vrot.slane %v1607_v39, 1 }
 0x32a   :  { %v1609_v6 = vadd.f32 %v1608_v43, %v1607_v39 }
 0x32c   :  { %v1676_v37 = vadd.f32 %v1675_v49, %v1609_v6 }
 0x32e   :  { %v1743_v44 = vadd.f32 %v1742_v38, %v1676_v37 }
 0x330   :  { %v1744_v5 = vmul.f32 0.001953125, %v1743_v44 }
 0x332   :  { %1746 = vst.msk [vmem:[#allocation4] sm:$0x1] %vm1745_vm0, %v1744_v5 }
 0x333   :  { %1917 = shalt.err (!%p1914_p5)
}
 0x334   :  { %s1918_s25 = scalar_lea.hbm %s3003_s7, 16 }
 0x335   :  { %p1919_p6 = scmp.ne.s32.totalorder %s3003_s7, %s1918_s25  ;;  %p1922_p7 = scmp.lt.u32.totalorder %s1918_s25, %s3003_s7 }
 0x337   :  { %p1924_p8 = pnand %p1922_p7, %p1919_p6 }
 0x339   :  { %1927 = shalt.err (!%p1924_p8)
}
 0x33a   :  { %1762 = dma.vmem_to_hbm [thread:$0]  %s1760_s20, 16, %s3003_s7, [#allocation5]  }
 0x33b   :  { %1932 = dma.done.wait [#allocation5], 16  }
 0x33c   :  { %1933 = vsyncadd [#allocation5], 4294967280 }
 0x33d   :  { %1772 = vsyncpa [#allocation5], 1 }

</bundles_post_ra>
